<compile_context>
chip_gen: v6e
topology: v6e:2x2x1
jax: 0.10.0
libtpu: 0.0.40
codegen_flags: <defaults>
</compile_context>

<pallas_src>
import jax
import jax.numpy as jnp
from jax.experimental import pallas as pl
from jax.experimental.pallas import tpu as pltpu

NUM_FEATURES = 16
HIDDEN = 32
NUM_LAYERS = 3
NUM_OUTPUTS = 2
BATCH = 2
SEQ = 8


# ------------------------------------------------------------------ kernel

def _make_mylstm_kernel(T, B):
    H = HIDDEN
    H4 = 4 * H      # 128
    H8 = 8 * H      # 256

    def kernel(x_ref, wih0_ref, wih1_ref, wih2_ref, whh_ref, b_ref,
               fcw_ref, fcb_ref, out_ref, act_a, act_b):
        # Hoisted constant: selects fwd rows (0..B-1) vs bwd rows (B..2B-1)
        # of the merged (2B, 8H) recurrent-gate slab.
        row_is_fwd = jax.lax.broadcasted_iota(jnp.int32, (2 * B, H4), 0) < B

        def run_layer(x_all, wih_ref, layer, y_ref):
            # ---- hoisted input projection (off the recurrence) ----------
            # (T*B, D_in) @ (D_in, 8H) -> (T*B, 8H), both directions at once,
            # bias added once per layer.
            ig = (jnp.dot(x_all, wih_ref[...],
                          preferred_element_type=jnp.float32) + b_ref[layer])
            # Per-step combined input gates (2B, 4H): fwd rows = time t
            # (left 4H cols), bwd rows = time T-1-t (right 4H cols).  Pure
            # functions of `ig`, so they schedule off the critical path.
            igc = [jnp.concatenate(
                       [ig[t * B:(t + 1) * B, :H4],
                        ig[(T - 1 - t) * B:(T - t) * B, H4:]], axis=0)
                   for t in range(T)]

            w_hh = whh_ref[layer]                               # (H, 8H)
            h = jnp.zeros((2 * B, H), jnp.float32)
            c = jnp.zeros((2 * B, H), jnp.float32)

            # ---- fully-unrolled recurrence (T=8 static steps) ------------
            # Critical path per step: h -> (2B,32)@(32,256) MXU dot ->
            # select/add -> sigmoid/tanh (EUP) -> cell update (VPU) -> h.
            for t in range(T):
                if t == 0:
                    gates = igc[0]                              # h == 0
                else:
                    rg = jnp.dot(h, w_hh,
                                 preferred_element_type=jnp.float32)  # (2B,8H)
                    gates = igc[t] + jnp.where(row_is_fwd,
                                               rg[:, :H4], rg[:, H4:])
                sg = jax.nn.sigmoid(gates)                      # 1 EUP pass
                th = jnp.tanh(gates)                            # 1 EUP pass
                # Gate columns were permuted at pack time to (f, i, g, o).
                if t == 0:
                    c = sg[:, H:2 * H] * th[:, 2 * H:3 * H]     # c_prev == 0
                else:
                    c = sg[:, :H] * c + sg[:, H:2 * H] * th[:, 2 * H:3 * H]
                h = sg[:, 3 * H:] * jnp.tanh(c)
                if y_ref is not None:
                    # Next layer's input rows (time-major, [fwd | bwd] lanes).
                    # Not on the recurrence critical path.
                    y_ref[pl.ds(t * B, B), :H] = h[:B]
                    y_ref[pl.ds((T - 1 - t) * B, B), H:] = h[B:]
            return h

        run_layer(x_ref[...], wih0_ref, 0, act_a)
        run_layer(act_a[...], wih1_ref, 1, act_b)
        h_fin = run_layer(act_b[...], wih2_ref, 2, None)   # only final h needed

        # Final Linear fused into the kernel tail
        # (torch: h[-2] = fwd final, h[-1] = bwd final of the last layer).
        feat = jnp.concatenate([h_fin[:B], h_fin[B:]], axis=1)      # (B, 2H)
        out_ref[...] = (jnp.dot(feat, fcw_ref[...],
                                preferred_element_type=jnp.float32)
                        + fcb_ref[...])

    return kernel


# ------------------------------------------------------------ model wrapper

def my_lstm_forward_pallas(x, packed):
    """x: (B, T, NUM_FEATURES) batch_first, like the PyTorch module."""
    B, T, D = x.shape
    # Time-major flattening only; no zero-padding of activations.
    x2 = jnp.transpose(x, (1, 0, 2)).reshape(T * B, D)

    vmem = pl.BlockSpec(memory_space=pltpu.MemorySpace.VMEM)
    return pl.pallas_call(
        _make_mylstm_kernel(T, B),
        out_shape=jax.ShapeDtypeStruct((B, NUM_OUTPUTS), jnp.float32),
        in_specs=[vmem] * 8,
        out_specs=vmem,
        scratch_shapes=[
            pltpu.VMEM((T * B, 2 * HIDDEN), jnp.float32),   # act_a (layer 0 out)
            pltpu.VMEM((T * B, 2 * HIDDEN), jnp.float32),   # act_b (layer 1 out)
        ],
    )(x2, packed["w_ih0"], packed["w_ih1"], packed["w_ih2"],
      packed["w_hh"], packed["b"], packed["fc_w_t"], packed["fc_b"])


# ----------------------------------------------------- pure-JAX reference

def _lstm_layer_ref(x, wih_t, whh_t, b):
    T, B, _ = x.shape
    H = whh_t.shape[0]

    def step(carry, x_t):
        h, c = carry
        gates = x_t @ wih_t + h @ whh_t + b
        i_g = jax.nn.sigmoid(gates[:, 0 * H:1 * H])
        f_g = jax.nn.sigmoid(gates[:, 1 * H:2 * H])
        g_g = jnp.tanh(gates[:, 2 * H:3 * H])
        o_g = jax.nn.sigmoid(gates[:, 3 * H:4 * H])
        c = f_g * c + i_g * g_g
        h = o_g * jnp.tanh(c)
        return (h, c), h

    (hT, _), ys = jax.lax.scan(
        step, (jnp.zeros((B, H), jnp.float32), jnp.zeros((B, H), jnp.float32)), x)
    return ys, hT


def my_lstm_forward_ref(x, raw):
    xt = jnp.transpose(x, (1, 0, 2))
    inp = xt
    h_f = h_b = None
    for layer in range(NUM_LAYERS):
        pf = raw["lstm"][layer]["fwd"]
        pb = raw["lstm"][layer]["bwd"]
        y_f, h_f = _lstm_layer_ref(inp, pf["w_ih"].T, pf["w_hh"].T,
                                   (pf["b_ih"] + pf["b_hh"])[None, :])
        y_b_rev, h_b = _lstm_layer_ref(inp[::-1], pb["w_ih"].T, pb["w_hh"].T,
                                       (pb["b_ih"] + pb["b_hh"])[None, :])
        inp = jnp.concatenate([y_f, y_b_rev[::-1]], axis=-1)
    feat = jnp.concatenate([h_f, h_b], axis=-1)
    return feat @ raw["fc"]["w"].T + raw["fc"]["b"][None, :]


# ------------------------------------------------------------------ params

def init_raw_params(key):
    """Deterministic init mimicking PyTorch's U(-1/sqrt(H), 1/sqrt(H))."""
    bound = 1.0 / jnp.sqrt(jnp.float32(HIDDEN))

    def uni(k, shape):
        return jax.random.uniform(k, shape, jnp.float32, -bound, bound)

    keys = iter(jax.random.split(key, NUM_LAYERS * 2 * 4 + 2))
    lstm = []
    for layer in range(NUM_LAYERS):
        in_size = NUM_FEATURES if layer == 0 else 2 * HIDDEN
        layer_p = {}
        for direction in ("fwd", "bwd"):
            layer_p[direction] = {
                "w_ih": uni(next(keys), (4 * HIDDEN, in_size)),  # torch (4H, D)
                "w_hh": uni(next(keys), (4 * HIDDEN, HIDDEN)),   # torch (4H, H)
                "b_ih": uni(next(keys), (4 * HIDDEN,)),
                "b_hh": uni(next(keys), (4 * HIDDEN,)),
            }
        lstm.append(layer_p)
    fc_w = uni(next(keys), (NUM_OUTPUTS, 2 * HIDDEN))            # torch (O, 2H)
    fc_b = uni(next(keys), (NUM_OUTPUTS,))
    return {"lstm": lstm, "fc": {"w": fc_w, "b": fc_b}}


def _permute_gates_ifgo_to_figo(a):
    """Reorder torch gate blocks [i, f, g, o] along axis 0 to kernel order [f, i, g, o]."""
    H = HIDDEN
    return jnp.concatenate([a[H:2 * H], a[:H], a[2 * H:3 * H], a[3 * H:4 * H]],
                           axis=0)


def pack_params(raw):
    """Pack torch-layout params into the fused-kernel layout.

    Per layer:
      w_ih : (D_in, 8H) = [W_ih_fwd^T | W_ih_bwd^T], gate cols (f, i, g, o)
      w_hh : (H,    8H) = [W_hh_fwd^T | W_hh_bwd^T]
      b    : (1,    8H) = [b_fwd | b_bwd] with b = b_ih + b_hh (permuted)
    """
    wih, whh, bias = [], [], []
    for layer in range(NUM_LAYERS):
        w_cols, h_cols, b_cols = [], [], []
        for direction in ("fwd", "bwd"):
            p = raw["lstm"][layer][direction]
            w_cols.append(_permute_gates_ifgo_to_figo(p["w_ih"]).T)   # (D_in, 4H)
            h_cols.append(_permute_gates_ifgo_to_figo(p["w_hh"]).T)   # (H, 4H)
            b_cols.append(_permute_gates_ifgo_to_figo(p["b_ih"] + p["b_hh"]))
        wih.append(jnp.concatenate(w_cols, axis=1))                   # (D_in, 8H)
        whh.append(jnp.concatenate(h_cols, axis=1))                   # (H, 8H)
        bias.append(jnp.concatenate(b_cols, axis=0).reshape(1, 8 * HIDDEN))
    return {
        "w_ih0": wih[0],                    # (16, 256)
        "w_ih1": wih[1],                    # (64, 256)
        "w_ih2": wih[2],                    # (64, 256)
        "w_hh": jnp.stack(whh),             # (3, 32, 256)
        "b": jnp.stack(bias),               # (3, 1, 256)
        "fc_w_t": raw["fc"]["w"].T,         # (2H, O)
        "fc_b": raw["fc"]["b"].reshape(1, NUM_OUTPUTS),
    }


# -------------------------------------------------------------------- main

if __name__ == "__main__":
    key = jax.random.PRNGKey(0)
    kp, kx = jax.random.split(key)
    raw = init_raw_params(kp)
    packed = pack_params(raw)
    x = jax.random.normal(kx, (BATCH, SEQ, NUM_FEATURES), jnp.float32)  # (B,T,D)

    out = jax.jit(my_lstm_forward_pallas)(x, packed)
    out = jax.block_until_ready(out)
    assert out.shape == (BATCH, NUM_OUTPUTS), out.shape

    # correctness check vs. pure-JAX reference (torch-layout params)
    out_ref = jax.block_until_ready(my_lstm_forward_ref(x, raw))
    assert jnp.allclose(out, out_ref, atol=1e-4, rtol=1e-4), (out, out_ref)

    print("KERNEL_OK")
</pallas_src>

<mosaic_0001>
module attributes {stable_mosaic.version = 11 : i64} {
  func.func @kernel(%arg0: memref<16x16xf32, #tpu.memory_space<vmem>>, %arg1: memref<16x256xf32, #tpu.memory_space<vmem>>, %arg2: memref<64x256xf32, #tpu.memory_space<vmem>>, %arg3: memref<64x256xf32, #tpu.memory_space<vmem>>, %arg4: memref<3x32x256xf32, #tpu.memory_space<vmem>>, %arg5: memref<3x1x256xf32, #tpu.memory_space<vmem>>, %arg6: memref<64x2xf32, #tpu.memory_space<vmem>>, %arg7: memref<1x2xf32, #tpu.memory_space<vmem>>, %arg8: memref<2x2xf32, #tpu.memory_space<vmem>>, %arg9: memref<16x64xf32, #tpu.memory_space<vmem>>, %arg10: memref<16x64xf32, #tpu.memory_space<vmem>>) attributes {dimension_semantics = [], scalar_prefetch = 0 : i64, scratch_operands = 2 : i64, tpu.core_type = #tpu.core_type<tc>} {
    %0 = tpu.iota {dimensions = array<i32: 0>} : vector<4x128xi32>
    %c2_i32 = arith.constant 2 : i32
    %1 = vector.broadcast %c2_i32 : i32 to vector<4x128xi32>
    %2 = arith.cmpi slt, %0, %1 : vector<4x128xi32>
    %c0 = arith.constant 0 : index
    %c0_0 = arith.constant 0 : index
    %3 = vector.load %arg0[%c0, %c0_0] : memref<16x16xf32, #tpu.memory_space<vmem>>, vector<16x16xf32>
    %c0_1 = arith.constant 0 : index
    %c0_2 = arith.constant 0 : index
    %4 = vector.load %arg1[%c0_1, %c0_2] : memref<16x256xf32, #tpu.memory_space<vmem>>, vector<16x256xf32>
    %cst = arith.constant dense<0.000000e+00> : vector<16x256xf32>
    %5 = tpu.matmul %3, %4, %cst {dimension_numbers = #tpu.dot_dimension_numbers<[1], [0], [0], [1], [0, 0, 1, 1], [], []>} : vector<16x16xf32>, vector<16x256xf32>, vector<16x256xf32> -> vector<16x256xf32>
    %c0_3 = arith.constant 0 : index
    %c0_4 = arith.constant 0 : index
    %c0_5 = arith.constant 0 : index
    %6 = vector.load %arg5[%c0_3, %c0_4, %c0_5] : memref<3x1x256xf32, #tpu.memory_space<vmem>>, vector<1x1x256xf32>
    %7 = vector.shape_cast %6 : vector<1x1x256xf32> to vector<1x256xf32>
    %8 = vector.broadcast %7 : vector<1x256xf32> to vector<16x256xf32>
    %9 = arith.addf %5, %8 : vector<16x256xf32>
    %10 = vector.extract_strided_slice %9 {offsets = [0, 0], sizes = [2, 128], strides = [1, 1]} : vector<16x256xf32> to vector<2x128xf32>
    %11 = vector.extract_strided_slice %9 {offsets = [14, 128], sizes = [2, 128], strides = [1, 1]} : vector<16x256xf32> to vector<2x128xf32>
    %12 = tpu.concatenate %10, %11 in 0 : vector<2x128xf32>, vector<2x128xf32> -> vector<4x128xf32>
    %13 = vector.extract_strided_slice %9 {offsets = [2, 0], sizes = [2, 128], strides = [1, 1]} : vector<16x256xf32> to vector<2x128xf32>
    %14 = vector.extract_strided_slice %9 {offsets = [12, 128], sizes = [2, 128], strides = [1, 1]} : vector<16x256xf32> to vector<2x128xf32>
    %15 = tpu.concatenate %13, %14 in 0 : vector<2x128xf32>, vector<2x128xf32> -> vector<4x128xf32>
    %16 = vector.extract_strided_slice %9 {offsets = [4, 0], sizes = [2, 128], strides = [1, 1]} : vector<16x256xf32> to vector<2x128xf32>
    %17 = vector.extract_strided_slice %9 {offsets = [10, 128], sizes = [2, 128], strides = [1, 1]} : vector<16x256xf32> to vector<2x128xf32>
    %18 = tpu.concatenate %16, %17 in 0 : vector<2x128xf32>, vector<2x128xf32> -> vector<4x128xf32>
    %19 = vector.extract_strided_slice %9 {offsets = [6, 0], sizes = [2, 128], strides = [1, 1]} : vector<16x256xf32> to vector<2x128xf32>
    %20 = vector.extract_strided_slice %9 {offsets = [8, 128], sizes = [2, 128], strides = [1, 1]} : vector<16x256xf32> to vector<2x128xf32>
    %21 = tpu.concatenate %19, %20 in 0 : vector<2x128xf32>, vector<2x128xf32> -> vector<4x128xf32>
    %22 = vector.extract_strided_slice %9 {offsets = [8, 0], sizes = [2, 128], strides = [1, 1]} : vector<16x256xf32> to vector<2x128xf32>
    %23 = vector.extract_strided_slice %9 {offsets = [6, 128], sizes = [2, 128], strides = [1, 1]} : vector<16x256xf32> to vector<2x128xf32>
    %24 = tpu.concatenate %22, %23 in 0 : vector<2x128xf32>, vector<2x128xf32> -> vector<4x128xf32>
    %25 = vector.extract_strided_slice %9 {offsets = [10, 0], sizes = [2, 128], strides = [1, 1]} : vector<16x256xf32> to vector<2x128xf32>
    %26 = vector.extract_strided_slice %9 {offsets = [4, 128], sizes = [2, 128], strides = [1, 1]} : vector<16x256xf32> to vector<2x128xf32>
    %27 = tpu.concatenate %25, %26 in 0 : vector<2x128xf32>, vector<2x128xf32> -> vector<4x128xf32>
    %28 = vector.extract_strided_slice %9 {offsets = [12, 0], sizes = [2, 128], strides = [1, 1]} : vector<16x256xf32> to vector<2x128xf32>
    %29 = vector.extract_strided_slice %9 {offsets = [2, 128], sizes = [2, 128], strides = [1, 1]} : vector<16x256xf32> to vector<2x128xf32>
    %30 = tpu.concatenate %28, %29 in 0 : vector<2x128xf32>, vector<2x128xf32> -> vector<4x128xf32>
    %31 = vector.extract_strided_slice %9 {offsets = [14, 0], sizes = [2, 128], strides = [1, 1]} : vector<16x256xf32> to vector<2x128xf32>
    %32 = vector.extract_strided_slice %9 {offsets = [0, 128], sizes = [2, 128], strides = [1, 1]} : vector<16x256xf32> to vector<2x128xf32>
    %33 = tpu.concatenate %31, %32 in 0 : vector<2x128xf32>, vector<2x128xf32> -> vector<4x128xf32>
    %c0_6 = arith.constant 0 : index
    %c0_7 = arith.constant 0 : index
    %c0_8 = arith.constant 0 : index
    %34 = vector.load %arg4[%c0_6, %c0_7, %c0_8] : memref<3x32x256xf32, #tpu.memory_space<vmem>>, vector<1x32x256xf32>
    %35 = vector.shape_cast %34 : vector<1x32x256xf32> to vector<32x256xf32>
    %36 = arith.negf %12 : vector<4x128xf32>
    %37 = math.exp %36 : vector<4x128xf32>
    %cst_9 = arith.constant 1.000000e+00 : f32
    %38 = vector.broadcast %cst_9 : f32 to vector<4x128xf32>
    %39 = arith.addf %38, %37 : vector<4x128xf32>
    %40 = arith.divf %38, %39 : vector<4x128xf32>
    %41 = math.tanh %12 : vector<4x128xf32>
    %42 = vector.extract_strided_slice %40 {offsets = [0, 32], sizes = [4, 32], strides = [1, 1]} : vector<4x128xf32> to vector<4x32xf32>
    %43 = vector.extract_strided_slice %41 {offsets = [0, 64], sizes = [4, 32], strides = [1, 1]} : vector<4x128xf32> to vector<4x32xf32>
    %44 = arith.mulf %42, %43 : vector<4x32xf32>
    %45 = vector.extract_strided_slice %40 {offsets = [0, 96], sizes = [4, 32], strides = [1, 1]} : vector<4x128xf32> to vector<4x32xf32>
    %46 = math.tanh %44 : vector<4x32xf32>
    %47 = arith.mulf %45, %46 : vector<4x32xf32>
    %48 = vector.extract_strided_slice %47 {offsets = [0, 0], sizes = [2, 32], strides = [1, 1]} : vector<4x32xf32> to vector<2x32xf32>
    %c0_10 = arith.constant 0 : index
    %c0_11 = arith.constant 0 : index
    %49 = vector.load %arg9[%c0_10, %c0_11] : memref<16x64xf32, #tpu.memory_space<vmem>>, vector<2x32xf32>
    tpu.vector_store %arg9[%c0_10, %c0_11], %48 {strides = array<i32>} : memref<16x64xf32, #tpu.memory_space<vmem>>, vector<2x32xf32>,
    %50 = vector.extract_strided_slice %47 {offsets = [2, 0], sizes = [2, 32], strides = [1, 1]} : vector<4x32xf32> to vector<2x32xf32>
    %c14 = arith.constant 14 : index
    %c32 = arith.constant 32 : index
    %51 = vector.load %arg9[%c14, %c32] : memref<16x64xf32, #tpu.memory_space<vmem>>, vector<2x32xf32>
    tpu.vector_store %arg9[%c14, %c32], %50 {strides = array<i32>} : memref<16x64xf32, #tpu.memory_space<vmem>>, vector<2x32xf32>,
    %cst_12 = arith.constant dense<0.000000e+00> : vector<4x256xf32>
    %52 = tpu.matmul %47, %35, %cst_12 {dimension_numbers = #tpu.dot_dimension_numbers<[1], [0], [0], [1], [0, 0, 1, 1], [], []>} : vector<4x32xf32>, vector<32x256xf32>, vector<4x256xf32> -> vector<4x256xf32>
    %53 = vector.extract_strided_slice %52 {offsets = [0, 0], sizes = [4, 128], strides = [1, 1]} : vector<4x256xf32> to vector<4x128xf32>
    %54 = vector.extract_strided_slice %52 {offsets = [0, 128], sizes = [4, 128], strides = [1, 1]} : vector<4x256xf32> to vector<4x128xf32>
    %55 = arith.select %2, %53, %54 : vector<4x128xi1>, vector<4x128xf32>
    %56 = arith.addf %15, %55 : vector<4x128xf32>
    %57 = arith.negf %56 : vector<4x128xf32>
    %58 = math.exp %57 : vector<4x128xf32>
    %cst_13 = arith.constant 1.000000e+00 : f32
    %59 = vector.broadcast %cst_13 : f32 to vector<4x128xf32>
    %60 = arith.addf %59, %58 : vector<4x128xf32>
    %61 = arith.divf %59, %60 : vector<4x128xf32>
    %62 = math.tanh %56 : vector<4x128xf32>
    %63 = vector.extract_strided_slice %61 {offsets = [0, 0], sizes = [4, 32], strides = [1, 1]} : vector<4x128xf32> to vector<4x32xf32>
    %64 = arith.mulf %63, %44 : vector<4x32xf32>
    %65 = vector.extract_strided_slice %61 {offsets = [0, 32], sizes = [4, 32], strides = [1, 1]} : vector<4x128xf32> to vector<4x32xf32>
    %66 = vector.extract_strided_slice %62 {offsets = [0, 64], sizes = [4, 32], strides = [1, 1]} : vector<4x128xf32> to vector<4x32xf32>
    %67 = arith.mulf %65, %66 : vector<4x32xf32>
    %68 = arith.addf %64, %67 : vector<4x32xf32>
    %69 = vector.extract_strided_slice %61 {offsets = [0, 96], sizes = [4, 32], strides = [1, 1]} : vector<4x128xf32> to vector<4x32xf32>
    %70 = math.tanh %68 : vector<4x32xf32>
    %71 = arith.mulf %69, %70 : vector<4x32xf32>
    %72 = vector.extract_strided_slice %71 {offsets = [0, 0], sizes = [2, 32], strides = [1, 1]} : vector<4x32xf32> to vector<2x32xf32>
    %c2 = arith.constant 2 : index
    %c0_14 = arith.constant 0 : index
    %73 = vector.load %arg9[%c2, %c0_14] : memref<16x64xf32, #tpu.memory_space<vmem>>, vector<2x32xf32>
    tpu.vector_store %arg9[%c2, %c0_14], %72 {strides = array<i32>} : memref<16x64xf32, #tpu.memory_space<vmem>>, vector<2x32xf32>,
    %74 = vector.extract_strided_slice %71 {offsets = [2, 0], sizes = [2, 32], strides = [1, 1]} : vector<4x32xf32> to vector<2x32xf32>
    %c12 = arith.constant 12 : index
    %c32_15 = arith.constant 32 : index
    %75 = vector.load %arg9[%c12, %c32_15] : memref<16x64xf32, #tpu.memory_space<vmem>>, vector<2x32xf32>
    tpu.vector_store %arg9[%c12, %c32_15], %74 {strides = array<i32>} : memref<16x64xf32, #tpu.memory_space<vmem>>, vector<2x32xf32>,
    %cst_16 = arith.constant dense<0.000000e+00> : vector<4x256xf32>
    %76 = tpu.matmul %71, %35, %cst_16 {dimension_numbers = #tpu.dot_dimension_numbers<[1], [0], [0], [1], [0, 0, 1, 1], [], []>} : vector<4x32xf32>, vector<32x256xf32>, vector<4x256xf32> -> vector<4x256xf32>
    %77 = vector.extract_strided_slice %76 {offsets = [0, 0], sizes = [4, 128], strides = [1, 1]} : vector<4x256xf32> to vector<4x128xf32>
    %78 = vector.extract_strided_slice %76 {offsets = [0, 128], sizes = [4, 128], strides = [1, 1]} : vector<4x256xf32> to vector<4x128xf32>
    %79 = arith.select %2, %77, %78 : vector<4x128xi1>, vector<4x128xf32>
    %80 = arith.addf %18, %79 : vector<4x128xf32>
    %81 = arith.negf %80 : vector<4x128xf32>
    %82 = math.exp %81 : vector<4x128xf32>
    %cst_17 = arith.constant 1.000000e+00 : f32
    %83 = vector.broadcast %cst_17 : f32 to vector<4x128xf32>
    %84 = arith.addf %83, %82 : vector<4x128xf32>
    %85 = arith.divf %83, %84 : vector<4x128xf32>
    %86 = math.tanh %80 : vector<4x128xf32>
    %87 = vector.extract_strided_slice %85 {offsets = [0, 0], sizes = [4, 32], strides = [1, 1]} : vector<4x128xf32> to vector<4x32xf32>
    %88 = arith.mulf %87, %68 : vector<4x32xf32>
    %89 = vector.extract_strided_slice %85 {offsets = [0, 32], sizes = [4, 32], strides = [1, 1]} : vector<4x128xf32> to vector<4x32xf32>
    %90 = vector.extract_strided_slice %86 {offsets = [0, 64], sizes = [4, 32], strides = [1, 1]} : vector<4x128xf32> to vector<4x32xf32>
    %91 = arith.mulf %89, %90 : vector<4x32xf32>
    %92 = arith.addf %88, %91 : vector<4x32xf32>
    %93 = vector.extract_strided_slice %85 {offsets = [0, 96], sizes = [4, 32], strides = [1, 1]} : vector<4x128xf32> to vector<4x32xf32>
    %94 = math.tanh %92 : vector<4x32xf32>
    %95 = arith.mulf %93, %94 : vector<4x32xf32>
    %96 = vector.extract_strided_slice %95 {offsets = [0, 0], sizes = [2, 32], strides = [1, 1]} : vector<4x32xf32> to vector<2x32xf32>
    %c4 = arith.constant 4 : index
    %c0_18 = arith.constant 0 : index
    %97 = vector.load %arg9[%c4, %c0_18] : memref<16x64xf32, #tpu.memory_space<vmem>>, vector<2x32xf32>
    tpu.vector_store %arg9[%c4, %c0_18], %96 {strides = array<i32>} : memref<16x64xf32, #tpu.memory_space<vmem>>, vector<2x32xf32>,
    %98 = vector.extract_strided_slice %95 {offsets = [2, 0], sizes = [2, 32], strides = [1, 1]} : vector<4x32xf32> to vector<2x32xf32>
    %c10 = arith.constant 10 : index
    %c32_19 = arith.constant 32 : index
    %99 = vector.load %arg9[%c10, %c32_19] : memref<16x64xf32, #tpu.memory_space<vmem>>, vector<2x32xf32>
    tpu.vector_store %arg9[%c10, %c32_19], %98 {strides = array<i32>} : memref<16x64xf32, #tpu.memory_space<vmem>>, vector<2x32xf32>,
    %cst_20 = arith.constant dense<0.000000e+00> : vector<4x256xf32>
    %100 = tpu.matmul %95, %35, %cst_20 {dimension_numbers = #tpu.dot_dimension_numbers<[1], [0], [0], [1], [0, 0, 1, 1], [], []>} : vector<4x32xf32>, vector<32x256xf32>, vector<4x256xf32> -> vector<4x256xf32>
    %101 = vector.extract_strided_slice %100 {offsets = [0, 0], sizes = [4, 128], strides = [1, 1]} : vector<4x256xf32> to vector<4x128xf32>
    %102 = vector.extract_strided_slice %100 {offsets = [0, 128], sizes = [4, 128], strides = [1, 1]} : vector<4x256xf32> to vector<4x128xf32>
    %103 = arith.select %2, %101, %102 : vector<4x128xi1>, vector<4x128xf32>
    %104 = arith.addf %21, %103 : vector<4x128xf32>
    %105 = arith.negf %104 : vector<4x128xf32>
    %106 = math.exp %105 : vector<4x128xf32>
    %cst_21 = arith.constant 1.000000e+00 : f32
    %107 = vector.broadcast %cst_21 : f32 to vector<4x128xf32>
    %108 = arith.addf %107, %106 : vector<4x128xf32>
    %109 = arith.divf %107, %108 : vector<4x128xf32>
    %110 = math.tanh %104 : vector<4x128xf32>
    %111 = vector.extract_strided_slice %109 {offsets = [0, 0], sizes = [4, 32], strides = [1, 1]} : vector<4x128xf32> to vector<4x32xf32>
    %112 = arith.mulf %111, %92 : vector<4x32xf32>
    %113 = vector.extract_strided_slice %109 {offsets = [0, 32], sizes = [4, 32], strides = [1, 1]} : vector<4x128xf32> to vector<4x32xf32>
    %114 = vector.extract_strided_slice %110 {offsets = [0, 64], sizes = [4, 32], strides = [1, 1]} : vector<4x128xf32> to vector<4x32xf32>
    %115 = arith.mulf %113, %114 : vector<4x32xf32>
    %116 = arith.addf %112, %115 : vector<4x32xf32>
    %117 = vector.extract_strided_slice %109 {offsets = [0, 96], sizes = [4, 32], strides = [1, 1]} : vector<4x128xf32> to vector<4x32xf32>
    %118 = math.tanh %116 : vector<4x32xf32>
    %119 = arith.mulf %117, %118 : vector<4x32xf32>
    %120 = vector.extract_strided_slice %119 {offsets = [0, 0], sizes = [2, 32], strides = [1, 1]} : vector<4x32xf32> to vector<2x32xf32>
    %c6 = arith.constant 6 : index
    %c0_22 = arith.constant 0 : index
    %121 = vector.load %arg9[%c6, %c0_22] : memref<16x64xf32, #tpu.memory_space<vmem>>, vector<2x32xf32>
    tpu.vector_store %arg9[%c6, %c0_22], %120 {strides = array<i32>} : memref<16x64xf32, #tpu.memory_space<vmem>>, vector<2x32xf32>,
    %122 = vector.extract_strided_slice %119 {offsets = [2, 0], sizes = [2, 32], strides = [1, 1]} : vector<4x32xf32> to vector<2x32xf32>
    %c8 = arith.constant 8 : index
    %c32_23 = arith.constant 32 : index
    %123 = vector.load %arg9[%c8, %c32_23] : memref<16x64xf32, #tpu.memory_space<vmem>>, vector<2x32xf32>
    tpu.vector_store %arg9[%c8, %c32_23], %122 {strides = array<i32>} : memref<16x64xf32, #tpu.memory_space<vmem>>, vector<2x32xf32>,
    %cst_24 = arith.constant dense<0.000000e+00> : vector<4x256xf32>
    %124 = tpu.matmul %119, %35, %cst_24 {dimension_numbers = #tpu.dot_dimension_numbers<[1], [0], [0], [1], [0, 0, 1, 1], [], []>} : vector<4x32xf32>, vector<32x256xf32>, vector<4x256xf32> -> vector<4x256xf32>
    %125 = vector.extract_strided_slice %124 {offsets = [0, 0], sizes = [4, 128], strides = [1, 1]} : vector<4x256xf32> to vector<4x128xf32>
    %126 = vector.extract_strided_slice %124 {offsets = [0, 128], sizes = [4, 128], strides = [1, 1]} : vector<4x256xf32> to vector<4x128xf32>
    %127 = arith.select %2, %125, %126 : vector<4x128xi1>, vector<4x128xf32>
    %128 = arith.addf %24, %127 : vector<4x128xf32>
    %129 = arith.negf %128 : vector<4x128xf32>
    %130 = math.exp %129 : vector<4x128xf32>
    %cst_25 = arith.constant 1.000000e+00 : f32
    %131 = vector.broadcast %cst_25 : f32 to vector<4x128xf32>
    %132 = arith.addf %131, %130 : vector<4x128xf32>
    %133 = arith.divf %131, %132 : vector<4x128xf32>
    %134 = math.tanh %128 : vector<4x128xf32>
    %135 = vector.extract_strided_slice %133 {offsets = [0, 0], sizes = [4, 32], strides = [1, 1]} : vector<4x128xf32> to vector<4x32xf32>
    %136 = arith.mulf %135, %116 : vector<4x32xf32>
    %137 = vector.extract_strided_slice %133 {offsets = [0, 32], sizes = [4, 32], strides = [1, 1]} : vector<4x128xf32> to vector<4x32xf32>
    %138 = vector.extract_strided_slice %134 {offsets = [0, 64], sizes = [4, 32], strides = [1, 1]} : vector<4x128xf32> to vector<4x32xf32>
    %139 = arith.mulf %137, %138 : vector<4x32xf32>
    %140 = arith.addf %136, %139 : vector<4x32xf32>
    %141 = vector.extract_strided_slice %133 {offsets = [0, 96], sizes = [4, 32], strides = [1, 1]} : vector<4x128xf32> to vector<4x32xf32>
    %142 = math.tanh %140 : vector<4x32xf32>
    %143 = arith.mulf %141, %142 : vector<4x32xf32>
    %144 = vector.extract_strided_slice %143 {offsets = [0, 0], sizes = [2, 32], strides = [1, 1]} : vector<4x32xf32> to vector<2x32xf32>
    %c8_26 = arith.constant 8 : index
    %c0_27 = arith.constant 0 : index
    %145 = vector.load %arg9[%c8_26, %c0_27] : memref<16x64xf32, #tpu.memory_space<vmem>>, vector<2x32xf32>
    tpu.vector_store %arg9[%c8_26, %c0_27], %144 {strides = array<i32>} : memref<16x64xf32, #tpu.memory_space<vmem>>, vector<2x32xf32>,
    %146 = vector.extract_strided_slice %143 {offsets = [2, 0], sizes = [2, 32], strides = [1, 1]} : vector<4x32xf32> to vector<2x32xf32>
    %c6_28 = arith.constant 6 : index
    %c32_29 = arith.constant 32 : index
    %147 = vector.load %arg9[%c6_28, %c32_29] : memref<16x64xf32, #tpu.memory_space<vmem>>, vector<2x32xf32>
    tpu.vector_store %arg9[%c6_28, %c32_29], %146 {strides = array<i32>} : memref<16x64xf32, #tpu.memory_space<vmem>>, vector<2x32xf32>,
    %cst_30 = arith.constant dense<0.000000e+00> : vector<4x256xf32>
    %148 = tpu.matmul %143, %35, %cst_30 {dimension_numbers = #tpu.dot_dimension_numbers<[1], [0], [0], [1], [0, 0, 1, 1], [], []>} : vector<4x32xf32>, vector<32x256xf32>, vector<4x256xf32> -> vector<4x256xf32>
    %149 = vector.extract_strided_slice %148 {offsets = [0, 0], sizes = [4, 128], strides = [1, 1]} : vector<4x256xf32> to vector<4x128xf32>
    %150 = vector.extract_strided_slice %148 {offsets = [0, 128], sizes = [4, 128], strides = [1, 1]} : vector<4x256xf32> to vector<4x128xf32>
    %151 = arith.select %2, %149, %150 : vector<4x128xi1>, vector<4x128xf32>
    %152 = arith.addf %27, %151 : vector<4x128xf32>
    %153 = arith.negf %152 : vector<4x128xf32>
    %154 = math.exp %153 : vector<4x128xf32>
    %cst_31 = arith.constant 1.000000e+00 : f32
    %155 = vector.broadcast %cst_31 : f32 to vector<4x128xf32>
    %156 = arith.addf %155, %154 : vector<4x128xf32>
    %157 = arith.divf %155, %156 : vector<4x128xf32>
    %158 = math.tanh %152 : vector<4x128xf32>
    %159 = vector.extract_strided_slice %157 {offsets = [0, 0], sizes = [4, 32], strides = [1, 1]} : vector<4x128xf32> to vector<4x32xf32>
    %160 = arith.mulf %159, %140 : vector<4x32xf32>
    %161 = vector.extract_strided_slice %157 {offsets = [0, 32], sizes = [4, 32], strides = [1, 1]} : vector<4x128xf32> to vector<4x32xf32>
    %162 = vector.extract_strided_slice %158 {offsets = [0, 64], sizes = [4, 32], strides = [1, 1]} : vector<4x128xf32> to vector<4x32xf32>
    %163 = arith.mulf %161, %162 : vector<4x32xf32>
    %164 = arith.addf %160, %163 : vector<4x32xf32>
    %165 = vector.extract_strided_slice %157 {offsets = [0, 96], sizes = [4, 32], strides = [1, 1]} : vector<4x128xf32> to vector<4x32xf32>
    %166 = math.tanh %164 : vector<4x32xf32>
    %167 = arith.mulf %165, %166 : vector<4x32xf32>
    %168 = vector.extract_strided_slice %167 {offsets = [0, 0], sizes = [2, 32], strides = [1, 1]} : vector<4x32xf32> to vector<2x32xf32>
    %c10_32 = arith.constant 10 : index
    %c0_33 = arith.constant 0 : index
    %169 = vector.load %arg9[%c10_32, %c0_33] : memref<16x64xf32, #tpu.memory_space<vmem>>, vector<2x32xf32>
    tpu.vector_store %arg9[%c10_32, %c0_33], %168 {strides = array<i32>} : memref<16x64xf32, #tpu.memory_space<vmem>>, vector<2x32xf32>,
    %170 = vector.extract_strided_slice %167 {offsets = [2, 0], sizes = [2, 32], strides = [1, 1]} : vector<4x32xf32> to vector<2x32xf32>
    %c4_34 = arith.constant 4 : index
    %c32_35 = arith.constant 32 : index
    %171 = vector.load %arg9[%c4_34, %c32_35] : memref<16x64xf32, #tpu.memory_space<vmem>>, vector<2x32xf32>
    tpu.vector_store %arg9[%c4_34, %c32_35], %170 {strides = array<i32>} : memref<16x64xf32, #tpu.memory_space<vmem>>, vector<2x32xf32>,
    %cst_36 = arith.constant dense<0.000000e+00> : vector<4x256xf32>
    %172 = tpu.matmul %167, %35, %cst_36 {dimension_numbers = #tpu.dot_dimension_numbers<[1], [0], [0], [1], [0, 0, 1, 1], [], []>} : vector<4x32xf32>, vector<32x256xf32>, vector<4x256xf32> -> vector<4x256xf32>
    %173 = vector.extract_strided_slice %172 {offsets = [0, 0], sizes = [4, 128], strides = [1, 1]} : vector<4x256xf32> to vector<4x128xf32>
    %174 = vector.extract_strided_slice %172 {offsets = [0, 128], sizes = [4, 128], strides = [1, 1]} : vector<4x256xf32> to vector<4x128xf32>
    %175 = arith.select %2, %173, %174 : vector<4x128xi1>, vector<4x128xf32>
    %176 = arith.addf %30, %175 : vector<4x128xf32>
    %177 = arith.negf %176 : vector<4x128xf32>
    %178 = math.exp %177 : vector<4x128xf32>
    %cst_37 = arith.constant 1.000000e+00 : f32
    %179 = vector.broadcast %cst_37 : f32 to vector<4x128xf32>
    %180 = arith.addf %179, %178 : vector<4x128xf32>
    %181 = arith.divf %179, %180 : vector<4x128xf32>
    %182 = math.tanh %176 : vector<4x128xf32>
    %183 = vector.extract_strided_slice %181 {offsets = [0, 0], sizes = [4, 32], strides = [1, 1]} : vector<4x128xf32> to vector<4x32xf32>
    %184 = arith.mulf %183, %164 : vector<4x32xf32>
    %185 = vector.extract_strided_slice %181 {offsets = [0, 32], sizes = [4, 32], strides = [1, 1]} : vector<4x128xf32> to vector<4x32xf32>
    %186 = vector.extract_strided_slice %182 {offsets = [0, 64], sizes = [4, 32], strides = [1, 1]} : vector<4x128xf32> to vector<4x32xf32>
    %187 = arith.mulf %185, %186 : vector<4x32xf32>
    %188 = arith.addf %184, %187 : vector<4x32xf32>
    %189 = vector.extract_strided_slice %181 {offsets = [0, 96], sizes = [4, 32], strides = [1, 1]} : vector<4x128xf32> to vector<4x32xf32>
    %190 = math.tanh %188 : vector<4x32xf32>
    %191 = arith.mulf %189, %190 : vector<4x32xf32>
    %192 = vector.extract_strided_slice %191 {offsets = [0, 0], sizes = [2, 32], strides = [1, 1]} : vector<4x32xf32> to vector<2x32xf32>
    %c12_38 = arith.constant 12 : index
    %c0_39 = arith.constant 0 : index
    %193 = vector.load %arg9[%c12_38, %c0_39] : memref<16x64xf32, #tpu.memory_space<vmem>>, vector<2x32xf32>
    tpu.vector_store %arg9[%c12_38, %c0_39], %192 {strides = array<i32>} : memref<16x64xf32, #tpu.memory_space<vmem>>, vector<2x32xf32>,
    %194 = vector.extract_strided_slice %191 {offsets = [2, 0], sizes = [2, 32], strides = [1, 1]} : vector<4x32xf32> to vector<2x32xf32>
    %c2_40 = arith.constant 2 : index
    %c32_41 = arith.constant 32 : index
    %195 = vector.load %arg9[%c2_40, %c32_41] : memref<16x64xf32, #tpu.memory_space<vmem>>, vector<2x32xf32>
    tpu.vector_store %arg9[%c2_40, %c32_41], %194 {strides = array<i32>} : memref<16x64xf32, #tpu.memory_space<vmem>>, vector<2x32xf32>,
    %cst_42 = arith.constant dense<0.000000e+00> : vector<4x256xf32>
    %196 = tpu.matmul %191, %35, %cst_42 {dimension_numbers = #tpu.dot_dimension_numbers<[1], [0], [0], [1], [0, 0, 1, 1], [], []>} : vector<4x32xf32>, vector<32x256xf32>, vector<4x256xf32> -> vector<4x256xf32>
    %197 = vector.extract_strided_slice %196 {offsets = [0, 0], sizes = [4, 128], strides = [1, 1]} : vector<4x256xf32> to vector<4x128xf32>
    %198 = vector.extract_strided_slice %196 {offsets = [0, 128], sizes = [4, 128], strides = [1, 1]} : vector<4x256xf32> to vector<4x128xf32>
    %199 = arith.select %2, %197, %198 : vector<4x128xi1>, vector<4x128xf32>
    %200 = arith.addf %33, %199 : vector<4x128xf32>
    %201 = arith.negf %200 : vector<4x128xf32>
    %202 = math.exp %201 : vector<4x128xf32>
    %cst_43 = arith.constant 1.000000e+00 : f32
    %203 = vector.broadcast %cst_43 : f32 to vector<4x128xf32>
    %204 = arith.addf %203, %202 : vector<4x128xf32>
    %205 = arith.divf %203, %204 : vector<4x128xf32>
    %206 = math.tanh %200 : vector<4x128xf32>
    %207 = vector.extract_strided_slice %205 {offsets = [0, 0], sizes = [4, 32], strides = [1, 1]} : vector<4x128xf32> to vector<4x32xf32>
    %208 = arith.mulf %207, %188 : vector<4x32xf32>
    %209 = vector.extract_strided_slice %205 {offsets = [0, 32], sizes = [4, 32], strides = [1, 1]} : vector<4x128xf32> to vector<4x32xf32>
    %210 = vector.extract_strided_slice %206 {offsets = [0, 64], sizes = [4, 32], strides = [1, 1]} : vector<4x128xf32> to vector<4x32xf32>
    %211 = arith.mulf %209, %210 : vector<4x32xf32>
    %212 = arith.addf %208, %211 : vector<4x32xf32>
    %213 = vector.extract_strided_slice %205 {offsets = [0, 96], sizes = [4, 32], strides = [1, 1]} : vector<4x128xf32> to vector<4x32xf32>
    %214 = math.tanh %212 : vector<4x32xf32>
    %215 = arith.mulf %213, %214 : vector<4x32xf32>
    %216 = vector.extract_strided_slice %215 {offsets = [0, 0], sizes = [2, 32], strides = [1, 1]} : vector<4x32xf32> to vector<2x32xf32>
    %c14_44 = arith.constant 14 : index
    %c0_45 = arith.constant 0 : index
    %217 = vector.load %arg9[%c14_44, %c0_45] : memref<16x64xf32, #tpu.memory_space<vmem>>, vector<2x32xf32>
    tpu.vector_store %arg9[%c14_44, %c0_45], %216 {strides = array<i32>} : memref<16x64xf32, #tpu.memory_space<vmem>>, vector<2x32xf32>,
    %218 = vector.extract_strided_slice %215 {offsets = [2, 0], sizes = [2, 32], strides = [1, 1]} : vector<4x32xf32> to vector<2x32xf32>
    %c0_46 = arith.constant 0 : index
    %c32_47 = arith.constant 32 : index
    %219 = vector.load %arg9[%c0_46, %c32_47] : memref<16x64xf32, #tpu.memory_space<vmem>>, vector<2x32xf32>
    tpu.vector_store %arg9[%c0_46, %c32_47], %218 {strides = array<i32>} : memref<16x64xf32, #tpu.memory_space<vmem>>, vector<2x32xf32>,
    %c0_48 = arith.constant 0 : index
    %c0_49 = arith.constant 0 : index
    %220 = vector.load %arg9[%c0_48, %c0_49] : memref<16x64xf32, #tpu.memory_space<vmem>>, vector<16x64xf32>
    %c0_50 = arith.constant 0 : index
    %c0_51 = arith.constant 0 : index
    %221 = vector.load %arg2[%c0_50, %c0_51] : memref<64x256xf32, #tpu.memory_space<vmem>>, vector<64x256xf32>
    %cst_52 = arith.constant dense<0.000000e+00> : vector<16x256xf32>
    %222 = tpu.matmul %220, %221, %cst_52 {dimension_numbers = #tpu.dot_dimension_numbers<[1], [0], [0], [1], [0, 0, 1, 1], [], []>} : vector<16x64xf32>, vector<64x256xf32>, vector<16x256xf32> -> vector<16x256xf32>
    %c1 = arith.constant 1 : index
    %c0_53 = arith.constant 0 : index
    %c0_54 = arith.constant 0 : index
    %223 = vector.load %arg5[%c1, %c0_53, %c0_54] : memref<3x1x256xf32, #tpu.memory_space<vmem>>, vector<1x1x256xf32>
    %224 = vector.shape_cast %223 : vector<1x1x256xf32> to vector<1x256xf32>
    %225 = vector.broadcast %224 : vector<1x256xf32> to vector<16x256xf32>
    %226 = arith.addf %222, %225 : vector<16x256xf32>
    %227 = vector.extract_strided_slice %226 {offsets = [0, 0], sizes = [2, 128], strides = [1, 1]} : vector<16x256xf32> to vector<2x128xf32>
    %228 = vector.extract_strided_slice %226 {offsets = [14, 128], sizes = [2, 128], strides = [1, 1]} : vector<16x256xf32> to vector<2x128xf32>
    %229 = tpu.concatenate %227, %228 in 0 : vector<2x128xf32>, vector<2x128xf32> -> vector<4x128xf32>
    %230 = vector.extract_strided_slice %226 {offsets = [2, 0], sizes = [2, 128], strides = [1, 1]} : vector<16x256xf32> to vector<2x128xf32>
    %231 = vector.extract_strided_slice %226 {offsets = [12, 128], sizes = [2, 128], strides = [1, 1]} : vector<16x256xf32> to vector<2x128xf32>
    %232 = tpu.concatenate %230, %231 in 0 : vector<2x128xf32>, vector<2x128xf32> -> vector<4x128xf32>
    %233 = vector.extract_strided_slice %226 {offsets = [4, 0], sizes = [2, 128], strides = [1, 1]} : vector<16x256xf32> to vector<2x128xf32>
    %234 = vector.extract_strided_slice %226 {offsets = [10, 128], sizes = [2, 128], strides = [1, 1]} : vector<16x256xf32> to vector<2x128xf32>
    %235 = tpu.concatenate %233, %234 in 0 : vector<2x128xf32>, vector<2x128xf32> -> vector<4x128xf32>
    %236 = vector.extract_strided_slice %226 {offsets = [6, 0], sizes = [2, 128], strides = [1, 1]} : vector<16x256xf32> to vector<2x128xf32>
    %237 = vector.extract_strided_slice %226 {offsets = [8, 128], sizes = [2, 128], strides = [1, 1]} : vector<16x256xf32> to vector<2x128xf32>
    %238 = tpu.concatenate %236, %237 in 0 : vector<2x128xf32>, vector<2x128xf32> -> vector<4x128xf32>
    %239 = vector.extract_strided_slice %226 {offsets = [8, 0], sizes = [2, 128], strides = [1, 1]} : vector<16x256xf32> to vector<2x128xf32>
    %240 = vector.extract_strided_slice %226 {offsets = [6, 128], sizes = [2, 128], strides = [1, 1]} : vector<16x256xf32> to vector<2x128xf32>
    %241 = tpu.concatenate %239, %240 in 0 : vector<2x128xf32>, vector<2x128xf32> -> vector<4x128xf32>
    %242 = vector.extract_strided_slice %226 {offsets = [10, 0], sizes = [2, 128], strides = [1, 1]} : vector<16x256xf32> to vector<2x128xf32>
    %243 = vector.extract_strided_slice %226 {offsets = [4, 128], sizes = [2, 128], strides = [1, 1]} : vector<16x256xf32> to vector<2x128xf32>
    %244 = tpu.concatenate %242, %243 in 0 : vector<2x128xf32>, vector<2x128xf32> -> vector<4x128xf32>
    %245 = vector.extract_strided_slice %226 {offsets = [12, 0], sizes = [2, 128], strides = [1, 1]} : vector<16x256xf32> to vector<2x128xf32>
    %246 = vector.extract_strided_slice %226 {offsets = [2, 128], sizes = [2, 128], strides = [1, 1]} : vector<16x256xf32> to vector<2x128xf32>
    %247 = tpu.concatenate %245, %246 in 0 : vector<2x128xf32>, vector<2x128xf32> -> vector<4x128xf32>
    %248 = vector.extract_strided_slice %226 {offsets = [14, 0], sizes = [2, 128], strides = [1, 1]} : vector<16x256xf32> to vector<2x128xf32>
    %249 = vector.extract_strided_slice %226 {offsets = [0, 128], sizes = [2, 128], strides = [1, 1]} : vector<16x256xf32> to vector<2x128xf32>
    %250 = tpu.concatenate %248, %249 in 0 : vector<2x128xf32>, vector<2x128xf32> -> vector<4x128xf32>
    %c1_55 = arith.constant 1 : index
    %c0_56 = arith.constant 0 : index
    %c0_57 = arith.constant 0 : index
    %251 = vector.load %arg4[%c1_55, %c0_56, %c0_57] : memref<3x32x256xf32, #tpu.memory_space<vmem>>, vector<1x32x256xf32>
    %252 = vector.shape_cast %251 : vector<1x32x256xf32> to vector<32x256xf32>
    %253 = arith.negf %229 : vector<4x128xf32>
    %254 = math.exp %253 : vector<4x128xf32>
    %cst_58 = arith.constant 1.000000e+00 : f32
    %255 = vector.broadcast %cst_58 : f32 to vector<4x128xf32>
    %256 = arith.addf %255, %254 : vector<4x128xf32>
    %257 = arith.divf %255, %256 : vector<4x128xf32>
    %258 = math.tanh %229 : vector<4x128xf32>
    %259 = vector.extract_strided_slice %257 {offsets = [0, 32], sizes = [4, 32], strides = [1, 1]} : vector<4x128xf32> to vector<4x32xf32>
    %260 = vector.extract_strided_slice %258 {offsets = [0, 64], sizes = [4, 32], strides = [1, 1]} : vector<4x128xf32> to vector<4x32xf32>
    %261 = arith.mulf %259, %260 : vector<4x32xf32>
    %262 = vector.extract_strided_slice %257 {offsets = [0, 96], sizes = [4, 32], strides = [1, 1]} : vector<4x128xf32> to vector<4x32xf32>
    %263 = math.tanh %261 : vector<4x32xf32>
    %264 = arith.mulf %262, %263 : vector<4x32xf32>
    %265 = vector.extract_strided_slice %264 {offsets = [0, 0], sizes = [2, 32], strides = [1, 1]} : vector<4x32xf32> to vector<2x32xf32>
    %c0_59 = arith.constant 0 : index
    %c0_60 = arith.constant 0 : index
    %266 = vector.load %arg10[%c0_59, %c0_60] : memref<16x64xf32, #tpu.memory_space<vmem>>, vector<2x32xf32>
    tpu.vector_store %arg10[%c0_59, %c0_60], %265 {strides = array<i32>} : memref<16x64xf32, #tpu.memory_space<vmem>>, vector<2x32xf32>,
    %267 = vector.extract_strided_slice %264 {offsets = [2, 0], sizes = [2, 32], strides = [1, 1]} : vector<4x32xf32> to vector<2x32xf32>
    %c14_61 = arith.constant 14 : index
    %c32_62 = arith.constant 32 : index
    %268 = vector.load %arg10[%c14_61, %c32_62] : memref<16x64xf32, #tpu.memory_space<vmem>>, vector<2x32xf32>
    tpu.vector_store %arg10[%c14_61, %c32_62], %267 {strides = array<i32>} : memref<16x64xf32, #tpu.memory_space<vmem>>, vector<2x32xf32>,
    %cst_63 = arith.constant dense<0.000000e+00> : vector<4x256xf32>
    %269 = tpu.matmul %264, %252, %cst_63 {dimension_numbers = #tpu.dot_dimension_numbers<[1], [0], [0], [1], [0, 0, 1, 1], [], []>} : vector<4x32xf32>, vector<32x256xf32>, vector<4x256xf32> -> vector<4x256xf32>
    %270 = vector.extract_strided_slice %269 {offsets = [0, 0], sizes = [4, 128], strides = [1, 1]} : vector<4x256xf32> to vector<4x128xf32>
    %271 = vector.extract_strided_slice %269 {offsets = [0, 128], sizes = [4, 128], strides = [1, 1]} : vector<4x256xf32> to vector<4x128xf32>
    %272 = arith.select %2, %270, %271 : vector<4x128xi1>, vector<4x128xf32>
    %273 = arith.addf %232, %272 : vector<4x128xf32>
    %274 = arith.negf %273 : vector<4x128xf32>
    %275 = math.exp %274 : vector<4x128xf32>
    %cst_64 = arith.constant 1.000000e+00 : f32
    %276 = vector.broadcast %cst_64 : f32 to vector<4x128xf32>
    %277 = arith.addf %276, %275 : vector<4x128xf32>
    %278 = arith.divf %276, %277 : vector<4x128xf32>
    %279 = math.tanh %273 : vector<4x128xf32>
    %280 = vector.extract_strided_slice %278 {offsets = [0, 0], sizes = [4, 32], strides = [1, 1]} : vector<4x128xf32> to vector<4x32xf32>
    %281 = arith.mulf %280, %261 : vector<4x32xf32>
    %282 = vector.extract_strided_slice %278 {offsets = [0, 32], sizes = [4, 32], strides = [1, 1]} : vector<4x128xf32> to vector<4x32xf32>
    %283 = vector.extract_strided_slice %279 {offsets = [0, 64], sizes = [4, 32], strides = [1, 1]} : vector<4x128xf32> to vector<4x32xf32>
    %284 = arith.mulf %282, %283 : vector<4x32xf32>
    %285 = arith.addf %281, %284 : vector<4x32xf32>
    %286 = vector.extract_strided_slice %278 {offsets = [0, 96], sizes = [4, 32], strides = [1, 1]} : vector<4x128xf32> to vector<4x32xf32>
    %287 = math.tanh %285 : vector<4x32xf32>
    %288 = arith.mulf %286, %287 : vector<4x32xf32>
    %289 = vector.extract_strided_slice %288 {offsets = [0, 0], sizes = [2, 32], strides = [1, 1]} : vector<4x32xf32> to vector<2x32xf32>
    %c2_65 = arith.constant 2 : index
    %c0_66 = arith.constant 0 : index
    %290 = vector.load %arg10[%c2_65, %c0_66] : memref<16x64xf32, #tpu.memory_space<vmem>>, vector<2x32xf32>
    tpu.vector_store %arg10[%c2_65, %c0_66], %289 {strides = array<i32>} : memref<16x64xf32, #tpu.memory_space<vmem>>, vector<2x32xf32>,
    %291 = vector.extract_strided_slice %288 {offsets = [2, 0], sizes = [2, 32], strides = [1, 1]} : vector<4x32xf32> to vector<2x32xf32>
    %c12_67 = arith.constant 12 : index
    %c32_68 = arith.constant 32 : index
    %292 = vector.load %arg10[%c12_67, %c32_68] : memref<16x64xf32, #tpu.memory_space<vmem>>, vector<2x32xf32>
    tpu.vector_store %arg10[%c12_67, %c32_68], %291 {strides = array<i32>} : memref<16x64xf32, #tpu.memory_space<vmem>>, vector<2x32xf32>,
    %cst_69 = arith.constant dense<0.000000e+00> : vector<4x256xf32>
    %293 = tpu.matmul %288, %252, %cst_69 {dimension_numbers = #tpu.dot_dimension_numbers<[1], [0], [0], [1], [0, 0, 1, 1], [], []>} : vector<4x32xf32>, vector<32x256xf32>, vector<4x256xf32> -> vector<4x256xf32>
    %294 = vector.extract_strided_slice %293 {offsets = [0, 0], sizes = [4, 128], strides = [1, 1]} : vector<4x256xf32> to vector<4x128xf32>
    %295 = vector.extract_strided_slice %293 {offsets = [0, 128], sizes = [4, 128], strides = [1, 1]} : vector<4x256xf32> to vector<4x128xf32>
    %296 = arith.select %2, %294, %295 : vector<4x128xi1>, vector<4x128xf32>
    %297 = arith.addf %235, %296 : vector<4x128xf32>
    %298 = arith.negf %297 : vector<4x128xf32>
    %299 = math.exp %298 : vector<4x128xf32>
    %cst_70 = arith.constant 1.000000e+00 : f32
    %300 = vector.broadcast %cst_70 : f32 to vector<4x128xf32>
    %301 = arith.addf %300, %299 : vector<4x128xf32>
    %302 = arith.divf %300, %301 : vector<4x128xf32>
    %303 = math.tanh %297 : vector<4x128xf32>
    %304 = vector.extract_strided_slice %302 {offsets = [0, 0], sizes = [4, 32], strides = [1, 1]} : vector<4x128xf32> to vector<4x32xf32>
    %305 = arith.mulf %304, %285 : vector<4x32xf32>
    %306 = vector.extract_strided_slice %302 {offsets = [0, 32], sizes = [4, 32], strides = [1, 1]} : vector<4x128xf32> to vector<4x32xf32>
    %307 = vector.extract_strided_slice %303 {offsets = [0, 64], sizes = [4, 32], strides = [1, 1]} : vector<4x128xf32> to vector<4x32xf32>
    %308 = arith.mulf %306, %307 : vector<4x32xf32>
    %309 = arith.addf %305, %308 : vector<4x32xf32>
    %310 = vector.extract_strided_slice %302 {offsets = [0, 96], sizes = [4, 32], strides = [1, 1]} : vector<4x128xf32> to vector<4x32xf32>
    %311 = math.tanh %309 : vector<4x32xf32>
    %312 = arith.mulf %310, %311 : vector<4x32xf32>
    %313 = vector.extract_strided_slice %312 {offsets = [0, 0], sizes = [2, 32], strides = [1, 1]} : vector<4x32xf32> to vector<2x32xf32>
    %c4_71 = arith.constant 4 : index
    %c0_72 = arith.constant 0 : index
    %314 = vector.load %arg10[%c4_71, %c0_72] : memref<16x64xf32, #tpu.memory_space<vmem>>, vector<2x32xf32>
    tpu.vector_store %arg10[%c4_71, %c0_72], %313 {strides = array<i32>} : memref<16x64xf32, #tpu.memory_space<vmem>>, vector<2x32xf32>,
    %315 = vector.extract_strided_slice %312 {offsets = [2, 0], sizes = [2, 32], strides = [1, 1]} : vector<4x32xf32> to vector<2x32xf32>
    %c10_73 = arith.constant 10 : index
    %c32_74 = arith.constant 32 : index
    %316 = vector.load %arg10[%c10_73, %c32_74] : memref<16x64xf32, #tpu.memory_space<vmem>>, vector<2x32xf32>
    tpu.vector_store %arg10[%c10_73, %c32_74], %315 {strides = array<i32>} : memref<16x64xf32, #tpu.memory_space<vmem>>, vector<2x32xf32>,
    %cst_75 = arith.constant dense<0.000000e+00> : vector<4x256xf32>
    %317 = tpu.matmul %312, %252, %cst_75 {dimension_numbers = #tpu.dot_dimension_numbers<[1], [0], [0], [1], [0, 0, 1, 1], [], []>} : vector<4x32xf32>, vector<32x256xf32>, vector<4x256xf32> -> vector<4x256xf32>
    %318 = vector.extract_strided_slice %317 {offsets = [0, 0], sizes = [4, 128], strides = [1, 1]} : vector<4x256xf32> to vector<4x128xf32>
    %319 = vector.extract_strided_slice %317 {offsets = [0, 128], sizes = [4, 128], strides = [1, 1]} : vector<4x256xf32> to vector<4x128xf32>
    %320 = arith.select %2, %318, %319 : vector<4x128xi1>, vector<4x128xf32>
    %321 = arith.addf %238, %320 : vector<4x128xf32>
    %322 = arith.negf %321 : vector<4x128xf32>
    %323 = math.exp %322 : vector<4x128xf32>
    %cst_76 = arith.constant 1.000000e+00 : f32
    %324 = vector.broadcast %cst_76 : f32 to vector<4x128xf32>
    %325 = arith.addf %324, %323 : vector<4x128xf32>
    %326 = arith.divf %324, %325 : vector<4x128xf32>
    %327 = math.tanh %321 : vector<4x128xf32>
    %328 = vector.extract_strided_slice %326 {offsets = [0, 0], sizes = [4, 32], strides = [1, 1]} : vector<4x128xf32> to vector<4x32xf32>
    %329 = arith.mulf %328, %309 : vector<4x32xf32>
    %330 = vector.extract_strided_slice %326 {offsets = [0, 32], sizes = [4, 32], strides = [1, 1]} : vector<4x128xf32> to vector<4x32xf32>
    %331 = vector.extract_strided_slice %327 {offsets = [0, 64], sizes = [4, 32], strides = [1, 1]} : vector<4x128xf32> to vector<4x32xf32>
    %332 = arith.mulf %330, %331 : vector<4x32xf32>
    %333 = arith.addf %329, %332 : vector<4x32xf32>
    %334 = vector.extract_strided_slice %326 {offsets = [0, 96], sizes = [4, 32], strides = [1, 1]} : vector<4x128xf32> to vector<4x32xf32>
    %335 = math.tanh %333 : vector<4x32xf32>
    %336 = arith.mulf %334, %335 : vector<4x32xf32>
    %337 = vector.extract_strided_slice %336 {offsets = [0, 0], sizes = [2, 32], strides = [1, 1]} : vector<4x32xf32> to vector<2x32xf32>
    %c6_77 = arith.constant 6 : index
    %c0_78 = arith.constant 0 : index
    %338 = vector.load %arg10[%c6_77, %c0_78] : memref<16x64xf32, #tpu.memory_space<vmem>>, vector<2x32xf32>
    tpu.vector_store %arg10[%c6_77, %c0_78], %337 {strides = array<i32>} : memref<16x64xf32, #tpu.memory_space<vmem>>, vector<2x32xf32>,
    %339 = vector.extract_strided_slice %336 {offsets = [2, 0], sizes = [2, 32], strides = [1, 1]} : vector<4x32xf32> to vector<2x32xf32>
    %c8_79 = arith.constant 8 : index
    %c32_80 = arith.constant 32 : index
    %340 = vector.load %arg10[%c8_79, %c32_80] : memref<16x64xf32, #tpu.memory_space<vmem>>, vector<2x32xf32>
    tpu.vector_store %arg10[%c8_79, %c32_80], %339 {strides = array<i32>} : memref<16x64xf32, #tpu.memory_space<vmem>>, vector<2x32xf32>,
    %cst_81 = arith.constant dense<0.000000e+00> : vector<4x256xf32>
    %341 = tpu.matmul %336, %252, %cst_81 {dimension_numbers = #tpu.dot_dimension_numbers<[1], [0], [0], [1], [0, 0, 1, 1], [], []>} : vector<4x32xf32>, vector<32x256xf32>, vector<4x256xf32> -> vector<4x256xf32>
    %342 = vector.extract_strided_slice %341 {offsets = [0, 0], sizes = [4, 128], strides = [1, 1]} : vector<4x256xf32> to vector<4x128xf32>
    %343 = vector.extract_strided_slice %341 {offsets = [0, 128], sizes = [4, 128], strides = [1, 1]} : vector<4x256xf32> to vector<4x128xf32>
    %344 = arith.select %2, %342, %343 : vector<4x128xi1>, vector<4x128xf32>
    %345 = arith.addf %241, %344 : vector<4x128xf32>
    %346 = arith.negf %345 : vector<4x128xf32>
    %347 = math.exp %346 : vector<4x128xf32>
    %cst_82 = arith.constant 1.000000e+00 : f32
    %348 = vector.broadcast %cst_82 : f32 to vector<4x128xf32>
    %349 = arith.addf %348, %347 : vector<4x128xf32>
    %350 = arith.divf %348, %349 : vector<4x128xf32>
    %351 = math.tanh %345 : vector<4x128xf32>
    %352 = vector.extract_strided_slice %350 {offsets = [0, 0], sizes = [4, 32], strides = [1, 1]} : vector<4x128xf32> to vector<4x32xf32>
    %353 = arith.mulf %352, %333 : vector<4x32xf32>
    %354 = vector.extract_strided_slice %350 {offsets = [0, 32], sizes = [4, 32], strides = [1, 1]} : vector<4x128xf32> to vector<4x32xf32>
    %355 = vector.extract_strided_slice %351 {offsets = [0, 64], sizes = [4, 32], strides = [1, 1]} : vector<4x128xf32> to vector<4x32xf32>
    %356 = arith.mulf %354, %355 : vector<4x32xf32>
    %357 = arith.addf %353, %356 : vector<4x32xf32>
    %358 = vector.extract_strided_slice %350 {offsets = [0, 96], sizes = [4, 32], strides = [1, 1]} : vector<4x128xf32> to vector<4x32xf32>
    %359 = math.tanh %357 : vector<4x32xf32>
    %360 = arith.mulf %358, %359 : vector<4x32xf32>
    %361 = vector.extract_strided_slice %360 {offsets = [0, 0], sizes = [2, 32], strides = [1, 1]} : vector<4x32xf32> to vector<2x32xf32>
    %c8_83 = arith.constant 8 : index
    %c0_84 = arith.constant 0 : index
    %362 = vector.load %arg10[%c8_83, %c0_84] : memref<16x64xf32, #tpu.memory_space<vmem>>, vector<2x32xf32>
    tpu.vector_store %arg10[%c8_83, %c0_84], %361 {strides = array<i32>} : memref<16x64xf32, #tpu.memory_space<vmem>>, vector<2x32xf32>,
    %363 = vector.extract_strided_slice %360 {offsets = [2, 0], sizes = [2, 32], strides = [1, 1]} : vector<4x32xf32> to vector<2x32xf32>
    %c6_85 = arith.constant 6 : index
    %c32_86 = arith.constant 32 : index
    %364 = vector.load %arg10[%c6_85, %c32_86] : memref<16x64xf32, #tpu.memory_space<vmem>>, vector<2x32xf32>
    tpu.vector_store %arg10[%c6_85, %c32_86], %363 {strides = array<i32>} : memref<16x64xf32, #tpu.memory_space<vmem>>, vector<2x32xf32>,
    %cst_87 = arith.constant dense<0.000000e+00> : vector<4x256xf32>
    %365 = tpu.matmul %360, %252, %cst_87 {dimension_numbers = #tpu.dot_dimension_numbers<[1], [0], [0], [1], [0, 0, 1, 1], [], []>} : vector<4x32xf32>, vector<32x256xf32>, vector<4x256xf32> -> vector<4x256xf32>
    %366 = vector.extract_strided_slice %365 {offsets = [0, 0], sizes = [4, 128], strides = [1, 1]} : vector<4x256xf32> to vector<4x128xf32>
    %367 = vector.extract_strided_slice %365 {offsets = [0, 128], sizes = [4, 128], strides = [1, 1]} : vector<4x256xf32> to vector<4x128xf32>
    %368 = arith.select %2, %366, %367 : vector<4x128xi1>, vector<4x128xf32>
    %369 = arith.addf %244, %368 : vector<4x128xf32>
    %370 = arith.negf %369 : vector<4x128xf32>
    %371 = math.exp %370 : vector<4x128xf32>
    %cst_88 = arith.constant 1.000000e+00 : f32
    %372 = vector.broadcast %cst_88 : f32 to vector<4x128xf32>
    %373 = arith.addf %372, %371 : vector<4x128xf32>
    %374 = arith.divf %372, %373 : vector<4x128xf32>
    %375 = math.tanh %369 : vector<4x128xf32>
    %376 = vector.extract_strided_slice %374 {offsets = [0, 0], sizes = [4, 32], strides = [1, 1]} : vector<4x128xf32> to vector<4x32xf32>
    %377 = arith.mulf %376, %357 : vector<4x32xf32>
    %378 = vector.extract_strided_slice %374 {offsets = [0, 32], sizes = [4, 32], strides = [1, 1]} : vector<4x128xf32> to vector<4x32xf32>
    %379 = vector.extract_strided_slice %375 {offsets = [0, 64], sizes = [4, 32], strides = [1, 1]} : vector<4x128xf32> to vector<4x32xf32>
    %380 = arith.mulf %378, %379 : vector<4x32xf32>
    %381 = arith.addf %377, %380 : vector<4x32xf32>
    %382 = vector.extract_strided_slice %374 {offsets = [0, 96], sizes = [4, 32], strides = [1, 1]} : vector<4x128xf32> to vector<4x32xf32>
    %383 = math.tanh %381 : vector<4x32xf32>
    %384 = arith.mulf %382, %383 : vector<4x32xf32>
    %385 = vector.extract_strided_slice %384 {offsets = [0, 0], sizes = [2, 32], strides = [1, 1]} : vector<4x32xf32> to vector<2x32xf32>
    %c10_89 = arith.constant 10 : index
    %c0_90 = arith.constant 0 : index
    %386 = vector.load %arg10[%c10_89, %c0_90] : memref<16x64xf32, #tpu.memory_space<vmem>>, vector<2x32xf32>
    tpu.vector_store %arg10[%c10_89, %c0_90], %385 {strides = array<i32>} : memref<16x64xf32, #tpu.memory_space<vmem>>, vector<2x32xf32>,
    %387 = vector.extract_strided_slice %384 {offsets = [2, 0], sizes = [2, 32], strides = [1, 1]} : vector<4x32xf32> to vector<2x32xf32>
    %c4_91 = arith.constant 4 : index
    %c32_92 = arith.constant 32 : index
    %388 = vector.load %arg10[%c4_91, %c32_92] : memref<16x64xf32, #tpu.memory_space<vmem>>, vector<2x32xf32>
    tpu.vector_store %arg10[%c4_91, %c32_92], %387 {strides = array<i32>} : memref<16x64xf32, #tpu.memory_space<vmem>>, vector<2x32xf32>,
    %cst_93 = arith.constant dense<0.000000e+00> : vector<4x256xf32>
    %389 = tpu.matmul %384, %252, %cst_93 {dimension_numbers = #tpu.dot_dimension_numbers<[1], [0], [0], [1], [0, 0, 1, 1], [], []>} : vector<4x32xf32>, vector<32x256xf32>, vector<4x256xf32> -> vector<4x256xf32>
    %390 = vector.extract_strided_slice %389 {offsets = [0, 0], sizes = [4, 128], strides = [1, 1]} : vector<4x256xf32> to vector<4x128xf32>
    %391 = vector.extract_strided_slice %389 {offsets = [0, 128], sizes = [4, 128], strides = [1, 1]} : vector<4x256xf32> to vector<4x128xf32>
    %392 = arith.select %2, %390, %391 : vector<4x128xi1>, vector<4x128xf32>
    %393 = arith.addf %247, %392 : vector<4x128xf32>
    %394 = arith.negf %393 : vector<4x128xf32>
    %395 = math.exp %394 : vector<4x128xf32>
    %cst_94 = arith.constant 1.000000e+00 : f32
    %396 = vector.broadcast %cst_94 : f32 to vector<4x128xf32>
    %397 = arith.addf %396, %395 : vector<4x128xf32>
    %398 = arith.divf %396, %397 : vector<4x128xf32>
    %399 = math.tanh %393 : vector<4x128xf32>
    %400 = vector.extract_strided_slice %398 {offsets = [0, 0], sizes = [4, 32], strides = [1, 1]} : vector<4x128xf32> to vector<4x32xf32>
    %401 = arith.mulf %400, %381 : vector<4x32xf32>
    %402 = vector.extract_strided_slice %398 {offsets = [0, 32], sizes = [4, 32], strides = [1, 1]} : vector<4x128xf32> to vector<4x32xf32>
    %403 = vector.extract_strided_slice %399 {offsets = [0, 64], sizes = [4, 32], strides = [1, 1]} : vector<4x128xf32> to vector<4x32xf32>
    %404 = arith.mulf %402, %403 : vector<4x32xf32>
    %405 = arith.addf %401, %404 : vector<4x32xf32>
    %406 = vector.extract_strided_slice %398 {offsets = [0, 96], sizes = [4, 32], strides = [1, 1]} : vector<4x128xf32> to vector<4x32xf32>
    %407 = math.tanh %405 : vector<4x32xf32>
    %408 = arith.mulf %406, %407 : vector<4x32xf32>
    %409 = vector.extract_strided_slice %408 {offsets = [0, 0], sizes = [2, 32], strides = [1, 1]} : vector<4x32xf32> to vector<2x32xf32>
    %c12_95 = arith.constant 12 : index
    %c0_96 = arith.constant 0 : index
    %410 = vector.load %arg10[%c12_95, %c0_96] : memref<16x64xf32, #tpu.memory_space<vmem>>, vector<2x32xf32>
    tpu.vector_store %arg10[%c12_95, %c0_96], %409 {strides = array<i32>} : memref<16x64xf32, #tpu.memory_space<vmem>>, vector<2x32xf32>,
    %411 = vector.extract_strided_slice %408 {offsets = [2, 0], sizes = [2, 32], strides = [1, 1]} : vector<4x32xf32> to vector<2x32xf32>
    %c2_97 = arith.constant 2 : index
    %c32_98 = arith.constant 32 : index
    %412 = vector.load %arg10[%c2_97, %c32_98] : memref<16x64xf32, #tpu.memory_space<vmem>>, vector<2x32xf32>
    tpu.vector_store %arg10[%c2_97, %c32_98], %411 {strides = array<i32>} : memref<16x64xf32, #tpu.memory_space<vmem>>, vector<2x32xf32>,
    %cst_99 = arith.constant dense<0.000000e+00> : vector<4x256xf32>
    %413 = tpu.matmul %408, %252, %cst_99 {dimension_numbers = #tpu.dot_dimension_numbers<[1], [0], [0], [1], [0, 0, 1, 1], [], []>} : vector<4x32xf32>, vector<32x256xf32>, vector<4x256xf32> -> vector<4x256xf32>
    %414 = vector.extract_strided_slice %413 {offsets = [0, 0], sizes = [4, 128], strides = [1, 1]} : vector<4x256xf32> to vector<4x128xf32>
    %415 = vector.extract_strided_slice %413 {offsets = [0, 128], sizes = [4, 128], strides = [1, 1]} : vector<4x256xf32> to vector<4x128xf32>
    %416 = arith.select %2, %414, %415 : vector<4x128xi1>, vector<4x128xf32>
    %417 = arith.addf %250, %416 : vector<4x128xf32>
    %418 = arith.negf %417 : vector<4x128xf32>
    %419 = math.exp %418 : vector<4x128xf32>
    %cst_100 = arith.constant 1.000000e+00 : f32
    %420 = vector.broadcast %cst_100 : f32 to vector<4x128xf32>
    %421 = arith.addf %420, %419 : vector<4x128xf32>
    %422 = arith.divf %420, %421 : vector<4x128xf32>
    %423 = math.tanh %417 : vector<4x128xf32>
    %424 = vector.extract_strided_slice %422 {offsets = [0, 0], sizes = [4, 32], strides = [1, 1]} : vector<4x128xf32> to vector<4x32xf32>
    %425 = arith.mulf %424, %405 : vector<4x32xf32>
    %426 = vector.extract_strided_slice %422 {offsets = [0, 32], sizes = [4, 32], strides = [1, 1]} : vector<4x128xf32> to vector<4x32xf32>
    %427 = vector.extract_strided_slice %423 {offsets = [0, 64], sizes = [4, 32], strides = [1, 1]} : vector<4x128xf32> to vector<4x32xf32>
    %428 = arith.mulf %426, %427 : vector<4x32xf32>
    %429 = arith.addf %425, %428 : vector<4x32xf32>
    %430 = vector.extract_strided_slice %422 {offsets = [0, 96], sizes = [4, 32], strides = [1, 1]} : vector<4x128xf32> to vector<4x32xf32>
    %431 = math.tanh %429 : vector<4x32xf32>
    %432 = arith.mulf %430, %431 : vector<4x32xf32>
    %433 = vector.extract_strided_slice %432 {offsets = [0, 0], sizes = [2, 32], strides = [1, 1]} : vector<4x32xf32> to vector<2x32xf32>
    %c14_101 = arith.constant 14 : index
    %c0_102 = arith.constant 0 : index
    %434 = vector.load %arg10[%c14_101, %c0_102] : memref<16x64xf32, #tpu.memory_space<vmem>>, vector<2x32xf32>
    tpu.vector_store %arg10[%c14_101, %c0_102], %433 {strides = array<i32>} : memref<16x64xf32, #tpu.memory_space<vmem>>, vector<2x32xf32>,
    %435 = vector.extract_strided_slice %432 {offsets = [2, 0], sizes = [2, 32], strides = [1, 1]} : vector<4x32xf32> to vector<2x32xf32>
    %c0_103 = arith.constant 0 : index
    %c32_104 = arith.constant 32 : index
    %436 = vector.load %arg10[%c0_103, %c32_104] : memref<16x64xf32, #tpu.memory_space<vmem>>, vector<2x32xf32>
    tpu.vector_store %arg10[%c0_103, %c32_104], %435 {strides = array<i32>} : memref<16x64xf32, #tpu.memory_space<vmem>>, vector<2x32xf32>,
    %c0_105 = arith.constant 0 : index
    %c0_106 = arith.constant 0 : index
    %437 = vector.load %arg10[%c0_105, %c0_106] : memref<16x64xf32, #tpu.memory_space<vmem>>, vector<16x64xf32>
    %c0_107 = arith.constant 0 : index
    %c0_108 = arith.constant 0 : index
    %438 = vector.load %arg3[%c0_107, %c0_108] : memref<64x256xf32, #tpu.memory_space<vmem>>, vector<64x256xf32>
    %cst_109 = arith.constant dense<0.000000e+00> : vector<16x256xf32>
    %439 = tpu.matmul %437, %438, %cst_109 {dimension_numbers = #tpu.dot_dimension_numbers<[1], [0], [0], [1], [0, 0, 1, 1], [], []>} : vector<16x64xf32>, vector<64x256xf32>, vector<16x256xf32> -> vector<16x256xf32>
    %c2_110 = arith.constant 2 : index
    %c0_111 = arith.constant 0 : index
    %c0_112 = arith.constant 0 : index
    %440 = vector.load %arg5[%c2_110, %c0_111, %c0_112] : memref<3x1x256xf32, #tpu.memory_space<vmem>>, vector<1x1x256xf32>
    %441 = vector.shape_cast %440 : vector<1x1x256xf32> to vector<1x256xf32>
    %442 = vector.broadcast %441 : vector<1x256xf32> to vector<16x256xf32>
    %443 = arith.addf %439, %442 : vector<16x256xf32>
    %444 = vector.extract_strided_slice %443 {offsets = [0, 0], sizes = [2, 128], strides = [1, 1]} : vector<16x256xf32> to vector<2x128xf32>
    %445 = vector.extract_strided_slice %443 {offsets = [14, 128], sizes = [2, 128], strides = [1, 1]} : vector<16x256xf32> to vector<2x128xf32>
    %446 = tpu.concatenate %444, %445 in 0 : vector<2x128xf32>, vector<2x128xf32> -> vector<4x128xf32>
    %447 = vector.extract_strided_slice %443 {offsets = [2, 0], sizes = [2, 128], strides = [1, 1]} : vector<16x256xf32> to vector<2x128xf32>
    %448 = vector.extract_strided_slice %443 {offsets = [12, 128], sizes = [2, 128], strides = [1, 1]} : vector<16x256xf32> to vector<2x128xf32>
    %449 = tpu.concatenate %447, %448 in 0 : vector<2x128xf32>, vector<2x128xf32> -> vector<4x128xf32>
    %450 = vector.extract_strided_slice %443 {offsets = [4, 0], sizes = [2, 128], strides = [1, 1]} : vector<16x256xf32> to vector<2x128xf32>
    %451 = vector.extract_strided_slice %443 {offsets = [10, 128], sizes = [2, 128], strides = [1, 1]} : vector<16x256xf32> to vector<2x128xf32>
    %452 = tpu.concatenate %450, %451 in 0 : vector<2x128xf32>, vector<2x128xf32> -> vector<4x128xf32>
    %453 = vector.extract_strided_slice %443 {offsets = [6, 0], sizes = [2, 128], strides = [1, 1]} : vector<16x256xf32> to vector<2x128xf32>
    %454 = vector.extract_strided_slice %443 {offsets = [8, 128], sizes = [2, 128], strides = [1, 1]} : vector<16x256xf32> to vector<2x128xf32>
    %455 = tpu.concatenate %453, %454 in 0 : vector<2x128xf32>, vector<2x128xf32> -> vector<4x128xf32>
    %456 = vector.extract_strided_slice %443 {offsets = [8, 0], sizes = [2, 128], strides = [1, 1]} : vector<16x256xf32> to vector<2x128xf32>
    %457 = vector.extract_strided_slice %443 {offsets = [6, 128], sizes = [2, 128], strides = [1, 1]} : vector<16x256xf32> to vector<2x128xf32>
    %458 = tpu.concatenate %456, %457 in 0 : vector<2x128xf32>, vector<2x128xf32> -> vector<4x128xf32>
    %459 = vector.extract_strided_slice %443 {offsets = [10, 0], sizes = [2, 128], strides = [1, 1]} : vector<16x256xf32> to vector<2x128xf32>
    %460 = vector.extract_strided_slice %443 {offsets = [4, 128], sizes = [2, 128], strides = [1, 1]} : vector<16x256xf32> to vector<2x128xf32>
    %461 = tpu.concatenate %459, %460 in 0 : vector<2x128xf32>, vector<2x128xf32> -> vector<4x128xf32>
    %462 = vector.extract_strided_slice %443 {offsets = [12, 0], sizes = [2, 128], strides = [1, 1]} : vector<16x256xf32> to vector<2x128xf32>
    %463 = vector.extract_strided_slice %443 {offsets = [2, 128], sizes = [2, 128], strides = [1, 1]} : vector<16x256xf32> to vector<2x128xf32>
    %464 = tpu.concatenate %462, %463 in 0 : vector<2x128xf32>, vector<2x128xf32> -> vector<4x128xf32>
    %465 = vector.extract_strided_slice %443 {offsets = [14, 0], sizes = [2, 128], strides = [1, 1]} : vector<16x256xf32> to vector<2x128xf32>
    %466 = vector.extract_strided_slice %443 {offsets = [0, 128], sizes = [2, 128], strides = [1, 1]} : vector<16x256xf32> to vector<2x128xf32>
    %467 = tpu.concatenate %465, %466 in 0 : vector<2x128xf32>, vector<2x128xf32> -> vector<4x128xf32>
    %c2_113 = arith.constant 2 : index
    %c0_114 = arith.constant 0 : index
    %c0_115 = arith.constant 0 : index
    %468 = vector.load %arg4[%c2_113, %c0_114, %c0_115] : memref<3x32x256xf32, #tpu.memory_space<vmem>>, vector<1x32x256xf32>
    %469 = vector.shape_cast %468 : vector<1x32x256xf32> to vector<32x256xf32>
    %470 = arith.negf %446 : vector<4x128xf32>
    %471 = math.exp %470 : vector<4x128xf32>
    %cst_116 = arith.constant 1.000000e+00 : f32
    %472 = vector.broadcast %cst_116 : f32 to vector<4x128xf32>
    %473 = arith.addf %472, %471 : vector<4x128xf32>
    %474 = arith.divf %472, %473 : vector<4x128xf32>
    %475 = math.tanh %446 : vector<4x128xf32>
    %476 = vector.extract_strided_slice %474 {offsets = [0, 32], sizes = [4, 32], strides = [1, 1]} : vector<4x128xf32> to vector<4x32xf32>
    %477 = vector.extract_strided_slice %475 {offsets = [0, 64], sizes = [4, 32], strides = [1, 1]} : vector<4x128xf32> to vector<4x32xf32>
    %478 = arith.mulf %476, %477 : vector<4x32xf32>
    %479 = vector.extract_strided_slice %474 {offsets = [0, 96], sizes = [4, 32], strides = [1, 1]} : vector<4x128xf32> to vector<4x32xf32>
    %480 = math.tanh %478 : vector<4x32xf32>
    %481 = arith.mulf %479, %480 : vector<4x32xf32>
    %cst_117 = arith.constant dense<0.000000e+00> : vector<4x256xf32>
    %482 = tpu.matmul %481, %469, %cst_117 {dimension_numbers = #tpu.dot_dimension_numbers<[1], [0], [0], [1], [0, 0, 1, 1], [], []>} : vector<4x32xf32>, vector<32x256xf32>, vector<4x256xf32> -> vector<4x256xf32>
    %483 = vector.extract_strided_slice %482 {offsets = [0, 0], sizes = [4, 128], strides = [1, 1]} : vector<4x256xf32> to vector<4x128xf32>
    %484 = vector.extract_strided_slice %482 {offsets = [0, 128], sizes = [4, 128], strides = [1, 1]} : vector<4x256xf32> to vector<4x128xf32>
    %485 = arith.select %2, %483, %484 : vector<4x128xi1>, vector<4x128xf32>
    %486 = arith.addf %449, %485 : vector<4x128xf32>
    %487 = arith.negf %486 : vector<4x128xf32>
    %488 = math.exp %487 : vector<4x128xf32>
    %cst_118 = arith.constant 1.000000e+00 : f32
    %489 = vector.broadcast %cst_118 : f32 to vector<4x128xf32>
    %490 = arith.addf %489, %488 : vector<4x128xf32>
    %491 = arith.divf %489, %490 : vector<4x128xf32>
    %492 = math.tanh %486 : vector<4x128xf32>
    %493 = vector.extract_strided_slice %491 {offsets = [0, 0], sizes = [4, 32], strides = [1, 1]} : vector<4x128xf32> to vector<4x32xf32>
    %494 = arith.mulf %493, %478 : vector<4x32xf32>
    %495 = vector.extract_strided_slice %491 {offsets = [0, 32], sizes = [4, 32], strides = [1, 1]} : vector<4x128xf32> to vector<4x32xf32>
    %496 = vector.extract_strided_slice %492 {offsets = [0, 64], sizes = [4, 32], strides = [1, 1]} : vector<4x128xf32> to vector<4x32xf32>
    %497 = arith.mulf %495, %496 : vector<4x32xf32>
    %498 = arith.addf %494, %497 : vector<4x32xf32>
    %499 = vector.extract_strided_slice %491 {offsets = [0, 96], sizes = [4, 32], strides = [1, 1]} : vector<4x128xf32> to vector<4x32xf32>
    %500 = math.tanh %498 : vector<4x32xf32>
    %501 = arith.mulf %499, %500 : vector<4x32xf32>
    %cst_119 = arith.constant dense<0.000000e+00> : vector<4x256xf32>
    %502 = tpu.matmul %501, %469, %cst_119 {dimension_numbers = #tpu.dot_dimension_numbers<[1], [0], [0], [1], [0, 0, 1, 1], [], []>} : vector<4x32xf32>, vector<32x256xf32>, vector<4x256xf32> -> vector<4x256xf32>
    %503 = vector.extract_strided_slice %502 {offsets = [0, 0], sizes = [4, 128], strides = [1, 1]} : vector<4x256xf32> to vector<4x128xf32>
    %504 = vector.extract_strided_slice %502 {offsets = [0, 128], sizes = [4, 128], strides = [1, 1]} : vector<4x256xf32> to vector<4x128xf32>
    %505 = arith.select %2, %503, %504 : vector<4x128xi1>, vector<4x128xf32>
    %506 = arith.addf %452, %505 : vector<4x128xf32>
    %507 = arith.negf %506 : vector<4x128xf32>
    %508 = math.exp %507 : vector<4x128xf32>
    %cst_120 = arith.constant 1.000000e+00 : f32
    %509 = vector.broadcast %cst_120 : f32 to vector<4x128xf32>
    %510 = arith.addf %509, %508 : vector<4x128xf32>
    %511 = arith.divf %509, %510 : vector<4x128xf32>
    %512 = math.tanh %506 : vector<4x128xf32>
    %513 = vector.extract_strided_slice %511 {offsets = [0, 0], sizes = [4, 32], strides = [1, 1]} : vector<4x128xf32> to vector<4x32xf32>
    %514 = arith.mulf %513, %498 : vector<4x32xf32>
    %515 = vector.extract_strided_slice %511 {offsets = [0, 32], sizes = [4, 32], strides = [1, 1]} : vector<4x128xf32> to vector<4x32xf32>
    %516 = vector.extract_strided_slice %512 {offsets = [0, 64], sizes = [4, 32], strides = [1, 1]} : vector<4x128xf32> to vector<4x32xf32>
    %517 = arith.mulf %515, %516 : vector<4x32xf32>
    %518 = arith.addf %514, %517 : vector<4x32xf32>
    %519 = vector.extract_strided_slice %511 {offsets = [0, 96], sizes = [4, 32], strides = [1, 1]} : vector<4x128xf32> to vector<4x32xf32>
    %520 = math.tanh %518 : vector<4x32xf32>
    %521 = arith.mulf %519, %520 : vector<4x32xf32>
    %cst_121 = arith.constant dense<0.000000e+00> : vector<4x256xf32>
    %522 = tpu.matmul %521, %469, %cst_121 {dimension_numbers = #tpu.dot_dimension_numbers<[1], [0], [0], [1], [0, 0, 1, 1], [], []>} : vector<4x32xf32>, vector<32x256xf32>, vector<4x256xf32> -> vector<4x256xf32>
    %523 = vector.extract_strided_slice %522 {offsets = [0, 0], sizes = [4, 128], strides = [1, 1]} : vector<4x256xf32> to vector<4x128xf32>
    %524 = vector.extract_strided_slice %522 {offsets = [0, 128], sizes = [4, 128], strides = [1, 1]} : vector<4x256xf32> to vector<4x128xf32>
    %525 = arith.select %2, %523, %524 : vector<4x128xi1>, vector<4x128xf32>
    %526 = arith.addf %455, %525 : vector<4x128xf32>
    %527 = arith.negf %526 : vector<4x128xf32>
    %528 = math.exp %527 : vector<4x128xf32>
    %cst_122 = arith.constant 1.000000e+00 : f32
    %529 = vector.broadcast %cst_122 : f32 to vector<4x128xf32>
    %530 = arith.addf %529, %528 : vector<4x128xf32>
    %531 = arith.divf %529, %530 : vector<4x128xf32>
    %532 = math.tanh %526 : vector<4x128xf32>
    %533 = vector.extract_strided_slice %531 {offsets = [0, 0], sizes = [4, 32], strides = [1, 1]} : vector<4x128xf32> to vector<4x32xf32>
    %534 = arith.mulf %533, %518 : vector<4x32xf32>
    %535 = vector.extract_strided_slice %531 {offsets = [0, 32], sizes = [4, 32], strides = [1, 1]} : vector<4x128xf32> to vector<4x32xf32>
    %536 = vector.extract_strided_slice %532 {offsets = [0, 64], sizes = [4, 32], strides = [1, 1]} : vector<4x128xf32> to vector<4x32xf32>
    %537 = arith.mulf %535, %536 : vector<4x32xf32>
    %538 = arith.addf %534, %537 : vector<4x32xf32>
    %539 = vector.extract_strided_slice %531 {offsets = [0, 96], sizes = [4, 32], strides = [1, 1]} : vector<4x128xf32> to vector<4x32xf32>
    %540 = math.tanh %538 : vector<4x32xf32>
    %541 = arith.mulf %539, %540 : vector<4x32xf32>
    %cst_123 = arith.constant dense<0.000000e+00> : vector<4x256xf32>
    %542 = tpu.matmul %541, %469, %cst_123 {dimension_numbers = #tpu.dot_dimension_numbers<[1], [0], [0], [1], [0, 0, 1, 1], [], []>} : vector<4x32xf32>, vector<32x256xf32>, vector<4x256xf32> -> vector<4x256xf32>
    %543 = vector.extract_strided_slice %542 {offsets = [0, 0], sizes = [4, 128], strides = [1, 1]} : vector<4x256xf32> to vector<4x128xf32>
    %544 = vector.extract_strided_slice %542 {offsets = [0, 128], sizes = [4, 128], strides = [1, 1]} : vector<4x256xf32> to vector<4x128xf32>
    %545 = arith.select %2, %543, %544 : vector<4x128xi1>, vector<4x128xf32>
    %546 = arith.addf %458, %545 : vector<4x128xf32>
    %547 = arith.negf %546 : vector<4x128xf32>
    %548 = math.exp %547 : vector<4x128xf32>
    %cst_124 = arith.constant 1.000000e+00 : f32
    %549 = vector.broadcast %cst_124 : f32 to vector<4x128xf32>
    %550 = arith.addf %549, %548 : vector<4x128xf32>
    %551 = arith.divf %549, %550 : vector<4x128xf32>
    %552 = math.tanh %546 : vector<4x128xf32>
    %553 = vector.extract_strided_slice %551 {offsets = [0, 0], sizes = [4, 32], strides = [1, 1]} : vector<4x128xf32> to vector<4x32xf32>
    %554 = arith.mulf %553, %538 : vector<4x32xf32>
    %555 = vector.extract_strided_slice %551 {offsets = [0, 32], sizes = [4, 32], strides = [1, 1]} : vector<4x128xf32> to vector<4x32xf32>
    %556 = vector.extract_strided_slice %552 {offsets = [0, 64], sizes = [4, 32], strides = [1, 1]} : vector<4x128xf32> to vector<4x32xf32>
    %557 = arith.mulf %555, %556 : vector<4x32xf32>
    %558 = arith.addf %554, %557 : vector<4x32xf32>
    %559 = vector.extract_strided_slice %551 {offsets = [0, 96], sizes = [4, 32], strides = [1, 1]} : vector<4x128xf32> to vector<4x32xf32>
    %560 = math.tanh %558 : vector<4x32xf32>
    %561 = arith.mulf %559, %560 : vector<4x32xf32>
    %cst_125 = arith.constant dense<0.000000e+00> : vector<4x256xf32>
    %562 = tpu.matmul %561, %469, %cst_125 {dimension_numbers = #tpu.dot_dimension_numbers<[1], [0], [0], [1], [0, 0, 1, 1], [], []>} : vector<4x32xf32>, vector<32x256xf32>, vector<4x256xf32> -> vector<4x256xf32>
    %563 = vector.extract_strided_slice %562 {offsets = [0, 0], sizes = [4, 128], strides = [1, 1]} : vector<4x256xf32> to vector<4x128xf32>
    %564 = vector.extract_strided_slice %562 {offsets = [0, 128], sizes = [4, 128], strides = [1, 1]} : vector<4x256xf32> to vector<4x128xf32>
    %565 = arith.select %2, %563, %564 : vector<4x128xi1>, vector<4x128xf32>
    %566 = arith.addf %461, %565 : vector<4x128xf32>
    %567 = arith.negf %566 : vector<4x128xf32>
    %568 = math.exp %567 : vector<4x128xf32>
    %cst_126 = arith.constant 1.000000e+00 : f32
    %569 = vector.broadcast %cst_126 : f32 to vector<4x128xf32>
    %570 = arith.addf %569, %568 : vector<4x128xf32>
    %571 = arith.divf %569, %570 : vector<4x128xf32>
    %572 = math.tanh %566 : vector<4x128xf32>
    %573 = vector.extract_strided_slice %571 {offsets = [0, 0], sizes = [4, 32], strides = [1, 1]} : vector<4x128xf32> to vector<4x32xf32>
    %574 = arith.mulf %573, %558 : vector<4x32xf32>
    %575 = vector.extract_strided_slice %571 {offsets = [0, 32], sizes = [4, 32], strides = [1, 1]} : vector<4x128xf32> to vector<4x32xf32>
    %576 = vector.extract_strided_slice %572 {offsets = [0, 64], sizes = [4, 32], strides = [1, 1]} : vector<4x128xf32> to vector<4x32xf32>
    %577 = arith.mulf %575, %576 : vector<4x32xf32>
    %578 = arith.addf %574, %577 : vector<4x32xf32>
    %579 = vector.extract_strided_slice %571 {offsets = [0, 96], sizes = [4, 32], strides = [1, 1]} : vector<4x128xf32> to vector<4x32xf32>
    %580 = math.tanh %578 : vector<4x32xf32>
    %581 = arith.mulf %579, %580 : vector<4x32xf32>
    %cst_127 = arith.constant dense<0.000000e+00> : vector<4x256xf32>
    %582 = tpu.matmul %581, %469, %cst_127 {dimension_numbers = #tpu.dot_dimension_numbers<[1], [0], [0], [1], [0, 0, 1, 1], [], []>} : vector<4x32xf32>, vector<32x256xf32>, vector<4x256xf32> -> vector<4x256xf32>
    %583 = vector.extract_strided_slice %582 {offsets = [0, 0], sizes = [4, 128], strides = [1, 1]} : vector<4x256xf32> to vector<4x128xf32>
    %584 = vector.extract_strided_slice %582 {offsets = [0, 128], sizes = [4, 128], strides = [1, 1]} : vector<4x256xf32> to vector<4x128xf32>
    %585 = arith.select %2, %583, %584 : vector<4x128xi1>, vector<4x128xf32>
    %586 = arith.addf %464, %585 : vector<4x128xf32>
    %587 = arith.negf %586 : vector<4x128xf32>
    %588 = math.exp %587 : vector<4x128xf32>
    %cst_128 = arith.constant 1.000000e+00 : f32
    %589 = vector.broadcast %cst_128 : f32 to vector<4x128xf32>
    %590 = arith.addf %589, %588 : vector<4x128xf32>
    %591 = arith.divf %589, %590 : vector<4x128xf32>
    %592 = math.tanh %586 : vector<4x128xf32>
    %593 = vector.extract_strided_slice %591 {offsets = [0, 0], sizes = [4, 32], strides = [1, 1]} : vector<4x128xf32> to vector<4x32xf32>
    %594 = arith.mulf %593, %578 : vector<4x32xf32>
    %595 = vector.extract_strided_slice %591 {offsets = [0, 32], sizes = [4, 32], strides = [1, 1]} : vector<4x128xf32> to vector<4x32xf32>
    %596 = vector.extract_strided_slice %592 {offsets = [0, 64], sizes = [4, 32], strides = [1, 1]} : vector<4x128xf32> to vector<4x32xf32>
    %597 = arith.mulf %595, %596 : vector<4x32xf32>
    %598 = arith.addf %594, %597 : vector<4x32xf32>
    %599 = vector.extract_strided_slice %591 {offsets = [0, 96], sizes = [4, 32], strides = [1, 1]} : vector<4x128xf32> to vector<4x32xf32>
    %600 = math.tanh %598 : vector<4x32xf32>
    %601 = arith.mulf %599, %600 : vector<4x32xf32>
    %cst_129 = arith.constant dense<0.000000e+00> : vector<4x256xf32>
    %602 = tpu.matmul %601, %469, %cst_129 {dimension_numbers = #tpu.dot_dimension_numbers<[1], [0], [0], [1], [0, 0, 1, 1], [], []>} : vector<4x32xf32>, vector<32x256xf32>, vector<4x256xf32> -> vector<4x256xf32>
    %603 = vector.extract_strided_slice %602 {offsets = [0, 0], sizes = [4, 128], strides = [1, 1]} : vector<4x256xf32> to vector<4x128xf32>
    %604 = vector.extract_strided_slice %602 {offsets = [0, 128], sizes = [4, 128], strides = [1, 1]} : vector<4x256xf32> to vector<4x128xf32>
    %605 = arith.select %2, %603, %604 : vector<4x128xi1>, vector<4x128xf32>
    %606 = arith.addf %467, %605 : vector<4x128xf32>
    %607 = arith.negf %606 : vector<4x128xf32>
    %608 = math.exp %607 : vector<4x128xf32>
    %cst_130 = arith.constant 1.000000e+00 : f32
    %609 = vector.broadcast %cst_130 : f32 to vector<4x128xf32>
    %610 = arith.addf %609, %608 : vector<4x128xf32>
    %611 = arith.divf %609, %610 : vector<4x128xf32>
    %612 = math.tanh %606 : vector<4x128xf32>
    %613 = vector.extract_strided_slice %611 {offsets = [0, 0], sizes = [4, 32], strides = [1, 1]} : vector<4x128xf32> to vector<4x32xf32>
    %614 = arith.mulf %613, %598 : vector<4x32xf32>
    %615 = vector.extract_strided_slice %611 {offsets = [0, 32], sizes = [4, 32], strides = [1, 1]} : vector<4x128xf32> to vector<4x32xf32>
    %616 = vector.extract_strided_slice %612 {offsets = [0, 64], sizes = [4, 32], strides = [1, 1]} : vector<4x128xf32> to vector<4x32xf32>
    %617 = arith.mulf %615, %616 : vector<4x32xf32>
    %618 = arith.addf %614, %617 : vector<4x32xf32>
    %619 = vector.extract_strided_slice %611 {offsets = [0, 96], sizes = [4, 32], strides = [1, 1]} : vector<4x128xf32> to vector<4x32xf32>
    %620 = math.tanh %618 : vector<4x32xf32>
    %621 = arith.mulf %619, %620 : vector<4x32xf32>
    %622 = vector.extract_strided_slice %621 {offsets = [0, 0], sizes = [2, 32], strides = [1, 1]} : vector<4x32xf32> to vector<2x32xf32>
    %623 = vector.extract_strided_slice %621 {offsets = [2, 0], sizes = [2, 32], strides = [1, 1]} : vector<4x32xf32> to vector<2x32xf32>
    %624 = tpu.concatenate %622, %623 in 1 : vector<2x32xf32>, vector<2x32xf32> -> vector<2x64xf32>
    %c0_131 = arith.constant 0 : index
    %c0_132 = arith.constant 0 : index
    %625 = vector.load %arg6[%c0_131, %c0_132] : memref<64x2xf32, #tpu.memory_space<vmem>>, vector<64x2xf32>
    %cst_133 = arith.constant dense<0.000000e+00> : vector<2x2xf32>
    %626 = tpu.matmul %624, %625, %cst_133 {dimension_numbers = #tpu.dot_dimension_numbers<[1], [0], [0], [1], [0, 0, 1, 1], [], []>} : vector<2x64xf32>, vector<64x2xf32>, vector<2x2xf32> -> vector<2x2xf32>
    %c0_134 = arith.constant 0 : index
    %c0_135 = arith.constant 0 : index
    %627 = vector.load %arg7[%c0_134, %c0_135] : memref<1x2xf32, #tpu.memory_space<vmem>>, vector<1x2xf32>
    %628 = vector.broadcast %627 : vector<1x2xf32> to vector<2x2xf32>
    %629 = arith.addf %626, %628 : vector<2x2xf32>
    %c0_136 = arith.constant 0 : index
    %c0_137 = arith.constant 0 : index
    %630 = vector.load %arg8[%c0_136, %c0_137] : memref<2x2xf32, #tpu.memory_space<vmem>>, vector<2x2xf32>
    tpu.vector_store %arg8[%c0_136, %c0_137], %629 {strides = array<i32>} : memref<2x2xf32, #tpu.memory_space<vmem>>, vector<2x2xf32>,
    return
  }
}

</mosaic_0001>

<bundles_post_ra>
// kernel: my_lstm_forward_pallas.1
= control target key start
LH: loop header
LB: loop body
LE: loop exit
PB: predicated region body
PF: predicated region fallthrough
CT: control target
= control target key end

     0   :  { %13 = vsyncpa [#allocation5], 0  ;;  %s4096_s0 = inlined_call_operand.vmem [shape: f32[16,16], index: 0, kind: input, shape index: {}]   ;;  %s4097_s1 = inlined_call_operand.vmem [shape: f32[16,256], index: 1, kind: input, shape index: {}]   ;;  %s4098_s2 = inlined_call_operand.hbm [shape: f32[64,256], index: 2, kind: input, shape index: {}]   ;;  %s4099_s3 = inlined_call_operand.hbm [shape: f32[64,256], index: 3, kind: input, shape index: {}]   ;;  %s4100_s4 = inlined_call_operand.hbm [shape: f32[3,32,256], index: 4, kind: input, shape index: {}]   ;;  %s4101_s5 = inlined_call_operand.vmem [shape: f32[3,1,256], index: 5, kind: input, shape index: {}]   ;;  %s4102_s6 = inlined_call_operand.vmem [shape: f32[64,2], index: 6, kind: input, shape index: {}]   ;;  %s4103_s7 = inlined_call_operand.vmem [shape: f32[1,2], index: 7, kind: input, shape index: {}]   ;;  %s4104_s8 = inlined_call_operand.hbm [shape: f32[2,2], index: 8, kind: output, shape index: {}]  }
   0x1   :  { %14 = vsyncpa [#allocation8], 0 }
   0x2   :  { %15 = vsyncpa [#allocation6], 0  ;;  %s3340_s27 = smov [#allocation7]   ;;  %s3341_s29 = smov [#allocation4]  }
   0x3   :  { %s37_s28 = sshll.u32 %s3340_s27, 4  ;;  %s25_s30 = sshll.u32 %s3341_s29, 4  ;;  %s38_s28 = int_to_ptr.vmem [resolvable:$true] %s37_s28  ;;  %s26_s30 = int_to_ptr.vmem [resolvable:$true] %s25_s30 }
   0x4   :  { %s3262_s9 = scalar_lea.vmem %s38_s28, 2048  ;;  %p3267_p1 = scmp.lt.s32.totalorder %s38_s28, %s38_s28 }
   0x5   :  { %p3263_p0 = scmp.ne.s32.totalorder %s38_s28, %s3262_s9  ;;  %p3268_p2 = scmp.lt.s32.totalorder %s3262_s9, %s3262_s9 }
   0x7   :  { %p3269_p3 = por %p3268_p2, %p3267_p1 }
   0x9   :  { %p3270_p4 = pnand %p3269_p3, %p3263_p0 }
   0xb   :  { %3273 = shalt.err (!%p3270_p4)
}
   0xc   :  { %s3342_s10 = smov 256   ;;  %s3343_s11 = smov 16  }
   0xd   :  { %43 = dma.hbm_to_vmem [thread:$0]  %s4099_s3, 2048, %s38_s28, [#allocation8], %s3342_s10, %s3342_s10, %s3343_s11  }
   0xe   :  { %s3282_s14 = scalar_lea.vmem %s26_s30, 2048  ;;  %p3287_p6 = scmp.lt.s32.totalorder %s26_s30, %s26_s30 }
   0xf   :  { %p3283_p5 = scmp.ne.s32.totalorder %s26_s30, %s3282_s14  ;;  %p3288_p7 = scmp.lt.s32.totalorder %s3282_s14, %s3282_s14 }
  0x11   :  { %p3289_p8 = por %p3288_p7, %p3287_p6 }
  0x13   :  { %p3290_p9 = pnand %p3289_p8, %p3283_p5 }
  0x15   :  { %3293 = shalt.err (!%p3290_p9)
}
  0x16   :  { %31 = dma.hbm_to_vmem [thread:$0]  %s4098_s2, 2048, %s26_s30, [#allocation5], %s3342_s10, %s3342_s10, %s3343_s11  }
  0x17   :  { %s3344_s17 = smov [#allocation9]  }
  0x18   :  { %s49_s18 = sshll.u32 %s3344_s17, 4  ;;  %s50_s18 = int_to_ptr.vmem [resolvable:$true] %s49_s18 }
  0x19   :  { %s3302_s19 = scalar_lea.vmem %s50_s18, 3072  ;;  %p3307_p11 = scmp.lt.s32.totalorder %s50_s18, %s50_s18 }
  0x1a   :  { %p3303_p10 = scmp.ne.s32.totalorder %s50_s18, %s3302_s19  ;;  %p3308_p12 = scmp.lt.s32.totalorder %s3302_s19, %s3302_s19 }
  0x1c   :  { %p3309_p13 = por %p3308_p12, %p3307_p11 }
  0x1e   :  { %p3310_p0 = pnand %p3309_p13, %p3303_p10 }
  0x20   :  { %3313 = shalt.err (!%p3310_p0)
}
  0x21   :  { %55 = dma.hbm_to_vmem [thread:$0]  %s4100_s4, 3072, %s50_s18, [#allocation8], %s3342_s10, %s3342_s10, %s3343_s11  }
  0x22   :  { %3334 = dma.done.wait [#allocation5], 2048  }
  0x23   :  { %3335 = vsyncadd [#allocation5], 4294965248 }
  0x24   :  { %3336 = dma.done.wait [#allocation8], 5120  }
  0x25   :  { %3337 = vsyncadd [#allocation8], 4294962176  ;;  %v3345_v0 = vmov 0.0   ;;  %v79_v1 = vld [vmem:[%s4097_s1 + $0x18] sm:$0xff]  ;;  %v78_v2 = vld [vmem:[%s4097_s1 + $0x10] sm:$0xff]  ;;  %vm92_vm0 = vcmask 130048   ;;  %v71_v7 = vlaneseq }
  0x26   :  { %163 = vmatprep.mubr.f32.mxu1 %v3345_v0  ;;  %429 = vmatprep.mubr.f32.mxu0 %v3345_v0  ;;  %v77_v3 = vld [vmem:[%s4097_s1 + $0x8] sm:$0xff]  ;;  %v76_v4 = vld [vmem:[%s4097_s1] sm:$0xff]  ;;  %vm179_vm1 = vcmask 1041408   ;;  %v3463_v49 = vld [vmem:[#allocation9 + $0x38] sm:$0xff]  ;;  %s3347_s10 = smov 64   ;;  %s3348_s11 = smov 32  }
  0x27   :  { %127 = vmatprep.subr.mxu1 %v79_v1  ;;  %v74_v5 = vld [vmem:[%s4096_s0] sm:$0xff]  ;;  %v75_v6 = vld [vmem:[%s4096_s0 + $0x8] sm:$0xff]  ;;  %v3427_v8 = vshrl.u32 %v71_v7, 7  ;;  %s3346_s0 = smov 96   ;;  %v3465_v50 = vld [vmem:[#allocation9 + $0x30] sm:$0xff]  ;;  %389 = vmatprep.subr.mxu0 %v3463_v49  ;;  %vm243_vm2 = vcmask 254976  }
  0x28   :  { %128 = vmatpush1.msra.mxu1 %v78_v2  ;;  %v80_v10 = vld [vmem:[%s4101_s5] sm:$0x3]  ;;  %v3467_v51 = vld [vmem:[#allocation9 + $0x28] sm:$0xff]  ;;  %v3474_v53 = vld [vmem:[#allocation9 + $0x18] sm:$0xff]  ;;  %390 = vmatpush1.msra.mxu0 %v3465_v50  ;;  %vm250_vm3 = vcmask 261120   ;;  %vm248_vm5 = vcmask 519426  }
  0x29   :  { %129 = vmatprep.subr.mxu1 %v77_v3  ;;  %v3430_v9 = vsub.s32 0, %v3427_v8  ;;  %v3436_v11 = vsub.s32 1, %v3427_v8  ;;  %v3470_v52 = vld [vmem:[#allocation9 + $0x20] sm:$0xff]  ;;  %v3478_v54 = vld [vmem:[#allocation9 + $0x10] sm:$0xff]  ;;  %391 = vmatprep.subr.mxu0 %v3467_v51  ;;  %v3482_v55 = vld [vmem:[#allocation9 + $0x8] sm:$0xff]  ;;  %vm73_vm4 = vcmp.lt.s32.totalorder %v3427_v8, 2 }
  0x2a   :  { %130 = vmatpush1.msra.mxu1 %v76_v4  ;;  %392 = vmatpush1.msra.mxu0 %v3470_v52  ;;  %v3486_v56 = vld [vmem:[#allocation9] sm:$0xff]  ;;  %vm1042_vm6 = vcmask 523264   ;;  %vm3349_vm7 = vmmov 0   ;;  %vm2950_vm8 = vcmask 9216  }
  0x2b   :  { %2968 = vmatmul.mubr.msk.f32.vlgmr.msra.gmra.mxu1 %vm92_vm0, %v74_v5  ;;  %v85_v12 = vrot.slane %v80_v10, %v3430_v9  ;;  %v89_v13 = vrot.slane %v80_v10, %v3436_v11  ;;  %277 = vmatprep.subr.mxu1 %v3463_v49 }
  0x2c   :  { %169 = vmatprep.mubr.f32.mxu1 %v3345_v0  ;;  %278 = vmatpush1.msra.mxu1 %v3465_v50 }
  0x2d   :  { %279 = vmatprep.subr.mxu1 %v3467_v51  ;;  %393 = vmatprep.subr.mxu0 %v3474_v53 }
  0x2e   :  { %280 = vmatpush1.msra.mxu1 %v3470_v52  ;;  %394 = vmatpush1.msra.mxu0 %v3478_v54 }
  0x2f   :  { %2969 = vmatmul.mubr.msk.f32.gmra.mxu1 %vm92_vm0, %v75_v6  ;;  %281 = vmatprep.subr.mxu1 %v3474_v53 }
  0x30   :  { %317 = vmatprep.mubr.f32.mxu1 %v3345_v0  ;;  %282 = vmatpush1.msra.mxu1 %v3478_v54 }
  0x31   :  { %283 = vmatprep.subr.mxu1 %v3482_v55  ;;  %395 = vmatprep.subr.mxu0 %v3482_v55 }
  0x32   :  { %284 = vmatpush1.msra.mxu1 %v3486_v56  ;;  %396 = vmatpush1.msra.mxu0 %v3486_v56 }
  0x33   :  { %497 = vmatprep.subr.mxu1 %v3463_v49  ;;  %605 = vmatprep.subr.mxu0 %v3463_v49 }
  0xeb   :  { %v165_v14 = vpop.f32.mrf.mxu1 }
  0xec   :  { %v166_v15 = vadd.f32 %v165_v14, %v85_v12 }
  0xed   :  { %v167_v16 = vpop.f32.mrf.mxu1 }
  0xee   :  { %v168_v17 = vadd.f32 %v167_v16, %v89_v13  ;;  %v182_v22 = vrot.slane %v166_v15, 2  ;;  %v187_v23 = vrot.slane %v166_v15, 4  ;;  %v190_v28 = vrot.slane %v166_v15, 6 }
  0xef   :  { %v171_v18 = vpop.f32.mrf.mxu1 }
  0xf0   :  { %v172_v19 = vadd.f32 %v171_v18, %v85_v12  ;;  %v196_v20 = vrot.slane %v168_v17, 4  ;;  %v202_v29 = vrot.slane %v168_v17, 2  ;;  %v210_v31 = vrot.slane %v168_v17, 6 }
  0xf1   :  { %v173_v21 = vpop.f32.mrf.mxu1 }
  0xf2   :  { %v174_v24 = vadd.f32 %v173_v21, %v89_v13  ;;  %v3441_v25 = vsel %vm179_vm1, %v172_v19, %v196_v20  ;;  %v200_v26 = vrot.slane %v172_v19, 2  ;;  %v205_v27 = vrot.slane %v172_v19, 4 }
  0xf3   :  { %v208_v30 = vrot.slane %v172_v19, 6 }
  0xf4   :  { %v177_v32 = vrot.slane %v174_v24, 4  ;;  %v184_v33 = vrot.slane %v174_v24, 2  ;;  %v3444_v34 = vsel %vm179_vm1, %v187_v23, %v174_v24  ;;  %v192_v35 = vrot.slane %v174_v24, 6 }
  0xf5   :  { %v3447_v36 = vsel %vm179_vm1, %v200_v26, %v202_v29  ;;  %v3450_v37 = vsel %vm179_vm1, %v205_v27, %v168_v17  ;;  %v3453_v38 = vsel %vm179_vm1, %v208_v30, %v210_v31 }
  0xf6   :  { %v180_v39 = vsel %vm179_vm1, %v166_v15, %v177_v32  ;;  %v3457_v40 = vsel %vm179_vm1, %v182_v22, %v184_v33  ;;  %v3460_v41 = vsel %vm179_vm1, %v190_v28, %v192_v35 }
  0xf7   :  { %3062 = vtanh.f32 %v180_v39  ;;  %v2970_v43 = vmul.f32 -1.442695, %v180_v39 }
  0xf9   :  { %3064 = vpow2.f32 %v2970_v43 }
 0x104   :  { %v3063_v42 = vpop.eup %3062 }
 0x105   :  { %229 = vrot.lane.b32.xlu0 %v3063_v42, %s3346_s0 }
 0x106   :  { %v3065_v44 = vpop.eup %3064 }
 0x107   :  { %v224_v45 = vadd.f32 1.0, %v3065_v44 }
 0x109   :  { %3066 = vrcp.f32 %v224_v45 }
 0x116   :  { %v3067_v46 = vpop.eup %3066 }
 0x177   :  { %v230_v47 = vpop.permute.xlu0 %229 }
 0x178   :  { %v232_v48 = vmul.f32 %v3067_v46, %v230_v47 }
 0x17a   :  { %3068 = vtanh.f32 %v232_v48 }
 0x187   :  { %v3069_v57 = vpop.eup %3068 }
 0x188   :  { %235 = vrot.lane.b32.xlu0 %v3069_v57, %s3347_s10 }
 0x18c   :  { %334 = vrot.lane.b32.xlu0 %v232_v48, %s3346_s0 }
 0x1fa   :  { %v236_v58 = vpop.permute.xlu0 %235 }
 0x1fb   :  { %v3499_v59 = vmul.f32 %v3067_v46, %v236_v58 }
 0x1fd   :  { %240 = vrot.lane.b32.xlu1 %v3499_v59, %s3348_s11 }
 0x1fe   :  { %v335_v12 = vpop.permute.xlu0 %334 }
 0x26f   :  { %v241_v60 = vpop.permute.xlu1 %240 }
 0x270   :  { %244 = vst.msk [vmem:[#allocation2] sm:$0x3] %vm243_vm2, %v241_v60  ;;  %2971 = vmatmul.mubr.msk.f32.vlgmr.msra.gmra.mxu1 %vm250_vm3, %v241_v60 }
 0x271   :  { %498 = vmatpush1.msra.mxu1 %v3465_v50  ;;  %537 = vmatprep.mubr.f32.mxu1 %v3345_v0 }
 0x272   :  { %499 = vmatprep.subr.mxu1 %v3467_v51 }
 0x273   :  { %500 = vmatpush1.msra.mxu1 %v3470_v52 }
 0x274   :  { %501 = vmatprep.subr.mxu1 %v3474_v53 }
 0x275   :  { %502 = vmatpush1.msra.mxu1 %v3478_v54 }
 0x276   :  { %503 = vmatprep.subr.mxu1 %v3482_v55 }
 0x277   :  { %504 = vmatpush1.msra.mxu1 %v3486_v56 }
 0x278   :  { %713 = vmatprep.subr.mxu1 %v3463_v49 }
 0x330   :  { %v319_v61 = vpop.f32.mrf.mxu1 }
 0x332   :  { %v321_v62 = vpop.f32.mrf.mxu1 }
 0x333   :  { %v324_v63 = vsel %vm73_vm4, %v319_v61, %v321_v62 }
 0x334   :  { %v325_v1 = vadd.f32 %v324_v63, %v3457_v40 }
 0x336   :  { %3070 = vtanh.f32 %v325_v1  ;;  %v2972_v3 = vmul.f32 -1.442695, %v325_v1 }
 0x338   :  { %3072 = vpow2.f32 %v2972_v3 }
 0x343   :  { %v3071_v2 = vpop.eup %3070 }
 0x344   :  { %339 = vrot.lane.b32.xlu1 %v3071_v2, %s3346_s0 }
 0x345   :  { %v3073_v4 = vpop.eup %3072 }
 0x346   :  { %v329_v5 = vadd.f32 1.0, %v3073_v4 }
 0x348   :  { %3074 = vrcp.f32 %v329_v5 }
 0x355   :  { %v3075_v6 = vpop.eup %3074 }
 0x356   :  { %v337_v13 = vmul.f32 %v3075_v6, %v335_v12 }
 0x3b6   :  { %v340_v7 = vpop.permute.xlu1 %339 }
 0x3b7   :  { %v342_v10 = vmul.f32 %v3075_v6, %v340_v7 }
 0x3b9   :  { %344 = vrot.lane.b32.xlu1 %v342_v10, %s3346_s0 }
 0x42b   :  { %v345_v14 = vpop.permute.xlu1 %344 }
 0x42c   :  { %v347_v15 = vadd.f32 %v345_v14, %v337_v13 }
 0x42e   :  { %3076 = vtanh.f32 %v347_v15 }
 0x43b   :  { %v3077_v16 = vpop.eup %3076 }
 0x43c   :  { %350 = vrot.lane.b32.xlu0 %v3077_v16, %s3346_s0 }
 0x4ae   :  { %v351_v17 = vpop.permute.xlu0 %350 }
 0x4af   :  { %v3521_v18 = vmul.f32 %v3075_v6, %v351_v17 }
 0x4b1   :  { %355 = vrot.lane.b32.xlu1 %v3521_v18, %s3348_s11 }
 0x523   :  { %v356_v19 = vpop.permute.xlu1 %355 }
 0x524   :  { %358 = vst.msk [vmem:[#allocation2 + $0x2] sm:$0x3] %vm243_vm2, %v356_v19  ;;  %2973 = vmatmul.mubr.msk.f32.vlgmr.msra.gmra.mxu0 %vm250_vm3, %v356_v19 }
 0x525   :  { %606 = vmatpush1.msra.mxu0 %v3465_v50  ;;  %645 = vmatprep.mubr.f32.mxu0 %v3345_v0 }
 0x526   :  { %607 = vmatprep.subr.mxu0 %v3467_v51 }
 0x527   :  { %608 = vmatpush1.msra.mxu0 %v3470_v52 }
 0x528   :  { %609 = vmatprep.subr.mxu0 %v3474_v53 }
 0x529   :  { %610 = vmatpush1.msra.mxu0 %v3478_v54 }
 0x52a   :  { %611 = vmatprep.subr.mxu0 %v3482_v55 }
 0x52b   :  { %612 = vmatpush1.msra.mxu0 %v3486_v56 }
 0x52c   :  { %821 = vmatprep.subr.mxu0 %v3463_v49 }
 0x5e4   :  { %v431_v20 = vpop.f32.mrf.mxu0 }
 0x5e6   :  { %v433_v21 = vpop.f32.mrf.mxu0 }
 0x5e7   :  { %v436_v22 = vsel %vm73_vm4, %v431_v20, %v433_v21 }
 0x5e8   :  { %v437_v23 = vadd.f32 %v436_v22, %v3444_v34 }
 0x5ea   :  { %3078 = vtanh.f32 %v437_v23  ;;  %v2974_v26 = vmul.f32 -1.442695, %v437_v23 }
 0x5ec   :  { %3080 = vpow2.f32 %v2974_v26 }
 0x5f7   :  { %v3079_v24 = vpop.eup %3078 }
 0x5f8   :  { %447 = vrot.lane.b32.xlu0 %v3079_v24, %s3346_s0 }
 0x5f9   :  { %v3081_v27 = vpop.eup %3080 }
 0x5fa   :  { %v441_v28 = vadd.f32 1.0, %v3081_v27 }
 0x5fc   :  { %3082 = vrcp.f32 %v441_v28 }
 0x609   :  { %v3083_v29 = vpop.eup %3082 }
 0x60a   :  { %v445_v32 = vmul.f32 %v3083_v29, %v347_v15 }
 0x66a   :  { %v448_v30 = vpop.permute.xlu0 %447 }
 0x66b   :  { %v450_v31 = vmul.f32 %v3083_v29, %v448_v30 }
 0x66d   :  { %452 = vrot.lane.b32.xlu1 %v450_v31, %s3346_s0 }
 0x6df   :  { %v453_v33 = vpop.permute.xlu1 %452 }
 0x6e0   :  { %v455_v35 = vadd.f32 %v453_v33, %v445_v32 }
 0x6e2   :  { %3084 = vtanh.f32 %v455_v35 }
 0x6ef   :  { %v3085_v39 = vpop.eup %3084 }
 0x6f0   :  { %458 = vrot.lane.b32.xlu0 %v3085_v39, %s3346_s0 }
 0x762   :  { %v459_v34 = vpop.permute.xlu0 %458 }
 0x763   :  { %v3542_v40 = vmul.f32 %v3083_v29, %v459_v34 }
 0x765   :  { %463 = vrot.lane.b32.xlu1 %v3542_v40, %s3348_s11 }
 0x7d7   :  { %v464_v42 = vpop.permute.xlu1 %463 }
 0x7d8   :  { %466 = vst.msk [vmem:[#allocation2 + $0x4] sm:$0x3] %vm243_vm2, %v464_v42  ;;  %2975 = vmatmul.mubr.msk.f32.vlgmr.msra.gmra.mxu1 %vm250_vm3, %v464_v42 }
 0x7d9   :  { %714 = vmatpush1.msra.mxu1 %v3465_v50  ;;  %753 = vmatprep.mubr.f32.mxu1 %v3345_v0 }
 0x7da   :  { %715 = vmatprep.subr.mxu1 %v3467_v51 }
 0x7db   :  { %716 = vmatpush1.msra.mxu1 %v3470_v52 }
 0x7dc   :  { %717 = vmatprep.subr.mxu1 %v3474_v53 }
 0x7dd   :  { %718 = vmatpush1.msra.mxu1 %v3478_v54 }
 0x7de   :  { %719 = vmatprep.subr.mxu1 %v3482_v55 }
 0x7df   :  { %720 = vmatpush1.msra.mxu1 %v3486_v56 }
 0x7e0   :  { %929 = vmatprep.subr.mxu1 %v3463_v49 }
 0x898   :  { %v539_v43 = vpop.f32.mrf.mxu1 }
 0x89a   :  { %v541_v44 = vpop.f32.mrf.mxu1 }
 0x89b   :  { %v544_v45 = vsel %vm73_vm4, %v539_v43, %v541_v44 }
 0x89c   :  { %v545_v46 = vadd.f32 %v544_v45, %v3460_v41 }
 0x89e   :  { %3086 = vtanh.f32 %v545_v46  ;;  %v2976_v48 = vmul.f32 -1.442695, %v545_v46 }
 0x8a0   :  { %3088 = vpow2.f32 %v2976_v48 }
 0x8ab   :  { %v3087_v47 = vpop.eup %3086 }
 0x8ac   :  { %555 = vrot.lane.b32.xlu0 %v3087_v47, %s3346_s0 }
 0x8ad   :  { %v3089_v57 = vpop.eup %3088 }
 0x8ae   :  { %v549_v58 = vadd.f32 1.0, %v3089_v57 }
 0x8b0   :  { %3090 = vrcp.f32 %v549_v58 }
 0x8bd   :  { %v3091_v60 = vpop.eup %3090 }
 0x8be   :  { %v553_v49 = vmul.f32 %v3091_v60, %v455_v35 }
 0x91e   :  { %v556_v61 = vpop.permute.xlu0 %555 }
 0x91f   :  { %v558_v62 = vmul.f32 %v3091_v60, %v556_v61 }
 0x921   :  { %560 = vrot.lane.b32.xlu1 %v558_v62, %s3346_s0 }
 0x993   :  { %v561_v63 = vpop.permute.xlu1 %560 }
 0x994   :  { %v563_v1 = vadd.f32 %v561_v63, %v553_v49 }
 0x996   :  { %3092 = vtanh.f32 %v563_v1 }
 0x9a3   :  { %v3093_v2 = vpop.eup %3092 }
 0x9a4   :  { %566 = vrot.lane.b32.xlu0 %v3093_v2, %s3346_s0 }
 0xa16   :  { %v567_v41 = vpop.permute.xlu0 %566 }
 0xa17   :  { %v3563_v3 = vmul.f32 %v3091_v60, %v567_v41 }
 0xa19   :  { %571 = vrot.lane.b32.xlu1 %v3563_v3, %s3348_s11 }
 0xa8b   :  { %v572_v4 = vpop.permute.xlu1 %571 }
 0xa8c   :  { %574 = vst.msk [vmem:[#allocation2 + $0x6] sm:$0x3] %vm243_vm2, %v572_v4  ;;  %2977 = vmatmul.mubr.msk.f32.vlgmr.msra.gmra.mxu0 %vm250_vm3, %v572_v4 }
 0xa8d   :  { %822 = vmatpush1.msra.mxu0 %v3465_v50  ;;  %861 = vmatprep.mubr.f32.mxu0 %v3345_v0 }
 0xa8e   :  { %823 = vmatprep.subr.mxu0 %v3467_v51 }
 0xa8f   :  { %824 = vmatpush1.msra.mxu0 %v3470_v52 }
 0xa90   :  { %825 = vmatprep.subr.mxu0 %v3474_v53 }
 0xa91   :  { %826 = vmatpush1.msra.mxu0 %v3478_v54 }
 0xa92   :  { %827 = vmatprep.subr.mxu0 %v3482_v55 }
 0xa93   :  { %828 = vmatpush1.msra.mxu0 %v3486_v56 }
 0xb4c   :  { %v647_v5 = vpop.f32.mrf.mxu0 }
 0xb4e   :  { %v649_v6 = vpop.f32.mrf.mxu0 }
 0xb4f   :  { %v652_v7 = vsel %vm73_vm4, %v647_v5, %v649_v6 }
 0xb50   :  { %v653_v10 = vadd.f32 %v652_v7, %v3441_v25 }
 0xb52   :  { %3094 = vtanh.f32 %v653_v10  ;;  %v2978_v13 = vmul.f32 -1.442695, %v653_v10 }
 0xb54   :  { %3096 = vpow2.f32 %v2978_v13 }
 0xb5f   :  { %v3095_v12 = vpop.eup %3094 }
 0xb60   :  { %663 = vrot.lane.b32.xlu0 %v3095_v12, %s3346_s0 }
 0xb61   :  { %v3097_v14 = vpop.eup %3096 }
 0xb62   :  { %v657_v15 = vadd.f32 1.0, %v3097_v14 }
 0xb64   :  { %3098 = vrcp.f32 %v657_v15 }
 0xb71   :  { %v3099_v16 = vpop.eup %3098 }
 0xb72   :  { %v661_v20 = vmul.f32 %v3099_v16, %v563_v1 }
 0xbd2   :  { %v664_v17 = vpop.permute.xlu0 %663 }
 0xbd3   :  { %v666_v19 = vmul.f32 %v3099_v16, %v664_v17 }
 0xbd5   :  { %668 = vrot.lane.b32.xlu1 %v666_v19, %s3346_s0 }
 0xc47   :  { %v669_v21 = vpop.permute.xlu1 %668 }
 0xc48   :  { %v671_v22 = vadd.f32 %v669_v21, %v661_v20 }
 0xc4a   :  { %3100 = vtanh.f32 %v671_v22 }
 0xc57   :  { %v3101_v23 = vpop.eup %3100 }
 0xc58   :  { %674 = vrot.lane.b32.xlu0 %v3101_v23, %s3346_s0 }
 0xcca   :  { %v675_v25 = vpop.permute.xlu0 %674 }
 0xccb   :  { %v3583_v24 = vmul.f32 %v3099_v16, %v675_v25  ;;  %v1028_v25 = vld [vmem:[#allocation4 + $0x78] sm:$0xff] }
 0xccc   :  { %1065 = vmatprep.subr.mxu0 %v1028_v25 }
 0xccd   :  { %679 = vrot.lane.b32.xlu1 %v3583_v24, %s3348_s11 }
 0xd3f   :  { %v3587_v26 = vpop.permute.xlu1 %679 }
 0xd40   :  { %2979 = vmatmul.mubr.msk.f32.vlgmr.msra.gmra.mxu1 %vm250_vm3, %v3587_v26 }
 0xd41   :  { %930 = vmatpush1.msra.mxu1 %v3465_v50  ;;  %969 = vmatprep.mubr.f32.mxu1 %v3345_v0 }
 0xd42   :  { %931 = vmatprep.subr.mxu1 %v3467_v51 }
 0xd43   :  { %932 = vmatpush1.msra.mxu1 %v3470_v52 }
 0xd44   :  { %933 = vmatprep.subr.mxu1 %v3474_v53 }
 0xd45   :  { %934 = vmatpush1.msra.mxu1 %v3478_v54 }
 0xd46   :  { %935 = vmatprep.subr.mxu1 %v3482_v55 }
 0xd47   :  { %936 = vmatpush1.msra.mxu1 %v3486_v56 }
 0xe00   :  { %v755_v27 = vpop.f32.mrf.mxu1 }
 0xe02   :  { %v757_v28 = vpop.f32.mrf.mxu1 }
 0xe03   :  { %v760_v29 = vsel %vm73_vm4, %v755_v27, %v757_v28  ;;  %v1025_v27 = vld [vmem:[#allocation4 + $0x60] sm:$0xff] }
 0xe04   :  { %v761_v50 = vadd.f32 %v760_v29, %v3447_v36 }
 0xe06   :  { %3102 = vtanh.f32 %v761_v50  ;;  %v2980_v51 = vmul.f32 -1.442695, %v761_v50  ;;  %v1023_v50 = vld [vmem:[#allocation4 + $0x50] sm:$0xff] }
 0xe08   :  { %3104 = vpow2.f32 %v2980_v51  ;;  %v1021_v51 = vld [vmem:[#allocation4 + $0x40] sm:$0xff] }
 0xe13   :  { %v3103_v30 = vpop.eup %3102 }
 0xe14   :  { %771 = vrot.lane.b32.xlu0 %v3103_v30, %s3346_s0  ;;  %v1022_v30 = vld [vmem:[#allocation4 + $0x48] sm:$0xff] }
 0xe15   :  { %v3105_v52 = vpop.eup %3104 }
 0xe16   :  { %v765_v53 = vadd.f32 1.0, %v3105_v52  ;;  %v1020_v52 = vld [vmem:[#allocation4 + $0x38] sm:$0xff] }
 0xe18   :  { %3106 = vrcp.f32 %v765_v53  ;;  %v1019_v53 = vld [vmem:[#allocation4 + $0x30] sm:$0xff] }
 0xe25   :  { %v3107_v54 = vpop.eup %3106 }
 0xe26   :  { %v769_v56 = vmul.f32 %v3107_v54, %v671_v22 }
 0xe86   :  { %v772_v55 = vpop.permute.xlu0 %771 }
 0xe87   :  { %v774_v31 = vmul.f32 %v3107_v54, %v772_v55  ;;  %v1017_v55 = vld [vmem:[#allocation4 + $0x20] sm:$0xff] }
 0xe89   :  { %776 = vrot.lane.b32.xlu1 %v774_v31, %s3346_s0  ;;  %v1016_v31 = vld [vmem:[#allocation4 + $0x18] sm:$0xff] }
 0xefb   :  { %v777_v32 = vpop.permute.xlu1 %776 }
 0xefc   :  { %v779_v33 = vadd.f32 %v777_v32, %v769_v56  ;;  %v1015_v56 = vld [vmem:[#allocation4 + $0x10] sm:$0xff]  ;;  %v1014_v32 = vld [vmem:[#allocation4 + $0x8] sm:$0xff] }
 0xefe   :  { %3108 = vtanh.f32 %v779_v33 }
 0xf0b   :  { %v3109_v35 = vpop.eup %3108 }
 0xf0c   :  { %782 = vrot.lane.b32.xlu0 %v3109_v35, %s3346_s0 }
 0xf7e   :  { %v783_v36 = vpop.permute.xlu0 %782 }
 0xf7f   :  { %v3605_v39 = vmul.f32 %v3107_v54, %v783_v36  ;;  %v1018_v54 = vld [vmem:[#allocation4 + $0x28] sm:$0xff] }
 0xf81   :  { %787 = vrot.lane.b32.xlu1 %v3605_v39, %s3348_s11 }
 0xff3   :  { %v3609_v34 = vpop.permute.xlu1 %787 }
 0xff4   :  { %2981 = vmatmul.mubr.msk.f32.vlgmr.msra.gmra.mxu0 %vm250_vm3, %v3609_v34 }
 0xff5   :  { %1113 = vmatprep.mubr.f32.mxu0 %v3345_v0 }
0x10b4   :  { %v863_v42 = vpop.f32.mrf.mxu0 }
0x10b6   :  { %v865_v43 = vpop.f32.mrf.mxu0 }
0x10b7   :  { %v868_v44 = vsel %vm73_vm4, %v863_v42, %v865_v43 }
0x10b8   :  { %v869_v45 = vadd.f32 %v868_v44, %v3450_v37 }
0x10ba   :  { %3110 = vtanh.f32 %v869_v45  ;;  %v2982_v47 = vmul.f32 -1.442695, %v869_v45  ;;  %v2985_v45 = vld [vmem:[%s4101_s5 + $0x2] sm:$0x3] }
0x10bc   :  { %3112 = vpow2.f32 %v2982_v47  ;;  %v1039_v47 = vrot.slane %v2985_v45, %v3436_v11 }
0x10c7   :  { %v3111_v46 = vpop.eup %3110 }
0x10c8   :  { %879 = vrot.lane.b32.xlu0 %v3111_v46, %s3346_s0  ;;  %v1035_v46 = vrot.slane %v2985_v45, %v3430_v9 }
0x10c9   :  { %v3113_v48 = vpop.eup %3112 }
0x10ca   :  { %v873_v57 = vadd.f32 1.0, %v3113_v48 }
0x10cc   :  { %3114 = vrcp.f32 %v873_v57 }
0x10d9   :  { %v3115_v58 = vpop.eup %3114 }
0x10da   :  { %v877_v62 = vmul.f32 %v3115_v58, %v779_v33  ;;  %v1013_v33 = vld [vmem:[#allocation4] sm:$0xff] }
0x113a   :  { %v880_v60 = vpop.permute.xlu0 %879 }
0x113b   :  { %v882_v61 = vmul.f32 %v3115_v58, %v880_v60 }
0x113d   :  { %884 = vrot.lane.b32.xlu1 %v882_v61, %s3346_s0 }
0x11af   :  { %v885_v49 = vpop.permute.xlu1 %884 }
0x11b0   :  { %v887_v63 = vadd.f32 %v885_v49, %v877_v62 }
0x11b2   :  { %3116 = vtanh.f32 %v887_v63 }
0x11bf   :  { %v3117_v1 = vpop.eup %3116 }
0x11c0   :  { %890 = vrot.lane.b32.xlu0 %v3117_v1, %s3346_s0 }
0x1232   :  { %v891_v37 = vpop.permute.xlu0 %890 }
0x1233   :  { %v893_v2 = vmul.f32 %v3115_v58, %v891_v37 }
0x1235   :  { %895 = vrot.lane.b32.xlu1 %v893_v2, %s3348_s11 }
0x12a7   :  { %v3621_v41 = vpop.permute.xlu1 %895 }
0x12a8   :  { %2983 = vmatmul.mubr.msk.f32.vlgmr.msra.gmra.mxu1 %vm250_vm3, %v3621_v41 }
0x12a9   :  { %1264 = vmatprep.mubr.f32.mxu1 %v3345_v0 }
0x1368   :  { %v971_v4 = vpop.f32.mrf.mxu1 }
0x136a   :  { %v973_v5 = vpop.f32.mrf.mxu1 }
0x136b   :  { %v976_v6 = vsel %vm73_vm4, %v971_v4, %v973_v5 }
0x136c   :  { %v977_v7 = vadd.f32 %v976_v6, %v3453_v38 }
0x136e   :  { %3118 = vtanh.f32 %v977_v7  ;;  %v2984_v12 = vmul.f32 -1.442695, %v977_v7 }
0x1370   :  { %3120 = vpow2.f32 %v2984_v12 }
0x137b   :  { %v3119_v10 = vpop.eup %3118 }
0x137c   :  { %987 = vrot.lane.b32.xlu0 %v3119_v10, %s3346_s0 }
0x137d   :  { %v3121_v13 = vpop.eup %3120 }
0x137e   :  { %v981_v14 = vadd.f32 1.0, %v3121_v13 }
0x1380   :  { %3122 = vrcp.f32 %v981_v14 }
0x138d   :  { %v3123_v15 = vpop.eup %3122 }
0x138e   :  { %v985_v38 = vmul.f32 %v3123_v15, %v887_v63 }
0x13ee   :  { %v988_v16 = vpop.permute.xlu0 %987 }
0x13ef   :  { %v990_v17 = vmul.f32 %v3123_v15, %v988_v16 }
0x13f1   :  { %992 = vrot.lane.b32.xlu1 %v990_v17, %s3346_s0 }
0x13f5   :  { %683 = vrot.lane.b32.xlu1 %v3583_v24, %s3347_s10  ;;  %v1027_v24 = vld [vmem:[#allocation4 + $0x70] sm:$0xff] }
0x13f6   :  { %1066 = vmatpush1.msra.mxu0 %v1027_v24 }
0x13f9   :  { %899 = vrot.lane.b32.xlu1 %v893_v2, %s3347_s10 }
0x13fd   :  { %245 = vrot.lane.b32.xlu1 %v3499_v59, %s3347_s10  ;;  %v1026_v59 = vld [vmem:[#allocation4 + $0x68] sm:$0xff] }
0x13fe   :  { %1067 = vmatprep.subr.mxu0 %v1026_v59 }
0x13ff   :  { %1068 = vmatpush1.msra.mxu0 %v1025_v27 }
0x1401   :  { %467 = vrot.lane.b32.xlu1 %v3542_v40, %s3347_s10  ;;  %v1024_v40 = vld [vmem:[#allocation4 + $0x58] sm:$0xff] }
0x1402   :  { %1069 = vmatprep.subr.mxu0 %v1024_v40 }
0x1403   :  { %1070 = vmatpush1.msra.mxu0 %v1023_v50  ;;  %v3696_v50 = vld [vmem:[#allocation9 + $0x68] sm:$0xff] }
0x1404   :  { %1071 = vmatprep.subr.mxu0 %v1022_v30  ;;  %v3699_v30 = vld [vmem:[#allocation9 + $0x60] sm:$0xff] }
0x1405   :  { %1072 = vmatpush1.msra.mxu0 %v1021_v51  ;;  %v3703_v51 = vld [vmem:[#allocation9 + $0x58] sm:$0xff] }
0x1406   :  { %1073 = vmatprep.subr.mxu0 %v1020_v52  ;;  %v3707_v52 = vld [vmem:[#allocation9 + $0x50] sm:$0xff] }
0x1407   :  { %1074 = vmatpush1.msra.mxu0 %v1019_v53  ;;  %v3711_v53 = vld [vmem:[#allocation9 + $0x48] sm:$0xff] }
0x1408   :  { %1075 = vmatprep.subr.mxu0 %v1018_v54  ;;  %v3715_v54 = vld [vmem:[#allocation9 + $0x40] sm:$0xff] }
0x1409   :  { %1076 = vmatpush1.msra.mxu0 %v1017_v55 }
0x140a   :  { %1077 = vmatprep.subr.mxu0 %v1016_v31 }
0x140b   :  { %1078 = vmatpush1.msra.mxu0 %v1015_v56 }
0x140c   :  { %1079 = vmatprep.subr.mxu0 %v1014_v32 }
0x140d   :  { %1080 = vmatpush1.msra.mxu0 %v1013_v33 }
0x1463   :  { %v993_v19 = vpop.permute.xlu1 %992 }
0x1464   :  { %v995_v20 = vadd.f32 %v993_v19, %v985_v38 }
0x1466   :  { %3124 = vtanh.f32 %v995_v20 }
0x1467   :  { %v684_v21 = vpop.permute.xlu1 %683 }
0x1468   :  { %686 = vst.msk [vmem:[#allocation2 + $0x4] sm:$0xc] %vm248_vm5, %v684_v21 }
0x146b   :  { %v900_v22 = vpop.permute.xlu1 %899 }
0x146c   :  { %902 = vst.msk [vmem:[#allocation2] sm:$0xc] %vm248_vm5, %v900_v22 }
0x146f   :  { %v246_v23 = vpop.permute.xlu1 %245 }
0x1470   :  { %249 = vst.msk [vmem:[#allocation2 + $0xc] sm:$0xc] %vm248_vm5, %v246_v23 }
0x1473   :  { %v3125_v28 = vpop.eup %3124  ;;  %v468_v29 = vpop.permute.xlu1 %467 }
0x1474   :  { %470 = vst.msk [vmem:[#allocation2 + $0x8] sm:$0xc] %vm248_vm5, %v468_v29  ;;  %998 = vrot.lane.b32.xlu0 %v3125_v28, %s3346_s0  ;;  %v3692_v28 = vld [vmem:[#allocation9 + $0x78] sm:$0xff]  ;;  %v3694_v29 = vld [vmem:[#allocation9 + $0x70] sm:$0xff] }
0x1475   :  { %790 = vst.msk [vmem:[#allocation2 + $0xa] sm:$0x3] %vm243_vm2, %v3609_v34  ;;  %1224 = vmatprep.subr.mxu1 %v3692_v28  ;;  %1444 = vmatprep.subr.mxu0 %v3692_v28 }
0x1476   :  { %1225 = vmatpush1.msra.mxu1 %v3694_v29 }
0x1477   :  { %1226 = vmatprep.subr.mxu1 %v3696_v50 }
0x1478   :  { %791 = vrot.lane.b32.xlu0 %v3605_v39, %s3347_s10  ;;  %1227 = vmatpush1.msra.mxu1 %v3699_v30 }
0x1479   :  { %1228 = vmatprep.subr.mxu1 %v3703_v51 }
0x147a   :  { %1229 = vmatpush1.msra.mxu1 %v3707_v52 }
0x147b   :  { %1230 = vmatprep.subr.mxu1 %v3711_v53 }
0x147c   :  { %359 = vrot.lane.b32.xlu0 %v3521_v18, %s3347_s10  ;;  %1231 = vmatpush1.msra.mxu1 %v3715_v54 }
0x147d   :  { %1336 = vmatprep.subr.mxu1 %v3692_v28 }
0x14e6   :  { %v999_v35 = vpop.permute.xlu0 %998 }
0x14e7   :  { %v1001_v36 = vmul.f32 %v3123_v15, %v999_v35 }
0x14e9   :  { %1003 = vrot.lane.b32.xlu1 %v1001_v36, %s3348_s11  ;;  %1007 = vrot.lane.b32.xlu0 %v1001_v36, %s3347_s10 }
0x14ea   :  { %v792_v18 = vpop.permute.xlu0 %791 }
0x14eb   :  { %794 = vst.msk [vmem:[#allocation2 + $0x2] sm:$0xc] %vm248_vm5, %v792_v18 }
0x14ed   :  { %575 = vrot.lane.b32.xlu0 %v3563_v3, %s3347_s10 }
0x14ee   :  { %v360_v39 = vpop.permute.xlu0 %359 }
0x14ef   :  { %362 = vst.msk [vmem:[#allocation2 + $0xa] sm:$0xc] %vm248_vm5, %v360_v39 }
0x14f0   :  { %898 = vst.msk [vmem:[#allocation2 + $0xc] sm:$0x3] %vm243_vm2, %v3621_v41 }
0x155b   :  { %v1004_v34 = vpop.permute.xlu1 %1003  ;;  %v1008_v42 = vpop.permute.xlu0 %1007 }
0x155c   :  { %1006 = vst.msk [vmem:[#allocation2 + $0xe] sm:$0x3] %vm243_vm2, %v1004_v34 }
0x155d   :  { %1010 = vst.msk [vmem:[#allocation2 - $0x2] sm:$0xc] %vm248_vm5, %v1008_v42 }
0x155f   :  { %v576_v43 = vpop.permute.xlu0 %575 }
0x1560   :  { %578 = vst.msk [vmem:[#allocation2 + $0x6] sm:$0xc] %vm248_vm5, %v576_v43 }
0x1561   :  { %682 = vst.msk [vmem:[#allocation2 + $0x8] sm:$0x3] %vm243_vm2, %v3587_v26 }
0x1564   :  { %v1011_v3 = vld [vmem:[#allocation2] sm:$0xff] }
0x1565   :  { %2986 = vmatmul.mubr.msk.f32.vlgmr.msra.gmra.mxu0 %vm1042_vm6, %v1011_v3 }
0x1566   :  { %1119 = vmatprep.mubr.f32.mxu0 %v3345_v0  ;;  %1445 = vmatpush1.msra.mxu0 %v3694_v29 }
0x1567   :  { %1446 = vmatprep.subr.mxu0 %v3696_v50 }
0x1568   :  { %v1012_v44 = vld [vmem:[#allocation2 + $0x8] sm:$0xff]  ;;  %1447 = vmatpush1.msra.mxu0 %v3699_v30 }
0x1569   :  { %2987 = vmatmul.mubr.msk.f32.gmra.mxu0 %vm1042_vm6, %v1012_v44  ;;  %1448 = vmatprep.subr.mxu0 %v3703_v51 }
0x156a   :  { %1484 = vmatprep.mubr.f32.mxu0 %v3345_v0  ;;  %1449 = vmatpush1.msra.mxu0 %v3707_v52 }
0x156b   :  { %1450 = vmatprep.subr.mxu0 %v3711_v53 }
0x156c   :  { %1451 = vmatpush1.msra.mxu0 %v3715_v54 }
0x156d   :  { %1660 = vmatprep.subr.mxu0 %v3692_v28 }
0x1625   :  { %v1115_v26 = vpop.f32.mrf.mxu0 }
0x1626   :  { %v1116_v57 = vadd.f32 %v1115_v26, %v1035_v46 }
0x1627   :  { %v1117_v48 = vpop.f32.mrf.mxu0 }
0x1628   :  { %v1118_v58 = vadd.f32 %v1117_v48, %v1039_v47  ;;  %v1131_v63 = vrot.slane %v1116_v57, 2  ;;  %v1136_v1 = vrot.slane %v1116_v57, 4  ;;  %v1139_v5 = vrot.slane %v1116_v57, 6 }
0x1629   :  { %v1121_v60 = vpop.f32.mrf.mxu0 }
0x162a   :  { %v1145_v61 = vrot.slane %v1118_v58, 4  ;;  %v1122_v62 = vadd.f32 %v1121_v60, %v1035_v46  ;;  %v1151_v6 = vrot.slane %v1118_v58, 2  ;;  %v1159_v10 = vrot.slane %v1118_v58, 6 }
0x162b   :  { %v1123_v49 = vpop.f32.mrf.mxu0 }
0x162c   :  { %v1124_v37 = vadd.f32 %v1123_v49, %v1039_v47  ;;  %v3672_v2 = vsel %vm179_vm1, %v1122_v62, %v1145_v61  ;;  %v1149_v41 = vrot.slane %v1122_v62, 2  ;;  %v1154_v4 = vrot.slane %v1122_v62, 4 }
0x162d   :  { %v1157_v7 = vrot.slane %v1122_v62, 6 }
0x162e   :  { %v1127_v12 = vrot.slane %v1124_v37, 4  ;;  %v1133_v13 = vrot.slane %v1124_v37, 2  ;;  %v3675_v14 = vsel %vm179_vm1, %v1136_v1, %v1124_v37  ;;  %v1141_v15 = vrot.slane %v1124_v37, 6 }
0x162f   :  { %v3678_v16 = vsel %vm179_vm1, %v1149_v41, %v1151_v6  ;;  %v3681_v17 = vsel %vm179_vm1, %v1154_v4, %v1118_v58  ;;  %v3684_v38 = vsel %vm179_vm1, %v1157_v7, %v1159_v10 }
0x1630   :  { %v1129_v19 = vsel %vm179_vm1, %v1116_v57, %v1127_v12  ;;  %v1135_v20 = vsel %vm179_vm1, %v1131_v63, %v1133_v13  ;;  %v3689_v21 = vsel %vm179_vm1, %v1139_v5, %v1141_v15 }
0x1631   :  { %3126 = vtanh.f32 %v1129_v19  ;;  %v2988_v23 = vmul.f32 -1.442695, %v1129_v19 }
0x1633   :  { %3128 = vpow2.f32 %v2988_v23 }
0x163e   :  { %v3127_v22 = vpop.eup %3126 }
0x163f   :  { %1179 = vrot.lane.b32.xlu0 %v3127_v22, %s3346_s0 }
0x1640   :  { %v3129_v25 = vpop.eup %3128 }
0x1641   :  { %v1174_v24 = vadd.f32 1.0, %v3129_v25 }
0x1643   :  { %3130 = vrcp.f32 %v1174_v24 }
0x1650   :  { %v3131_v59 = vpop.eup %3130 }
0x16b1   :  { %v1180_v27 = vpop.permute.xlu0 %1179 }
0x16b2   :  { %v1182_v40 = vmul.f32 %v3131_v59, %v1180_v27 }
0x16b4   :  { %3132 = vtanh.f32 %v1182_v40 }
0x16c1   :  { %v3133_v55 = vpop.eup %3132 }
0x16c2   :  { %1185 = vrot.lane.b32.xlu1 %v3133_v55, %s3347_s10 }
0x1734   :  { %v1186_v31 = vpop.permute.xlu1 %1185 }
0x1735   :  { %v3727_v56 = vmul.f32 %v3131_v59, %v1186_v31 }
0x1737   :  { %1190 = vrot.lane.b32.xlu0 %v3727_v56, %s3348_s11 }
0x173b   :  { %1281 = vrot.lane.b32.xlu0 %v1182_v40, %s3346_s0 }
0x17a9   :  { %v1191_v32 = vpop.permute.xlu0 %1190 }
0x17aa   :  { %1193 = vst.msk [vmem:[#allocation3] sm:$0x3] %vm243_vm2, %v1191_v32  ;;  %2989 = vmatmul.mubr.msk.f32.vlgmr.msra.gmra.mxu1 %vm250_vm3, %v1191_v32 }
0x17ab   :  { %1337 = vmatpush1.msra.mxu1 %v3694_v29  ;;  %1376 = vmatprep.mubr.f32.mxu1 %v3345_v0 }
0x17ac   :  { %1338 = vmatprep.subr.mxu1 %v3696_v50 }
0x17ad   :  { %1339 = vmatpush1.msra.mxu1 %v3699_v30  ;;  %v1282_v46 = vpop.permute.xlu0 %1281 }
0x17ae   :  { %1340 = vmatprep.subr.mxu1 %v3703_v51 }
0x17af   :  { %1341 = vmatpush1.msra.mxu1 %v3707_v52 }
0x17b0   :  { %1342 = vmatprep.subr.mxu1 %v3711_v53 }
0x17b1   :  { %1343 = vmatpush1.msra.mxu1 %v3715_v54 }
0x17b2   :  { %1552 = vmatprep.subr.mxu1 %v3692_v28 }
0x186a   :  { %v1266_v33 = vpop.f32.mrf.mxu1 }
0x186c   :  { %v1268_v35 = vpop.f32.mrf.mxu1 }
0x186d   :  { %v1271_v36 = vsel %vm73_vm4, %v1266_v33, %v1268_v35 }
0x186e   :  { %v1272_v18 = vadd.f32 %v1271_v36, %v1135_v20 }
0x1870   :  { %3134 = vtanh.f32 %v1272_v18  ;;  %v2990_v34 = vmul.f32 -1.442695, %v1272_v18 }
0x1872   :  { %3136 = vpow2.f32 %v2990_v34 }
0x187d   :  { %v3135_v39 = vpop.eup %3134 }
0x187e   :  { %1286 = vrot.lane.b32.xlu1 %v3135_v39, %s3346_s0 }
0x187f   :  { %v3137_v42 = vpop.eup %3136 }
0x1880   :  { %v1276_v43 = vadd.f32 1.0, %v3137_v42 }
0x1882   :  { %3138 = vrcp.f32 %v1276_v43 }
0x188f   :  { %v3139_v3 = vpop.eup %3138 }
0x1890   :  { %v1284_v47 = vmul.f32 %v3139_v3, %v1282_v46 }
0x18f0   :  { %v1287_v44 = vpop.permute.xlu1 %1286 }
0x18f1   :  { %v1289_v45 = vmul.f32 %v3139_v3, %v1287_v44 }
0x18f3   :  { %1291 = vrot.lane.b32.xlu1 %v1289_v45, %s3346_s0 }
0x1965   :  { %v1292_v26 = vpop.permute.xlu1 %1291 }
0x1966   :  { %v1294_v48 = vadd.f32 %v1292_v26, %v1284_v47 }
0x1968   :  { %3140 = vtanh.f32 %v1294_v48 }
0x1975   :  { %v3141_v57 = vpop.eup %3140 }
0x1976   :  { %1297 = vrot.lane.b32.xlu0 %v3141_v57, %s3346_s0 }
0x19e8   :  { %v1298_v58 = vpop.permute.xlu0 %1297 }
0x19e9   :  { %v3748_v60 = vmul.f32 %v3139_v3, %v1298_v58 }
0x19eb   :  { %1302 = vrot.lane.b32.xlu1 %v3748_v60, %s3348_s11 }
0x1a5d   :  { %v1303_v61 = vpop.permute.xlu1 %1302 }
0x1a5e   :  { %1305 = vst.msk [vmem:[#allocation3 + $0x2] sm:$0x3] %vm243_vm2, %v1303_v61  ;;  %2991 = vmatmul.mubr.msk.f32.vlgmr.msra.gmra.mxu1 %vm250_vm3, %v1303_v61 }
0x1a5f   :  { %1553 = vmatpush1.msra.mxu1 %v3694_v29  ;;  %1592 = vmatprep.mubr.f32.mxu1 %v3345_v0 }
0x1a60   :  { %1554 = vmatprep.subr.mxu1 %v3696_v50 }
0x1a61   :  { %1555 = vmatpush1.msra.mxu1 %v3699_v30 }
0x1a62   :  { %1556 = vmatprep.subr.mxu1 %v3703_v51 }
0x1a63   :  { %1557 = vmatpush1.msra.mxu1 %v3707_v52 }
0x1a64   :  { %1558 = vmatprep.subr.mxu1 %v3711_v53 }
0x1a65   :  { %1559 = vmatpush1.msra.mxu1 %v3715_v54 }
0x1a66   :  { %1768 = vmatprep.subr.mxu1 %v3692_v28 }
0x1b1e   :  { %v1378_v62 = vpop.f32.mrf.mxu1 }
0x1b20   :  { %v1380_v49 = vpop.f32.mrf.mxu1 }
0x1b21   :  { %v1383_v63 = vsel %vm73_vm4, %v1378_v62, %v1380_v49 }
0x1b22   :  { %v1384_v1 = vadd.f32 %v1383_v63, %v3675_v14 }
0x1b24   :  { %3142 = vtanh.f32 %v1384_v1  ;;  %v2992_v41 = vmul.f32 -1.442695, %v1384_v1 }
0x1b26   :  { %3144 = vpow2.f32 %v2992_v41 }
0x1b31   :  { %v3143_v37 = vpop.eup %3142 }
0x1b32   :  { %1394 = vrot.lane.b32.xlu0 %v3143_v37, %s3346_s0 }
0x1b33   :  { %v3145_v4 = vpop.eup %3144 }
0x1b34   :  { %v1388_v5 = vadd.f32 1.0, %v3145_v4 }
0x1b36   :  { %3146 = vrcp.f32 %v1388_v5 }
0x1b43   :  { %v3147_v6 = vpop.eup %3146 }
0x1b44   :  { %v1392_v12 = vmul.f32 %v3147_v6, %v1294_v48 }
0x1ba4   :  { %v1395_v7 = vpop.permute.xlu0 %1394 }
0x1ba5   :  { %v1397_v10 = vmul.f32 %v3147_v6, %v1395_v7 }
0x1ba7   :  { %1399 = vrot.lane.b32.xlu1 %v1397_v10, %s3346_s0 }
0x1c19   :  { %v1400_v13 = vpop.permute.xlu1 %1399 }
0x1c1a   :  { %v1402_v15 = vadd.f32 %v1400_v13, %v1392_v12 }
0x1c1c   :  { %3148 = vtanh.f32 %v1402_v15 }
0x1c29   :  { %v3149_v19 = vpop.eup %3148 }
0x1c2a   :  { %1405 = vrot.lane.b32.xlu0 %v3149_v19, %s3346_s0 }
0x1c9c   :  { %v1406_v14 = vpop.permute.xlu0 %1405 }
0x1c9d   :  { %v3769_v20 = vmul.f32 %v3147_v6, %v1406_v14 }
0x1c9f   :  { %1410 = vrot.lane.b32.xlu1 %v3769_v20, %s3348_s11 }
0x1d11   :  { %v1411_v22 = vpop.permute.xlu1 %1410 }
0x1d12   :  { %1413 = vst.msk [vmem:[#allocation3 + $0x4] sm:$0x3] %vm243_vm2, %v1411_v22  ;;  %2993 = vmatmul.mubr.msk.f32.vlgmr.msra.gmra.mxu0 %vm250_vm3, %v1411_v22 }
0x1d13   :  { %1661 = vmatpush1.msra.mxu0 %v3694_v29  ;;  %1700 = vmatprep.mubr.f32.mxu0 %v3345_v0 }
0x1d14   :  { %1662 = vmatprep.subr.mxu0 %v3696_v50 }
0x1d15   :  { %1663 = vmatpush1.msra.mxu0 %v3699_v30 }
0x1d16   :  { %1664 = vmatprep.subr.mxu0 %v3703_v51 }
0x1d17   :  { %1665 = vmatpush1.msra.mxu0 %v3707_v52 }
0x1d18   :  { %1666 = vmatprep.subr.mxu0 %v3711_v53 }
0x1d19   :  { %1667 = vmatpush1.msra.mxu0 %v3715_v54 }
0x1d1a   :  { %1876 = vmatprep.subr.mxu0 %v3692_v28 }
0x1dd2   :  { %v1486_v23 = vpop.f32.mrf.mxu0 }
0x1dd4   :  { %v1488_v25 = vpop.f32.mrf.mxu0 }
0x1dd5   :  { %v1491_v24 = vsel %vm73_vm4, %v1486_v23, %v1488_v25 }
0x1dd6   :  { %v1492_v59 = vadd.f32 %v1491_v24, %v3689_v21 }
0x1dd8   :  { %3150 = vtanh.f32 %v1492_v59  ;;  %v2994_v40 = vmul.f32 -1.442695, %v1492_v59 }
0x1dda   :  { %3152 = vpow2.f32 %v2994_v40 }
0x1de5   :  { %v3151_v27 = vpop.eup %3150 }
0x1de6   :  { %1502 = vrot.lane.b32.xlu0 %v3151_v27, %s3346_s0 }
0x1de7   :  { %v3153_v55 = vpop.eup %3152 }
0x1de8   :  { %v1496_v31 = vadd.f32 1.0, %v3153_v55 }
0x1dea   :  { %3154 = vrcp.f32 %v1496_v31 }
0x1df7   :  { %v3155_v32 = vpop.eup %3154 }
0x1df8   :  { %v1500_v28 = vmul.f32 %v3155_v32, %v1402_v15 }
0x1e58   :  { %v1503_v33 = vpop.permute.xlu0 %1502 }
0x1e59   :  { %v1505_v35 = vmul.f32 %v3155_v32, %v1503_v33 }
0x1e5b   :  { %1507 = vrot.lane.b32.xlu1 %v1505_v35, %s3346_s0 }
0x1ecd   :  { %v1508_v36 = vpop.permute.xlu1 %1507 }
0x1ece   :  { %v1510_v18 = vadd.f32 %v1508_v36, %v1500_v28 }
0x1ed0   :  { %3156 = vtanh.f32 %v1510_v18 }
0x1edd   :  { %v3157_v39 = vpop.eup %3156 }
0x1ede   :  { %1513 = vrot.lane.b32.xlu0 %v3157_v39, %s3346_s0 }
0x1f50   :  { %v1514_v21 = vpop.permute.xlu0 %1513 }
0x1f51   :  { %v3790_v34 = vmul.f32 %v3155_v32, %v1514_v21 }
0x1f53   :  { %1518 = vrot.lane.b32.xlu1 %v3790_v34, %s3348_s11 }
0x1fc5   :  { %v1519_v42 = vpop.permute.xlu1 %1518 }
0x1fc6   :  { %1521 = vst.msk [vmem:[#allocation3 + $0x6] sm:$0x3] %vm243_vm2, %v1519_v42  ;;  %2995 = vmatmul.mubr.msk.f32.vlgmr.msra.gmra.mxu1 %vm250_vm3, %v1519_v42 }
0x1fc7   :  { %1769 = vmatpush1.msra.mxu1 %v3694_v29  ;;  %1808 = vmatprep.mubr.f32.mxu1 %v3345_v0 }
0x1fc8   :  { %1770 = vmatprep.subr.mxu1 %v3696_v50 }
0x1fc9   :  { %1771 = vmatpush1.msra.mxu1 %v3699_v30 }
0x1fca   :  { %1772 = vmatprep.subr.mxu1 %v3703_v51 }
0x1fcb   :  { %1773 = vmatpush1.msra.mxu1 %v3707_v52 }
0x1fcc   :  { %1774 = vmatprep.subr.mxu1 %v3711_v53 }
0x1fcd   :  { %1775 = vmatpush1.msra.mxu1 %v3715_v54 }
0x2086   :  { %v1594_v43 = vpop.f32.mrf.mxu1 }
0x2088   :  { %v1596_v3 = vpop.f32.mrf.mxu1 }
0x2089   :  { %v1599_v44 = vsel %vm73_vm4, %v1594_v43, %v1596_v3 }
0x208a   :  { %v1600_v45 = vadd.f32 %v1599_v44, %v3672_v2 }
0x208c   :  { %3158 = vtanh.f32 %v1600_v45  ;;  %v2996_v47 = vmul.f32 -1.442695, %v1600_v45 }
0x208e   :  { %3160 = vpow2.f32 %v2996_v47 }
0x2099   :  { %v3159_v46 = vpop.eup %3158 }
0x209a   :  { %1610 = vrot.lane.b32.xlu0 %v3159_v46, %s3346_s0 }
0x209b   :  { %v3161_v26 = vpop.eup %3160 }
0x209c   :  { %v1604_v48 = vadd.f32 1.0, %v3161_v26 }
0x209e   :  { %3162 = vrcp.f32 %v1604_v48 }
0x20ab   :  { %v3163_v57 = vpop.eup %3162 }
0x20ac   :  { %v1608_v62 = vmul.f32 %v3163_v57, %v1510_v18 }
0x210c   :  { %v1611_v58 = vpop.permute.xlu0 %1610 }
0x210d   :  { %v1613_v61 = vmul.f32 %v3163_v57, %v1611_v58 }
0x210f   :  { %1615 = vrot.lane.b32.xlu1 %v1613_v61, %s3346_s0 }
0x2181   :  { %v1616_v49 = vpop.permute.xlu1 %1615 }
0x2182   :  { %v1618_v63 = vadd.f32 %v1616_v49, %v1608_v62 }
0x2184   :  { %3164 = vtanh.f32 %v1618_v63 }
0x2191   :  { %v3165_v1 = vpop.eup %3164 }
0x2192   :  { %1621 = vrot.lane.b32.xlu0 %v3165_v1, %s3346_s0 }
0x2204   :  { %v1622_v2 = vpop.permute.xlu0 %1621 }
0x2205   :  { %v3810_v37 = vmul.f32 %v3163_v57, %v1622_v2  ;;  %v1975_v2 = vld [vmem:[#allocation7 + $0x78] sm:$0xff] }
0x2206   :  { %2011 = vmatprep.subr.mxu1 %v1975_v2 }
0x2207   :  { %1626 = vrot.lane.b32.xlu1 %v3810_v37, %s3348_s11 }
0x2279   :  { %v3814_v41 = vpop.permute.xlu1 %1626 }
0x227a   :  { %2997 = vmatmul.mubr.msk.f32.vlgmr.msra.gmra.mxu0 %vm250_vm3, %v3814_v41 }
0x227b   :  { %1877 = vmatpush1.msra.mxu0 %v3694_v29  ;;  %1916 = vmatprep.mubr.f32.mxu0 %v3345_v0 }
0x227c   :  { %1878 = vmatprep.subr.mxu0 %v3696_v50 }
0x227d   :  { %1879 = vmatpush1.msra.mxu0 %v3699_v30 }
0x227e   :  { %1880 = vmatprep.subr.mxu0 %v3703_v51 }
0x227f   :  { %1881 = vmatpush1.msra.mxu0 %v3707_v52 }
0x2280   :  { %1882 = vmatprep.subr.mxu0 %v3711_v53 }
0x2281   :  { %1883 = vmatpush1.msra.mxu0 %v3715_v54 }
0x233a   :  { %v1702_v4 = vpop.f32.mrf.mxu0 }
0x233c   :  { %v1704_v5 = vpop.f32.mrf.mxu0 }
0x233d   :  { %v1707_v6 = vsel %vm73_vm4, %v1702_v4, %v1704_v5  ;;  %v1973_v4 = vld [vmem:[#allocation7 + $0x68] sm:$0xff] }
0x233e   :  { %v1708_v29 = vadd.f32 %v1707_v6, %v3678_v16 }
0x2340   :  { %3166 = vtanh.f32 %v1708_v29  ;;  %v2998_v50 = vmul.f32 -1.442695, %v1708_v29  ;;  %v1970_v29 = vld [vmem:[#allocation7 + $0x50] sm:$0xff] }
0x2342   :  { %3168 = vpow2.f32 %v2998_v50  ;;  %v1968_v50 = vld [vmem:[#allocation7 + $0x40] sm:$0xff] }
0x234d   :  { %v3167_v7 = vpop.eup %3166 }
0x234e   :  { %1718 = vrot.lane.b32.xlu0 %v3167_v7, %s3346_s0  ;;  %v1969_v7 = vld [vmem:[#allocation7 + $0x48] sm:$0xff] }
0x234f   :  { %v3169_v30 = vpop.eup %3168 }
0x2350   :  { %v1712_v51 = vadd.f32 1.0, %v3169_v30  ;;  %v1967_v30 = vld [vmem:[#allocation7 + $0x38] sm:$0xff] }
0x2352   :  { %3170 = vrcp.f32 %v1712_v51  ;;  %v1966_v51 = vld [vmem:[#allocation7 + $0x30] sm:$0xff] }
0x235f   :  { %v3171_v52 = vpop.eup %3170 }
0x2360   :  { %v1716_v54 = vmul.f32 %v3171_v52, %v1618_v63 }
0x23c0   :  { %v1719_v53 = vpop.permute.xlu0 %1718 }
0x23c1   :  { %v1721_v10 = vmul.f32 %v3171_v52, %v1719_v53  ;;  %v1964_v53 = vld [vmem:[#allocation7 + $0x20] sm:$0xff] }
0x23c3   :  { %1723 = vrot.lane.b32.xlu1 %v1721_v10, %s3346_s0  ;;  %v1963_v10 = vld [vmem:[#allocation7 + $0x18] sm:$0xff] }
0x2435   :  { %v1724_v12 = vpop.permute.xlu1 %1723 }
0x2436   :  { %v1726_v13 = vadd.f32 %v1724_v12, %v1716_v54  ;;  %v1962_v54 = vld [vmem:[#allocation7 + $0x10] sm:$0xff]  ;;  %v1961_v12 = vld [vmem:[#allocation7 + $0x8] sm:$0xff] }
0x2438   :  { %3172 = vtanh.f32 %v1726_v13 }
0x2445   :  { %v3173_v15 = vpop.eup %3172 }
0x2446   :  { %1729 = vrot.lane.b32.xlu0 %v3173_v15, %s3346_s0 }
0x24b8   :  { %v1730_v16 = vpop.permute.xlu0 %1729 }
0x24b9   :  { %v3832_v19 = vmul.f32 %v3171_v52, %v1730_v16  ;;  %v1965_v52 = vld [vmem:[#allocation7 + $0x28] sm:$0xff] }
0x24bb   :  { %1734 = vrot.lane.b32.xlu1 %v3832_v19, %s3348_s11 }
0x252d   :  { %v3836_v14 = vpop.permute.xlu1 %1734 }
0x252e   :  { %2999 = vmatmul.mubr.msk.f32.vlgmr.msra.gmra.mxu1 %vm250_vm3, %v3836_v14 }
0x252f   :  { %2059 = vmatprep.mubr.f32.mxu1 %v3345_v0 }
0x25ee   :  { %v1810_v22 = vpop.f32.mrf.mxu1 }
0x25f0   :  { %v1812_v23 = vpop.f32.mrf.mxu1 }
0x25f1   :  { %v1815_v25 = vsel %vm73_vm4, %v1810_v22, %v1812_v23 }
0x25f2   :  { %v1816_v24 = vadd.f32 %v1815_v25, %v3681_v17 }
0x25f4   :  { %3174 = vtanh.f32 %v1816_v24  ;;  %v3000_v27 = vmul.f32 -1.442695, %v1816_v24  ;;  %v3003_v24 = vld [vmem:[%s4101_s5 + $0x4] sm:$0x3] }
0x25f6   :  { %3176 = vpow2.f32 %v3000_v27  ;;  %v1986_v27 = vrot.slane %v3003_v24, %v3436_v11 }
0x2601   :  { %v3175_v59 = vpop.eup %3174 }
0x2602   :  { %1826 = vrot.lane.b32.xlu0 %v3175_v59, %s3346_s0  ;;  %v1982_v59 = vrot.slane %v3003_v24, %v3430_v9 }
0x2603   :  { %v3177_v40 = vpop.eup %3176 }
0x2604   :  { %v1820_v55 = vadd.f32 1.0, %v3177_v40 }
0x2606   :  { %3178 = vrcp.f32 %v1820_v55 }
0x2613   :  { %v3179_v31 = vpop.eup %3178 }
0x2614   :  { %v1824_v35 = vmul.f32 %v3179_v31, %v1726_v13  ;;  %v1960_v13 = vld [vmem:[#allocation7] sm:$0xff] }
0x2674   :  { %v1827_v32 = vpop.permute.xlu0 %1826 }
0x2675   :  { %v1829_v33 = vmul.f32 %v3179_v31, %v1827_v32 }
0x2677   :  { %1831 = vrot.lane.b32.xlu1 %v1829_v33, %s3346_s0 }
0x26e9   :  { %v1832_v28 = vpop.permute.xlu1 %1831 }
0x26ea   :  { %v1834_v36 = vadd.f32 %v1832_v28, %v1824_v35 }
0x26ec   :  { %3180 = vtanh.f32 %v1834_v36 }
0x26f9   :  { %v3181_v18 = vpop.eup %3180 }
0x26fa   :  { %1837 = vrot.lane.b32.xlu0 %v3181_v18, %s3346_s0 }
0x276c   :  { %v1838_v17 = vpop.permute.xlu0 %1837 }
0x276d   :  { %v1840_v39 = vmul.f32 %v3179_v31, %v1838_v17 }
0x276f   :  { %1842 = vrot.lane.b32.xlu1 %v1840_v39, %s3348_s11 }
0x27e1   :  { %v3848_v21 = vpop.permute.xlu1 %1842 }
0x27e2   :  { %3001 = vmatmul.mubr.msk.f32.vlgmr.msra.gmra.mxu0 %vm250_vm3, %v3848_v21 }
0x27e3   :  { %2204 = vmatprep.mubr.f32.mxu0 %v3345_v0 }
0x28a2   :  { %v1918_v42 = vpop.f32.mrf.mxu0 }
0x28a4   :  { %v1920_v43 = vpop.f32.mrf.mxu0 }
0x28a5   :  { %v1923_v3 = vsel %vm73_vm4, %v1918_v42, %v1920_v43 }
0x28a6   :  { %v1924_v44 = vadd.f32 %v1923_v3, %v3684_v38 }
0x28a8   :  { %3182 = vtanh.f32 %v1924_v44  ;;  %v3002_v46 = vmul.f32 -1.442695, %v1924_v44 }
0x28aa   :  { %3184 = vpow2.f32 %v3002_v46 }
0x28b5   :  { %v3183_v45 = vpop.eup %3182 }
0x28b6   :  { %1934 = vrot.lane.b32.xlu0 %v3183_v45, %s3346_s0 }
0x28b7   :  { %v3185_v47 = vpop.eup %3184 }
0x28b8   :  { %v1928_v26 = vadd.f32 1.0, %v3185_v47 }
0x28ba   :  { %3186 = vrcp.f32 %v1928_v26 }
0x28c7   :  { %v3187_v48 = vpop.eup %3186 }
0x28c8   :  { %v1932_v38 = vmul.f32 %v3187_v48, %v1834_v36 }
0x2928   :  { %v1935_v57 = vpop.permute.xlu0 %1934 }
0x2929   :  { %v1937_v58 = vmul.f32 %v3187_v48, %v1935_v57 }
0x292b   :  { %1939 = vrot.lane.b32.xlu1 %v1937_v58, %s3346_s0 }
0x292f   :  { %1630 = vrot.lane.b32.xlu1 %v3810_v37, %s3347_s10  ;;  %v1974_v37 = vld [vmem:[#allocation7 + $0x70] sm:$0xff] }
0x2930   :  { %2012 = vmatpush1.msra.mxu1 %v1974_v37 }
0x2931   :  { %2013 = vmatprep.subr.mxu1 %v1973_v4 }
0x2933   :  { %1846 = vrot.lane.b32.xlu1 %v1840_v39, %s3347_s10 }
0x2937   :  { %1194 = vrot.lane.b32.xlu1 %v3727_v56, %s3347_s10  ;;  %v1972_v56 = vld [vmem:[#allocation7 + $0x60] sm:$0xff] }
0x2938   :  { %2014 = vmatpush1.msra.mxu1 %v1972_v56  ;;  %v3919_v56 = vld [vmem:[#allocation9 + $0xb8] sm:$0xff] }
0x2939   :  { %2164 = vmatprep.subr.mxu0 %v3919_v56 }
0x293b   :  { %1414 = vrot.lane.b32.xlu1 %v3769_v20, %s3347_s10  ;;  %v1971_v20 = vld [vmem:[#allocation7 + $0x58] sm:$0xff] }
0x293c   :  { %2015 = vmatprep.subr.mxu1 %v1971_v20  ;;  %v3921_v20 = vld [vmem:[#allocation9 + $0xb0] sm:$0xff] }
0x293d   :  { %2016 = vmatpush1.msra.mxu1 %v1970_v29  ;;  %2165 = vmatpush1.msra.mxu0 %v3921_v20  ;;  %v3930_v29 = vld [vmem:[#allocation9 + $0x98] sm:$0xff] }
0x293e   :  { %2017 = vmatprep.subr.mxu1 %v1969_v7  ;;  %v3934_v7 = vld [vmem:[#allocation9 + $0x90] sm:$0xff] }
0x293f   :  { %2018 = vmatpush1.msra.mxu1 %v1968_v50  ;;  %v3938_v50 = vld [vmem:[#allocation9 + $0x88] sm:$0xff] }
0x2940   :  { %2019 = vmatprep.subr.mxu1 %v1967_v30  ;;  %v3942_v30 = vld [vmem:[#allocation9 + $0x80] sm:$0xff] }
0x2941   :  { %2020 = vmatpush1.msra.mxu1 %v1966_v51 }
0x2942   :  { %2021 = vmatprep.subr.mxu1 %v1965_v52 }
0x2943   :  { %2022 = vmatpush1.msra.mxu1 %v1964_v53 }
0x2944   :  { %2023 = vmatprep.subr.mxu1 %v1963_v10 }
0x2945   :  { %2024 = vmatpush1.msra.mxu1 %v1962_v54 }
0x2946   :  { %2025 = vmatprep.subr.mxu1 %v1961_v12 }
0x2947   :  { %2026 = vmatpush1.msra.mxu1 %v1960_v13 }
0x2948   :  { %2372 = vmatprep.subr.mxu1 %v3919_v56 }
0x299d   :  { %v1940_v61 = vpop.permute.xlu1 %1939 }
0x299e   :  { %v1942_v62 = vadd.f32 %v1940_v61, %v1932_v38 }
0x29a0   :  { %3188 = vtanh.f32 %v1942_v62 }
0x29a1   :  { %v1631_v49 = vpop.permute.xlu1 %1630 }
0x29a2   :  { %1633 = vst.msk [vmem:[#allocation3 + $0x4] sm:$0xc] %vm248_vm5, %v1631_v49 }
0x29a5   :  { %v1847_v63 = vpop.permute.xlu1 %1846 }
0x29a6   :  { %1849 = vst.msk [vmem:[#allocation3] sm:$0xc] %vm248_vm5, %v1847_v63 }
0x29a9   :  { %v1195_v1 = vpop.permute.xlu1 %1194 }
0x29aa   :  { %1197 = vst.msk [vmem:[#allocation3 + $0xc] sm:$0xc] %vm248_vm5, %v1195_v1 }
0x29ad   :  { %v3189_v5 = vpop.eup %3188  ;;  %v1415_v6 = vpop.permute.xlu1 %1414 }
0x29ae   :  { %1417 = vst.msk [vmem:[#allocation3 + $0x8] sm:$0xc] %vm248_vm5, %v1415_v6  ;;  %1945 = vrot.lane.b32.xlu0 %v3189_v5, %s3346_s0  ;;  %v3923_v5 = vld [vmem:[#allocation9 + $0xa8] sm:$0xff]  ;;  %v3926_v6 = vld [vmem:[#allocation9 + $0xa0] sm:$0xff] }
0x29af   :  { %1737 = vst.msk [vmem:[#allocation3 + $0xa] sm:$0x3] %vm243_vm2, %v3836_v14  ;;  %2166 = vmatprep.subr.mxu0 %v3923_v5 }
0x29b0   :  { %2167 = vmatpush1.msra.mxu0 %v3926_v6 }
0x29b1   :  { %2168 = vmatprep.subr.mxu0 %v3930_v29 }
0x29b2   :  { %1738 = vrot.lane.b32.xlu0 %v3832_v19, %s3347_s10  ;;  %2169 = vmatpush1.msra.mxu0 %v3934_v7 }
0x29b3   :  { %2170 = vmatprep.subr.mxu0 %v3938_v50 }
0x29b4   :  { %2171 = vmatpush1.msra.mxu0 %v3942_v30 }
0x29b5   :  { %2270 = vmatprep.subr.mxu0 %v3919_v56 }
0x29b6   :  { %1306 = vrot.lane.b32.xlu0 %v3748_v60, %s3347_s10 }
0x2a20   :  { %v1946_v15 = vpop.permute.xlu0 %1945 }
0x2a21   :  { %v1948_v16 = vmul.f32 %v3187_v48, %v1946_v15 }
0x2a23   :  { %1950 = vrot.lane.b32.xlu1 %v1948_v16, %s3348_s11  ;;  %1954 = vrot.lane.b32.xlu0 %v1948_v16, %s3347_s10 }
0x2a24   :  { %v1739_v60 = vpop.permute.xlu0 %1738 }
0x2a25   :  { %1741 = vst.msk [vmem:[#allocation3 + $0x2] sm:$0xc] %vm248_vm5, %v1739_v60 }
0x2a27   :  { %1522 = vrot.lane.b32.xlu0 %v3790_v34, %s3347_s10 }
0x2a28   :  { %v1307_v19 = vpop.permute.xlu0 %1306 }
0x2a29   :  { %1309 = vst.msk [vmem:[#allocation3 + $0xa] sm:$0xc] %vm248_vm5, %v1307_v19 }
0x2a2a   :  { %1845 = vst.msk [vmem:[#allocation3 + $0xc] sm:$0x3] %vm243_vm2, %v3848_v21 }
0x2a95   :  { %v1951_v14 = vpop.permute.xlu1 %1950  ;;  %v1955_v22 = vpop.permute.xlu0 %1954 }
0x2a96   :  { %1953 = vst.msk [vmem:[#allocation3 + $0xe] sm:$0x3] %vm243_vm2, %v1951_v14 }
0x2a97   :  { %1957 = vst.msk [vmem:[#allocation3 - $0x2] sm:$0xc] %vm248_vm5, %v1955_v22 }
0x2a99   :  { %v1523_v23 = vpop.permute.xlu0 %1522 }
0x2a9a   :  { %1525 = vst.msk [vmem:[#allocation3 + $0x6] sm:$0xc] %vm248_vm5, %v1523_v23 }
0x2a9b   :  { %1629 = vst.msk [vmem:[#allocation3 + $0x8] sm:$0x3] %vm243_vm2, %v3814_v41 }
0x2a9e   :  { %v1958_v25 = vld [vmem:[#allocation3] sm:$0xff] }
0x2a9f   :  { %3004 = vmatmul.mubr.msk.f32.vlgmr.msra.gmra.mxu1 %vm1042_vm6, %v1958_v25 }
0x2aa0   :  { %2065 = vmatprep.mubr.f32.mxu1 %v3345_v0  ;;  %2373 = vmatpush1.msra.mxu1 %v3921_v20 }
0x2aa1   :  { %2374 = vmatprep.subr.mxu1 %v3923_v5 }
0x2aa2   :  { %v1959_v34 = vld [vmem:[#allocation3 + $0x8] sm:$0xff]  ;;  %2375 = vmatpush1.msra.mxu1 %v3926_v6 }
0x2aa3   :  { %3005 = vmatmul.mubr.msk.f32.gmra.mxu1 %vm1042_vm6, %v1959_v34  ;;  %2376 = vmatprep.subr.mxu1 %v3930_v29 }
0x2aa4   :  { %2412 = vmatprep.mubr.f32.mxu1 %v3345_v0  ;;  %2377 = vmatpush1.msra.mxu1 %v3934_v7 }
0x2aa5   :  { %2378 = vmatprep.subr.mxu1 %v3938_v50 }
0x2aa6   :  { %2379 = vmatpush1.msra.mxu1 %v3942_v30 }
0x2aa7   :  { %2576 = vmatprep.subr.mxu1 %v3919_v56 }
0x2b5f   :  { %v2061_v40 = vpop.f32.mrf.mxu1 }
0x2b60   :  { %v2062_v55 = vadd.f32 %v2061_v40, %v1982_v59 }
0x2b61   :  { %v2063_v41 = vpop.f32.mrf.mxu1 }
0x2b62   :  { %v2064_v31 = vadd.f32 %v2063_v41, %v1986_v27  ;;  %v2077_v36 = vrot.slane %v2062_v55, 2  ;;  %v2082_v18 = vrot.slane %v2062_v55, 4  ;;  %v2085_v43 = vrot.slane %v2062_v55, 6 }
0x2b63   :  { %v2067_v32 = vpop.f32.mrf.mxu1 }
0x2b64   :  { %v2091_v33 = vrot.slane %v2064_v31, 4  ;;  %v2068_v35 = vadd.f32 %v2067_v32, %v1982_v59  ;;  %v2097_v9 = vrot.slane %v2064_v31, 2  ;;  %v2105_v11 = vrot.slane %v2064_v31, 6 }
0x2b65   :  { %v2069_v28 = vpop.f32.mrf.mxu1 }
0x2b66   :  { %v2070_v17 = vadd.f32 %v2069_v28, %v1986_v27  ;;  %v3899_v39 = vsel %vm179_vm1, %v2068_v35, %v2091_v33  ;;  %v2095_v21 = vrot.slane %v2068_v35, 2  ;;  %v2100_v42 = vrot.slane %v2068_v35, 4 }
0x2b67   :  { %v2103_v3 = vrot.slane %v2068_v35, 6 }
0x2b68   :  { %v2073_v44 = vrot.slane %v2070_v17, 4  ;;  %v2079_v45 = vrot.slane %v2070_v17, 2  ;;  %v3902_v46 = vsel %vm179_vm1, %v2082_v18, %v2070_v17  ;;  %v2087_v47 = vrot.slane %v2070_v17, 6 }
0x2b69   :  { %v3905_v26 = vsel %vm179_vm1, %v2095_v21, %v2097_v9  ;;  %v3908_v48 = vsel %vm179_vm1, %v2100_v42, %v2064_v31  ;;  %v3911_v57 = vsel %vm179_vm1, %v2103_v3, %v2105_v11 }
0x2b6a   :  { %v2075_v58 = vsel %vm179_vm1, %v2062_v55, %v2073_v44  ;;  %v2081_v38 = vsel %vm179_vm1, %v2077_v36, %v2079_v45  ;;  %v3916_v61 = vsel %vm179_vm1, %v2085_v43, %v2087_v47 }
0x2b6b   :  { %3190 = vtanh.f32 %v2075_v58  ;;  %v3006_v49 = vmul.f32 -1.442695, %v2075_v58 }
0x2b6d   :  { %3192 = vpow2.f32 %v3006_v49 }
0x2b78   :  { %v3191_v62 = vpop.eup %3190 }
0x2b79   :  { %2125 = vrot.lane.b32.xlu0 %v3191_v62, %s3346_s0 }
0x2b7a   :  { %v3193_v63 = vpop.eup %3192 }
0x2b7b   :  { %v2120_v1 = vadd.f32 1.0, %v3193_v63 }
0x2b7d   :  { %3194 = vrcp.f32 %v2120_v1 }
0x2b8a   :  { %v3195_v2 = vpop.eup %3194 }
0x2beb   :  { %v2126_v37 = vpop.permute.xlu0 %2125 }
0x2bec   :  { %v2128_v4 = vmul.f32 %v3195_v2, %v2126_v37 }
0x2bee   :  { %3196 = vtanh.f32 %v2128_v4 }
0x2bfb   :  { %v3197_v51 = vpop.eup %3196 }
0x2bfc   :  { %2131 = vrot.lane.b32.xlu1 %v3197_v51, %s3347_s10 }
0x2c6e   :  { %v2132_v52 = vpop.permute.xlu1 %2131 }
0x2c6f   :  { %v2134_v53 = vmul.f32 %v3195_v2, %v2132_v52 }
0x2c71   :  { %2136 = vrot.lane.b32.xlu0 %v2134_v53, %s3348_s11 }
0x2c75   :  { %2221 = vrot.lane.b32.xlu0 %v2128_v4, %s3346_s0 }
0x2ce3   :  { %v2137_v10 = vpop.permute.xlu0 %2136 }
0x2ce4   :  { %3007 = vmatmul.mubr.msk.f32.vlgmr.msra.gmra.mxu0 %vm250_vm3, %v2137_v10 }
0x2ce5   :  { %2271 = vmatpush1.msra.mxu0 %v3921_v20  ;;  %2310 = vmatprep.mubr.f32.mxu0 %v3345_v0 }
0x2ce6   :  { %2272 = vmatprep.subr.mxu0 %v3923_v5 }
0x2ce7   :  { %2273 = vmatpush1.msra.mxu0 %v3926_v6  ;;  %v2222_v34 = vpop.permute.xlu0 %2221 }
0x2ce8   :  { %2274 = vmatprep.subr.mxu0 %v3930_v29 }
0x2ce9   :  { %2275 = vmatpush1.msra.mxu0 %v3934_v7 }
0x2cea   :  { %2276 = vmatprep.subr.mxu0 %v3938_v50 }
0x2ceb   :  { %2277 = vmatpush1.msra.mxu0 %v3942_v30 }
0x2cec   :  { %2474 = vmatprep.subr.mxu0 %v3919_v56 }
0x2da4   :  { %v2206_v54 = vpop.f32.mrf.mxu0 }
0x2da6   :  { %v2208_v12 = vpop.f32.mrf.mxu0 }
0x2da7   :  { %v2211_v13 = vsel %vm73_vm4, %v2206_v54, %v2208_v12 }
0x2da8   :  { %v2212_v15 = vadd.f32 %v2211_v13, %v2081_v38 }
0x2daa   :  { %3198 = vtanh.f32 %v2212_v15  ;;  %v3008_v60 = vmul.f32 -1.442695, %v2212_v15 }
0x2dac   :  { %3200 = vpow2.f32 %v3008_v60 }
0x2db7   :  { %v3199_v16 = vpop.eup %3198 }
0x2db8   :  { %2226 = vrot.lane.b32.xlu1 %v3199_v16, %s3346_s0 }
0x2db9   :  { %v3201_v19 = vpop.eup %3200 }
0x2dba   :  { %v2216_v14 = vadd.f32 1.0, %v3201_v19 }
0x2dbc   :  { %3202 = vrcp.f32 %v2216_v14 }
0x2dc9   :  { %v3203_v22 = vpop.eup %3202 }
0x2dca   :  { %v2224_v24 = vmul.f32 %v3203_v22, %v2222_v34 }
0x2e2a   :  { %v2227_v23 = vpop.permute.xlu1 %2226 }
0x2e2b   :  { %v2229_v25 = vmul.f32 %v3203_v22, %v2227_v23 }
0x2e2d   :  { %2231 = vrot.lane.b32.xlu1 %v2229_v25, %s3346_s0 }
0x2e9f   :  { %v2232_v59 = vpop.permute.xlu1 %2231 }
0x2ea0   :  { %v2234_v27 = vadd.f32 %v2232_v59, %v2224_v24 }
0x2ea2   :  { %3204 = vtanh.f32 %v2234_v27 }
0x2eaf   :  { %v3205_v40 = vpop.eup %3204 }
0x2eb0   :  { %2237 = vrot.lane.b32.xlu0 %v3205_v40, %s3346_s0 }
0x2f22   :  { %v2238_v41 = vpop.permute.xlu0 %2237 }
0x2f23   :  { %v2240_v55 = vmul.f32 %v3203_v22, %v2238_v41 }
0x2f25   :  { %2242 = vrot.lane.b32.xlu1 %v2240_v55, %s3348_s11 }
0x2f97   :  { %v2243_v31 = vpop.permute.xlu1 %2242 }
0x2f98   :  { %3009 = vmatmul.mubr.msk.f32.vlgmr.msra.gmra.mxu0 %vm250_vm3, %v2243_v31 }
0x2f99   :  { %2475 = vmatpush1.msra.mxu0 %v3921_v20  ;;  %2514 = vmatprep.mubr.f32.mxu0 %v3345_v0 }
0x2f9a   :  { %2476 = vmatprep.subr.mxu0 %v3923_v5 }
0x2f9b   :  { %2477 = vmatpush1.msra.mxu0 %v3926_v6 }
0x2f9c   :  { %2478 = vmatprep.subr.mxu0 %v3930_v29 }
0x2f9d   :  { %2479 = vmatpush1.msra.mxu0 %v3934_v7 }
0x2f9e   :  { %2480 = vmatprep.subr.mxu0 %v3938_v50 }
0x2f9f   :  { %2481 = vmatpush1.msra.mxu0 %v3942_v30 }
0x2fa0   :  { %2678 = vmatprep.subr.mxu0 %v3919_v56 }
0x3058   :  { %v2312_v32 = vpop.f32.mrf.mxu0 }
0x305a   :  { %v2314_v33 = vpop.f32.mrf.mxu0 }
0x305b   :  { %v2317_v35 = vsel %vm73_vm4, %v2312_v32, %v2314_v33 }
0x305c   :  { %v2318_v28 = vadd.f32 %v2317_v35, %v3902_v46 }
0x305e   :  { %3206 = vtanh.f32 %v2318_v28  ;;  %v3010_v18 = vmul.f32 -1.442695, %v2318_v28 }
0x3060   :  { %3208 = vpow2.f32 %v3010_v18 }
0x306b   :  { %v3207_v36 = vpop.eup %3206 }
0x306c   :  { %2328 = vrot.lane.b32.xlu0 %v3207_v36, %s3346_s0 }
0x306d   :  { %v3209_v17 = vpop.eup %3208 }
0x306e   :  { %v2322_v21 = vadd.f32 1.0, %v3209_v17 }
0x3070   :  { %3210 = vrcp.f32 %v2322_v21 }
0x307d   :  { %v3211_v42 = vpop.eup %3210 }
0x307e   :  { %v2326_v3 = vmul.f32 %v3211_v42, %v2234_v27 }
0x30de   :  { %v2329_v43 = vpop.permute.xlu0 %2328 }
0x30df   :  { %v2331_v9 = vmul.f32 %v3211_v42, %v2329_v43 }
0x30e1   :  { %2333 = vrot.lane.b32.xlu1 %v2331_v9, %s3346_s0 }
0x3153   :  { %v2334_v11 = vpop.permute.xlu1 %2333 }
0x3154   :  { %v2336_v44 = vadd.f32 %v2334_v11, %v2326_v3 }
0x3156   :  { %3212 = vtanh.f32 %v2336_v44 }
0x3163   :  { %v3213_v45 = vpop.eup %3212 }
0x3164   :  { %2339 = vrot.lane.b32.xlu0 %v3213_v45, %s3346_s0 }
0x31d6   :  { %v2340_v46 = vpop.permute.xlu0 %2339 }
0x31d7   :  { %v2342_v47 = vmul.f32 %v3211_v42, %v2340_v46 }
0x31d9   :  { %2344 = vrot.lane.b32.xlu1 %v2342_v47, %s3348_s11 }
0x324b   :  { %v2345_v58 = vpop.permute.xlu1 %2344 }
0x324c   :  { %3011 = vmatmul.mubr.msk.f32.vlgmr.msra.gmra.mxu1 %vm250_vm3, %v2345_v58 }
0x324d   :  { %2577 = vmatpush1.msra.mxu1 %v3921_v20  ;;  %2616 = vmatprep.mubr.f32.mxu1 %v3345_v0 }
0x324e   :  { %2578 = vmatprep.subr.mxu1 %v3923_v5 }
0x324f   :  { %2579 = vmatpush1.msra.mxu1 %v3926_v6 }
0x3250   :  { %2580 = vmatprep.subr.mxu1 %v3930_v29 }
0x3251   :  { %2581 = vmatpush1.msra.mxu1 %v3934_v7 }
0x3252   :  { %2582 = vmatprep.subr.mxu1 %v3938_v50 }
0x3253   :  { %2583 = vmatpush1.msra.mxu1 %v3942_v30 }
0x3254   :  { %2780 = vmatprep.subr.mxu1 %v3919_v56 }
0x330c   :  { %v2414_v38 = vpop.f32.mrf.mxu1 }
0x330e   :  { %v2416_v62 = vpop.f32.mrf.mxu1 }
0x330f   :  { %v2419_v49 = vsel %vm73_vm4, %v2414_v38, %v2416_v62 }
0x3310   :  { %v2420_v63 = vadd.f32 %v2419_v49, %v3916_v61 }
0x3312   :  { %3214 = vtanh.f32 %v2420_v63  ;;  %v3012_v2 = vmul.f32 -1.442695, %v2420_v63 }
0x3314   :  { %3216 = vpow2.f32 %v3012_v2 }
0x331f   :  { %v3215_v1 = vpop.eup %3214 }
0x3320   :  { %2430 = vrot.lane.b32.xlu0 %v3215_v1, %s3346_s0 }
0x3321   :  { %v3217_v37 = vpop.eup %3216 }
0x3322   :  { %v2424_v4 = vadd.f32 1.0, %v3217_v37 }
0x3324   :  { %3218 = vrcp.f32 %v2424_v4 }
0x3331   :  { %v3219_v51 = vpop.eup %3218 }
0x3332   :  { %v2428_v56 = vmul.f32 %v3219_v51, %v2336_v44 }
0x3392   :  { %v2431_v52 = vpop.permute.xlu0 %2430 }
0x3393   :  { %v2433_v53 = vmul.f32 %v3219_v51, %v2431_v52 }
0x3395   :  { %2435 = vrot.lane.b32.xlu1 %v2433_v53, %s3346_s0 }
0x3407   :  { %v2436_v10 = vpop.permute.xlu1 %2435 }
0x3408   :  { %v2438_v54 = vadd.f32 %v2436_v10, %v2428_v56 }
0x340a   :  { %3220 = vtanh.f32 %v2438_v54 }
0x3417   :  { %v3221_v12 = vpop.eup %3220 }
0x3418   :  { %2441 = vrot.lane.b32.xlu0 %v3221_v12, %s3346_s0 }
0x348a   :  { %v2442_v61 = vpop.permute.xlu0 %2441 }
0x348b   :  { %v2444_v13 = vmul.f32 %v3219_v51, %v2442_v61 }
0x348d   :  { %2446 = vrot.lane.b32.xlu1 %v2444_v13, %s3348_s11 }
0x34ff   :  { %v2447_v15 = vpop.permute.xlu1 %2446 }
0x3500   :  { %3013 = vmatmul.mubr.msk.f32.vlgmr.msra.gmra.mxu0 %vm250_vm3, %v2447_v15 }
0x3501   :  { %2679 = vmatpush1.msra.mxu0 %v3921_v20  ;;  %2718 = vmatprep.mubr.f32.mxu0 %v3345_v0 }
0x3502   :  { %2680 = vmatprep.subr.mxu0 %v3923_v5 }
0x3503   :  { %2681 = vmatpush1.msra.mxu0 %v3926_v6 }
0x3504   :  { %2682 = vmatprep.subr.mxu0 %v3930_v29 }
0x3505   :  { %2683 = vmatpush1.msra.mxu0 %v3934_v7 }
0x3506   :  { %2684 = vmatprep.subr.mxu0 %v3938_v50 }
0x3507   :  { %2685 = vmatpush1.msra.mxu0 %v3942_v30 }
0x3508   :  { %3032 = vmatprep.subr.mxu0 %v3345_v0 }
0x35c0   :  { %v2516_v16 = vpop.f32.mrf.mxu0 }
0x35c2   :  { %v2518_v60 = vpop.f32.mrf.mxu0 }
0x35c3   :  { %v2521_v19 = vsel %vm73_vm4, %v2516_v16, %v2518_v60 }
0x35c4   :  { %v2522_v14 = vadd.f32 %v2521_v19, %v3899_v39 }
0x35c6   :  { %3222 = vtanh.f32 %v2522_v14  ;;  %v3014_v23 = vmul.f32 -1.442695, %v2522_v14 }
0x35c8   :  { %3224 = vpow2.f32 %v3014_v23 }
0x35d3   :  { %v3223_v22 = vpop.eup %3222 }
0x35d4   :  { %2532 = vrot.lane.b32.xlu0 %v3223_v22, %s3346_s0 }
0x35d5   :  { %v3225_v25 = vpop.eup %3224 }
0x35d6   :  { %v2526_v34 = vadd.f32 1.0, %v3225_v25  ;;  %v2868_v25 = vld [vmem:[%s4102_s6 + $0x30] sm:$0xff] }
0x35d8   :  { %3226 = vrcp.f32 %v2526_v34  ;;  %v2867_v34 = vld [vmem:[%s4102_s6 + $0x28] sm:$0xff] }
0x35e5   :  { %v3227_v24 = vpop.eup %3226 }
0x35e6   :  { %v2530_v40 = vmul.f32 %v3227_v24, %v2438_v54 }
0x3646   :  { %v2533_v59 = vpop.permute.xlu0 %2532 }
0x3647   :  { %v2535_v27 = vmul.f32 %v3227_v24, %v2533_v59  ;;  %v2865_v59 = vld [vmem:[%s4102_s6 + $0x18] sm:$0xff] }
0x3649   :  { %2537 = vrot.lane.b32.xlu1 %v2535_v27, %s3346_s0 }
0x36bb   :  { %v2538_v41 = vpop.permute.xlu1 %2537 }
0x36bc   :  { %v2540_v55 = vadd.f32 %v2538_v41, %v2530_v40  ;;  %v2864_v40 = vld [vmem:[%s4102_s6 + $0x10] sm:$0xff]  ;;  %v2863_v41 = vld [vmem:[%s4102_s6 + $0x8] sm:$0xff] }
0x36be   :  { %3228 = vtanh.f32 %v2540_v55 }
0x36cb   :  { %v3229_v31 = vpop.eup %3228 }
0x36cc   :  { %2543 = vrot.lane.b32.xlu0 %v3229_v31, %s3346_s0 }
0x373e   :  { %v2544_v39 = vpop.permute.xlu0 %2543 }
0x373f   :  { %v2546_v32 = vmul.f32 %v3227_v24, %v2544_v39  ;;  %v2866_v24 = vld [vmem:[%s4102_s6 + $0x20] sm:$0xff] }
0x3741   :  { %2548 = vrot.lane.b32.xlu1 %v2546_v32, %s3348_s11 }
0x37b3   :  { %v2549_v33 = vpop.permute.xlu1 %2548 }
0x37b4   :  { %3015 = vmatmul.mubr.msk.f32.vlgmr.msra.gmra.mxu1 %vm250_vm3, %v2549_v33 }
0x37b5   :  { %2781 = vmatpush1.msra.mxu1 %v3921_v20  ;;  %2820 = vmatprep.mubr.f32.mxu1 %v3345_v0 }
0x37b6   :  { %2782 = vmatprep.subr.mxu1 %v3923_v5 }
0x37b7   :  { %2783 = vmatpush1.msra.mxu1 %v3926_v6 }
0x37b8   :  { %2784 = vmatprep.subr.mxu1 %v3930_v29 }
0x37b9   :  { %2785 = vmatpush1.msra.mxu1 %v3934_v7 }
0x37ba   :  { %2786 = vmatprep.subr.mxu1 %v3938_v50 }
0x37bb   :  { %2787 = vmatpush1.msra.mxu1 %v3942_v30 }
0x3874   :  { %v2618_v35 = vpop.f32.mrf.mxu1 }
0x3876   :  { %v2620_v28 = vpop.f32.mrf.mxu1 }
0x3877   :  { %v2623_v36 = vsel %vm73_vm4, %v2618_v35, %v2620_v28 }
0x3878   :  { %v2624_v20 = vadd.f32 %v2623_v36, %v3905_v26  ;;  %v3021_v36 = vld [vmem:[%s4103_s7] ss:$0 sm:$0xff] }
0x387a   :  { %3230 = vtanh.f32 %v2624_v20  ;;  %v3016_v5 = vmul.f32 -1.442695, %v2624_v20 }
0x387c   :  { %3232 = vpow2.f32 %v3016_v5 }
0x3887   :  { %v3231_v18 = vpop.eup %3230 }
0x3888   :  { %2634 = vrot.lane.b32.xlu0 %v3231_v18, %s3346_s0 }
0x3889   :  { %v3233_v6 = vpop.eup %3232 }
0x388a   :  { %v2628_v29 = vadd.f32 1.0, %v3233_v6 }
0x388c   :  { %3234 = vrcp.f32 %v2628_v29 }
0x3899   :  { %v3235_v7 = vpop.eup %3234 }
0x389a   :  { %v2632_v30 = vmul.f32 %v3235_v7, %v2540_v55  ;;  %v2862_v55 = vld [vmem:[%s4102_s6] sm:$0xff] }
0x38fa   :  { %v2635_v50 = vpop.permute.xlu0 %2634 }
0x38fb   :  { %v2637_v17 = vmul.f32 %v3235_v7, %v2635_v50 }
0x38fd   :  { %2639 = vrot.lane.b32.xlu1 %v2637_v17, %s3346_s0 }
0x396f   :  { %v2640_v21 = vpop.permute.xlu1 %2639 }
0x3970   :  { %v2642_v42 = vadd.f32 %v2640_v21, %v2632_v30 }
0x3972   :  { %3236 = vtanh.f32 %v2642_v42 }
0x397f   :  { %v3237_v43 = vpop.eup %3236 }
0x3980   :  { %2645 = vrot.lane.b32.xlu0 %v3237_v43, %s3346_s0 }
0x39f2   :  { %v2646_v26 = vpop.permute.xlu0 %2645 }
0x39f3   :  { %v2648_v9 = vmul.f32 %v3235_v7, %v2646_v26 }
0x39f5   :  { %2650 = vrot.lane.b32.xlu1 %v2648_v9, %s3348_s11 }
0x3a67   :  { %v2651_v3 = vpop.permute.xlu1 %2650 }
0x3a68   :  { %3017 = vmatmul.mubr.msk.f32.vlgmr.msra.gmra.mxu0 %vm250_vm3, %v2651_v3 }
0x3a69   :  { %3048 = vmatprep.mubr.msk.f32.mxu0 %vm3349_vm7, %v3345_v0 }
0x3b28   :  { %v2720_v11 = vpop.f32.mrf.mxu0 }
0x3b2a   :  { %v2722_v44 = vpop.f32.mrf.mxu0 }
0x3b2b   :  { %v2725_v45 = vsel %vm73_vm4, %v2720_v11, %v2722_v44 }
0x3b2c   :  { %v2726_v46 = vadd.f32 %v2725_v45, %v3908_v48 }
0x3b2e   :  { %3238 = vtanh.f32 %v2726_v46  ;;  %v3018_v58 = vmul.f32 -1.442695, %v2726_v46 }
0x3b30   :  { %3240 = vpow2.f32 %v3018_v58 }
0x3b3b   :  { %v3239_v47 = vpop.eup %3238 }
0x3b3c   :  { %2736 = vrot.lane.b32.xlu0 %v3239_v47, %s3346_s0 }
0x3b3d   :  { %v3241_v38 = vpop.eup %3240 }
0x3b3e   :  { %v2730_v62 = vadd.f32 1.0, %v3241_v38 }
0x3b40   :  { %3242 = vrcp.f32 %v2730_v62 }
0x3b4d   :  { %v3243_v49 = vpop.eup %3242 }
0x3b4e   :  { %v2734_v2 = vmul.f32 %v3243_v49, %v2642_v42 }
0x3bae   :  { %v2737_v63 = vpop.permute.xlu0 %2736 }
0x3baf   :  { %v2739_v1 = vmul.f32 %v3243_v49, %v2737_v63 }
0x3bb1   :  { %2741 = vrot.lane.b32.xlu1 %v2739_v1, %s3346_s0 }
0x3c23   :  { %v2742_v37 = vpop.permute.xlu1 %2741 }
0x3c24   :  { %v2744_v4 = vadd.f32 %v2742_v37, %v2734_v2 }
0x3c26   :  { %3244 = vtanh.f32 %v2744_v4 }
0x3c33   :  { %v3245_v51 = vpop.eup %3244 }
0x3c34   :  { %2747 = vrot.lane.b32.xlu0 %v3245_v51, %s3346_s0 }
0x3ca6   :  { %v2748_v48 = vpop.permute.xlu0 %2747 }
0x3ca7   :  { %v2750_v52 = vmul.f32 %v3243_v49, %v2748_v48 }
0x3ca9   :  { %2752 = vrot.lane.b32.xlu1 %v2750_v52, %s3348_s11 }
0x3d1b   :  { %v2753_v53 = vpop.permute.xlu1 %2752 }
0x3d1c   :  { %3019 = vmatmul.mubr.msk.f32.vlgmr.msra.gmra.mxu1 %vm250_vm3, %v2753_v53 }
0x3ddc   :  { %v2822_v56 = vpop.f32.mrf.mxu1 }
0x3dde   :  { %v2824_v10 = vpop.f32.mrf.mxu1 }
0x3ddf   :  { %v2827_v54 = vsel %vm73_vm4, %v2822_v56, %v2824_v10 }
0x3de0   :  { %v2828_v12 = vadd.f32 %v2827_v54, %v3911_v57  ;;  %v2869_v57 = vld [vmem:[%s4102_s6 + $0x38] sm:$0xff]  ;;  %s3350_s6 = smov [#allocation10]  }
0x3de1   :  { %3033 = vmatpush3.msra.mxu0 %v2869_v57  ;;  %s2958_s30 = sshll.u32 %s3350_s6, 4  ;;  %s2959_s30 = int_to_ptr.vmem [resolvable:$true] %s2958_s30 }
0x3de2   :  { %3246 = vtanh.f32 %v2828_v12  ;;  %v3020_v13 = vmul.f32 -1.442695, %v2828_v12  ;;  %3034 = vmatprep.subr.mxu0 %v3345_v0  ;;  %s3314_s1 = scalar_lea.vmem %s2959_s30, 32  ;;  %p3319_p2 = scmp.lt.s32.totalorder %s2959_s30, %s2959_s30 }
0x3de3   :  { %3035 = vmatpush3.msra.mxu0 %v2868_v25  ;;  %p3315_p1 = scmp.ne.s32.totalorder %s2959_s30, %s3314_s1  ;;  %p3320_p3 = scmp.lt.s32.totalorder %s3314_s1, %s3314_s1 }
0x3de4   :  { %3248 = vpow2.f32 %v3020_v13  ;;  %3036 = vmatprep.subr.mxu0 %v3345_v0 }
0x3de5   :  { %3037 = vmatpush3.msra.mxu0 %v2867_v34  ;;  %p3321_p4 = por %p3320_p3, %p3319_p2 }
0x3de6   :  { %3038 = vmatprep.subr.mxu0 %v3345_v0 }
0x3de7   :  { %3039 = vmatpush3.msra.mxu0 %v2866_v24  ;;  %p3322_p5 = pnand %p3321_p4, %p3315_p1 }
0x3de8   :  { %3040 = vmatprep.subr.mxu0 %v3345_v0 }
0x3de9   :  { %3041 = vmatpush3.msra.mxu0 %v2865_v59 }
0x3dea   :  { %3042 = vmatprep.subr.mxu0 %v3345_v0 }
0x3deb   :  { %3043 = vmatpush3.msra.mxu0 %v2864_v40 }
0x3dec   :  { %3044 = vmatprep.subr.mxu0 %v3345_v0 }
0x3ded   :  { %3045 = vmatpush3.msra.mxu0 %v2863_v41 }
0x3dee   :  { %3046 = vmatprep.subr.mxu0 %v3345_v0 }
0x3def   :  { %v3247_v61 = vpop.eup %3246  ;;  %3047 = vmatpush3.msra.mxu0 %v2862_v55 }
0x3df0   :  { %2838 = vrot.lane.b32.xlu0 %v3247_v61, %s3346_s0 }
0x3df1   :  { %v3249_v15 = vpop.eup %3248 }
0x3df2   :  { %v2832_v16 = vadd.f32 1.0, %v3249_v15 }
0x3df4   :  { %3250 = vrcp.f32 %v2832_v16 }
0x3e01   :  { %v3251_v60 = vpop.eup %3250 }
0x3e02   :  { %v2836_v22 = vmul.f32 %v3251_v60, %v2744_v4 }
0x3e62   :  { %v2839_v19 = vpop.permute.xlu0 %2838 }
0x3e63   :  { %v2841_v14 = vmul.f32 %v3251_v60, %v2839_v19 }
0x3e65   :  { %2843 = vrot.lane.b32.xlu1 %v2841_v14, %s3346_s0 }
0x3ed7   :  { %v2844_v23 = vpop.permute.xlu1 %2843 }
0x3ed8   :  { %v2846_v8 = vadd.f32 %v2844_v23, %v2836_v22 }
0x3eda   :  { %3252 = vtanh.f32 %v2846_v8 }
0x3ee7   :  { %v3253_v27 = vpop.eup %3252 }
0x3ee8   :  { %2849 = vrot.lane.b32.xlu0 %v3253_v27, %s3346_s0 }
0x3f5a   :  { %v2850_v31 = vpop.permute.xlu0 %2849 }
0x3f5b   :  { %v2852_v39 = vmul.f32 %v3251_v60, %v2850_v31 }
0x3f5d   :  { %v2857_v32 = vrot.slane %v2852_v39, 2  ;;  %2854 = vrot.lane.b32.xlu1 %v2852_v39, %s3348_s11 }
0x3f5f   :  { %2858 = vrot.lane.b32.xlu0 %v2857_v32, %s3347_s10 }
0x3fcf   :  { %v2855_v33 = vpop.permute.xlu1 %2854 }
0x3fd1   :  { %v2859_v35 = vpop.permute.xlu0 %2858 }
0x3fd2   :  { %v2861_v28 = vsel %vm250_vm3, %v2855_v33, %v2859_v35 }
0x3fd3   :  { %3049 = vmatmul.mubr.msk.f32.vlgmr.msra.gmra.mxu0 %vm1042_vm6, %v2861_v28 }
0x4093   :  { %v2946_v0 = vpop.f32.mrf.mxu0 }
0x4094   :  { %v2947_v20 = vadd.f32 %v3021_v36, %v2946_v0 }
0x4095   :  { %v3050_v18 = vpop.f32.mrf.mxu0 }
0x4096   :  { %2951 = vst.msk [vmem:[#allocation10] sm:$0x3] %vm2950_vm8, %v2947_v20 }
0x4097   :  { %3325 = shalt.err (!%p3322_p5)
}
0x4098   :  { %2961 = dma.vmem_to_hbm [thread:$0]  %s2959_s30, 32, %s4104_s8, [#allocation6]  }
0x4099   :  { %3338 = dma.done.wait [#allocation6], 32  }
0x409a   :  { %3339 = vsyncadd [#allocation6], 4294967264 }
0x409b   :  { %2965 = vsyncpa [#allocation5], 1 }
0x409c   :  { %2966 = vsyncpa [#allocation8], 1 }
0x409d   :  { %2967 = vsyncpa [#allocation6], 1 }

</bundles_post_ra>
